<compile_context>
chip_gen: v7x
topology: tpu7x:2x2x1
jax: 0.10.0
libtpu: 0.0.40
codegen_flags: <defaults>
</compile_context>

<pallas_src>
import functools

import jax
import jax.numpy as jnp
from jax.experimental import pallas as pl
from jax.experimental.pallas import tpu as pltpu

KSZ = 7  # pos_emb conv kernel size
PAD = 3
LN_EPS = 1e-5


def _layernorm(h, gamma, beta):
    mu = jnp.mean(h, axis=-1, keepdims=True)
    var = jnp.mean((h - mu) ** 2, axis=-1, keepdims=True)
    return (h - mu) * jax.lax.rsqrt(var + LN_EPS) * gamma + beta


# ----------------------------------------------------------------------------
# Fused kernel: depthwise conv (at l==0) + all encoder layers + final LayerNorm
# grid = (B, n_layers); hidden state lives in VMEM scratch across the layer axis
# ----------------------------------------------------------------------------
def tf_stack_kernel(x_ref, cw_ref, cb_ref,
                    wqkv_ref, bqkv_ref, wo_ref, bo_ref,
                    g1_ref, be1_ref, w1_ref, b1_ref, w2_ref, b2_ref,
                    g2_ref, be2_ref, gf_ref, bf_ref,
                    o_ref, h_ref, pad_ref, *, n_heads):
    l = pl.program_id(1)
    n_layers = pl.num_programs(1)
    S, D = h_ref.shape
    dh = D // n_heads

    # ---- l == 0: fused pos_emb (depthwise 7x7 conv) + bias + residual ----
    @pl.when(l == 0)
    def _():
        Hh, Ww, C = x_ref.shape[1], x_ref.shape[2], x_ref.shape[3]
        Wp = Ww + 2 * PAD
        x = x_ref[0].astype(jnp.float32)                       # (H, W, C)
        # Zero only the border strips; the interior is fully overwritten below.
        zrow = jnp.zeros((PAD, Wp, C), jnp.float32)
        pad_ref[pl.ds(0, PAD), :, :] = zrow
        pad_ref[pl.ds(Hh + PAD, PAD), :, :] = zrow
        zcol = jnp.zeros((Hh, PAD, C), jnp.float32)
        pad_ref[pl.ds(PAD, Hh), pl.ds(0, PAD), :] = zcol
        pad_ref[pl.ds(PAD, Hh), pl.ds(Ww + PAD, PAD), :] = zcol
        pad_ref[pl.ds(PAD, Hh), pl.ds(PAD, Ww), :] = x

        w_all = cw_ref[...].astype(jnp.float32)                # (7, 7, C)
        acc = x + cb_ref[0].astype(jnp.float32)                # residual + conv bias
        # TODO(synk): for small C (<128 lanes) fold W into the lane axis and use
        # pltpu.roll for the horizontal taps to raise VPU/vld lane occupancy.
        for dy in range(KSZ):
            for dx in range(KSZ):
                acc = acc + pad_ref[pl.ds(dy, Hh), pl.ds(dx, Ww), :] * w_all[dy, dx]
        # (H, W, C) -> (H*W, C) hidden state, stored row-block by row-block
        # (avoids a second-minor reshape inside the kernel).
        for hh in range(Hh):
            h_ref[pl.ds(hh * Ww, Ww), :] = acc[hh]

    # --------------------------- encoder layer l ---------------------------
    h = h_ref[...]                                             # (S, D) f32
    hb = h.astype(jnp.bfloat16)

    # Fused QKV: one (S,D)@(D,3D) bf16 matmul; 1/sqrt(dh) already folded in Wq/bq.
    qkv = jnp.dot(hb, wqkv_ref[l], preferred_element_type=jnp.float32) + bqkv_ref[l]
    qkv_b = qkv.astype(jnp.bfloat16)                           # (S, 3D)

    # Per-head attention on dh-wide lane slices (heads statically unrolled).
    ctx_heads = []
    for hd in range(n_heads):
        q_h = qkv_b[:, hd * dh:(hd + 1) * dh]                  # (S, dh)
        k_h = qkv_b[:, D + hd * dh:D + (hd + 1) * dh]
        v_h = qkv_b[:, 2 * D + hd * dh:2 * D + (hd + 1) * dh]
        s = jnp.einsum('qe,ke->qk', q_h, k_h,
                       preferred_element_type=jnp.float32)     # (S, S)
        s = s - jnp.max(s, axis=-1, keepdims=True)
        p = jnp.exp(s)
        p = p / jnp.sum(p, axis=-1, keepdims=True)             # exact divide (parity)
        ctx_heads.append(jnp.dot(p.astype(jnp.bfloat16), v_h,
                                 preferred_element_type=jnp.float32))
    ctx = jnp.concatenate(ctx_heads, axis=-1)                  # (S, D)

    # Single full-width output projection with the unsplit Wo.
    attn_out = jnp.dot(ctx.astype(jnp.bfloat16), wo_ref[l],
                       preferred_element_type=jnp.float32) + bo_ref[l]

    y1 = _layernorm(h + attn_out, g1_ref[l], be1_ref[l])
    ff = jnp.maximum(
        jnp.dot(y1.astype(jnp.bfloat16), w1_ref[l],
                preferred_element_type=jnp.float32) + b1_ref[l], 0.0)
    y2 = _layernorm(
        y1 + jnp.dot(ff.astype(jnp.bfloat16), w2_ref[l],
                     preferred_element_type=jnp.float32) + b2_ref[l],
        g2_ref[l], be2_ref[l])

    h_ref[...] = y2

    @pl.when(l == n_layers - 1)
    def _():
        # TODO(synk): with production D >= 128 this store is lane-dense; at D=32
        # it is a masked store (acceptable at these shapes).
        o_ref[0] = _layernorm(y2, gf_ref[0], bf_ref[0]).astype(o_ref.dtype)


def _full_spec(shape):
    nd = len(shape)
    return pl.BlockSpec(tuple(shape), lambda b, l, _n=nd: (0,) * _n)


def tf_fused_forward(x_nhwc, conv_w, conv_b, st, fin_g, fin_b, n_heads):
    B, Hh, Ww, C = x_nhwc.shape
    S, D = Hh * Ww, C
    L = st["wqkv"].shape[0]
    F = st["w1"].shape[-1]
    kern = functools.partial(tf_stack_kernel, n_heads=n_heads)
    return pl.pallas_call(
        kern,
        out_shape=jax.ShapeDtypeStruct((B, S, D), x_nhwc.dtype),
        grid=(B, L),
        in_specs=[
            pl.BlockSpec((1, Hh, Ww, C), lambda b, l: (b, 0, 0, 0)),
            _full_spec((KSZ, KSZ, C)),            # conv taps
            _full_spec((1, C)),                   # conv bias
            _full_spec((L, D, 3 * D)),            # fused Wqkv (bf16)
            _full_spec((L, 1, 3 * D)),            # fused bqkv
            _full_spec((L, D, D)),                # Wo (bf16)
            _full_spec((L, 1, D)),                # bo
            _full_spec((L, 1, D)), _full_spec((L, 1, D)),   # LN1 g, b
            _full_spec((L, D, F)), _full_spec((L, 1, F)),   # W1, b1
            _full_spec((L, F, D)), _full_spec((L, 1, D)),   # W2, b2
            _full_spec((L, 1, D)), _full_spec((L, 1, D)),   # LN2 g, b
            _full_spec((1, D)), _full_spec((1, D)),         # final LN g, b
        ],
        out_specs=pl.BlockSpec((1, S, D), lambda b, l: (b, 0, 0)),
        scratch_shapes=[
            pltpu.VMEM((S, D), jnp.float32),                              # hidden state
            pltpu.VMEM((Hh + 2 * PAD, Ww + 2 * PAD, C), jnp.float32),     # conv pad
        ],
        compiler_params=pltpu.CompilerParams(
            dimension_semantics=("parallel", "arbitrary"),
            # Tune per generation: ~64-96 MiB on v5e/v6e production shapes,
            # keep <= ~48 MiB on v7x (64 MiB physical VMEM).
            vmem_limit_bytes=32 * 1024 * 1024),
    )(x_nhwc, conv_w, conv_b,
      st["wqkv"], st["bqkv"], st["wo"], st["bo"],
      st["ln1_g"], st["ln1_b"], st["w1"], st["b1"],
      st["w2"], st["b2"], st["ln2_g"], st["ln2_b"],
      fin_g, fin_b)


# ----------------------------------------------------------------------------
# Host-side param preparation: stack layers, fuse QKV, fold scale, cast to bf16
# ----------------------------------------------------------------------------
def _stack_layer_params(layers, n_heads):
    def stack(name):
        return jnp.stack([lp[name] for lp in layers], axis=0)

    wq = stack("wq")                       # (L, D, D) [in, out]
    D = wq.shape[-1]
    dh = D // n_heads
    scale = 1.0 / (dh ** 0.5)

    wqkv = jnp.concatenate([wq * scale, stack("wk"), stack("wv")], axis=-1)   # (L,D,3D)
    bqkv = jnp.concatenate([stack("bq") * scale, stack("bk"), stack("bv")], axis=-1)

    return {
        "wqkv": wqkv.astype(jnp.bfloat16),
        "bqkv": bqkv,                                       # f32
        "wo": stack("wo").astype(jnp.bfloat16),
        "bo": stack("bo"),
        "ln1_g": stack("ln1_g"), "ln1_b": stack("ln1_b"),
        "w1": stack("w1").astype(jnp.bfloat16), "b1": stack("b1"),
        "w2": stack("w2").astype(jnp.bfloat16), "b2": stack("b2"),
        "ln2_g": stack("ln2_g"), "ln2_b": stack("ln2_b"),
    }


def tf_aggregation_forward(x_nchw, params, n_heads):
    """Forward pass matching TFAggregation.forward (NCHW in, NCHW out)."""
    B, C, Hs, Ws = x_nchw.shape
    x_nhwc = jnp.transpose(x_nchw, (0, 2, 3, 1))
    stacked = _stack_layer_params(params["layers"], n_heads)
    seq = tf_fused_forward(x_nhwc, params["conv_w"], params["conv_b"], stacked,
                           params["final_ln_g"], params["final_ln_b"], n_heads)
    # transpose(2,1).view(B, C, H, W)
    return jnp.transpose(seq, (0, 2, 1)).reshape(B, C, Hs, Ws)


# ----------------------------------------------------------------------------
# Deterministic parameter initialization (xavier_uniform for dim>1, zeros else)
# ----------------------------------------------------------------------------
def _xavier(key, shape, fan_in, fan_out, dtype=jnp.float32):
    bound = (6.0 / (fan_in + fan_out)) ** 0.5
    return jax.random.uniform(key, shape, dtype, minval=-bound, maxval=bound)


def init_params(key, emb_dim, ff_dim, n_layers):
    keys = jax.random.split(key, 2 + 8 * n_layers)
    ki = iter(keys)
    params = {
        # depthwise conv weight stored as (7, 7, C) taps (PyTorch: (C, 1, 7, 7))
        "conv_w": _xavier(next(ki), (KSZ, KSZ, emb_dim), KSZ * KSZ, KSZ * KSZ),
        "conv_b": jnp.zeros((1, emb_dim), jnp.float32),
        "final_ln_g": jnp.ones((1, emb_dim), jnp.float32),
        "final_ln_b": jnp.zeros((1, emb_dim), jnp.float32),
        "layers": [],
    }
    for _ in range(n_layers):
        lp = {
            "wq": _xavier(next(ki), (emb_dim, emb_dim), emb_dim, emb_dim),
            "bq": jnp.zeros((1, emb_dim), jnp.float32),
            "wk": _xavier(next(ki), (emb_dim, emb_dim), emb_dim, emb_dim),
            "bk": jnp.zeros((1, emb_dim), jnp.float32),
            "wv": _xavier(next(ki), (emb_dim, emb_dim), emb_dim, emb_dim),
            "bv": jnp.zeros((1, emb_dim), jnp.float32),
            "wo": _xavier(next(ki), (emb_dim, emb_dim), emb_dim, emb_dim),
            "bo": jnp.zeros((1, emb_dim), jnp.float32),
            "ln1_g": jnp.ones((1, emb_dim), jnp.float32),
            "ln1_b": jnp.zeros((1, emb_dim), jnp.float32),
            "w1": _xavier(next(ki), (emb_dim, ff_dim), emb_dim, ff_dim),
            "b1": jnp.zeros((1, ff_dim), jnp.float32),
            "w2": _xavier(next(ki), (ff_dim, emb_dim), ff_dim, emb_dim),
            "b2": jnp.zeros((1, emb_dim), jnp.float32),
            "ln2_g": jnp.ones((1, emb_dim), jnp.float32),
            "ln2_b": jnp.zeros((1, emb_dim), jnp.float32),
        }
        params["layers"].append(lp)
    return params


if __name__ == "__main__":
    # Small shapes consistent with the module:
    B, EMB_DIM, H, W = 2, 32, 8, 8
    FF_DIM, N_HEADS, N_LAYERS, P = 64, 4, 2, 0.1  # P unused (eval mode)

    key = jax.random.PRNGKey(0)
    kx, kp = jax.random.split(key)
    x = jax.random.normal(kx, (B, EMB_DIM, H, W), jnp.float32)
    params = init_params(kp, EMB_DIM, FF_DIM, N_LAYERS)

    fwd = jax.jit(functools.partial(tf_aggregation_forward, n_heads=N_HEADS))
    out = jax.block_until_ready(fwd(x, params))

    assert out.shape == (B, EMB_DIM, H, W), out.shape
    assert jnp.all(jnp.isfinite(out))
    print("KERNEL_OK")
</pallas_src>

<mosaic_0001>
module attributes {stable_mosaic.version = 11 : i64} {
  func.func @tf_stack_kernel(%arg0: i32, %arg1: i32, %arg2: memref<1x8x8x32xf32, #tpu.memory_space<vmem>>, %arg3: memref<7x7x32xf32, #tpu.memory_space<vmem>>, %arg4: memref<1x32xf32, #tpu.memory_space<vmem>>, %arg5: memref<2x32x96xbf16, #tpu.memory_space<vmem>>, %arg6: memref<2x1x96xf32, #tpu.memory_space<vmem>>, %arg7: memref<2x32x32xbf16, #tpu.memory_space<vmem>>, %arg8: memref<2x1x32xf32, #tpu.memory_space<vmem>>, %arg9: memref<2x1x32xf32, #tpu.memory_space<vmem>>, %arg10: memref<2x1x32xf32, #tpu.memory_space<vmem>>, %arg11: memref<2x32x64xbf16, #tpu.memory_space<vmem>>, %arg12: memref<2x1x64xf32, #tpu.memory_space<vmem>>, %arg13: memref<2x64x32xbf16, #tpu.memory_space<vmem>>, %arg14: memref<2x1x32xf32, #tpu.memory_space<vmem>>, %arg15: memref<2x1x32xf32, #tpu.memory_space<vmem>>, %arg16: memref<2x1x32xf32, #tpu.memory_space<vmem>>, %arg17: memref<1x32xf32, #tpu.memory_space<vmem>>, %arg18: memref<1x32xf32, #tpu.memory_space<vmem>>, %arg19: memref<1x64x32xf32, #tpu.memory_space<vmem>>, %arg20: memref<64x32xf32, #tpu.memory_space<vmem>>, %arg21: memref<14x14x32xf32, #tpu.memory_space<vmem>>) attributes {dimension_semantics = [#tpu.dimension_semantics<parallel>, #tpu.dimension_semantics<arbitrary>], iteration_bounds = array<i64: 2, 2>, scalar_prefetch = 0 : i64, scratch_operands = 2 : i64, tpu.core_type = #tpu.core_type<tc>, window_params = [{transform_indices = @transform_0, window_bounds = array<i64: 1, 8, 8, 32>}, {pipeline_mode = #tpu.pipeline_mode<synchronous>, transform_indices = @transform_1, window_bounds = array<i64: 7, 7, 32>}, {pipeline_mode = #tpu.pipeline_mode<synchronous>, transform_indices = @transform_2, window_bounds = array<i64: 1, 32>}, {pipeline_mode = #tpu.pipeline_mode<synchronous>, transform_indices = @transform_3, window_bounds = array<i64: 2, 32, 96>}, {pipeline_mode = #tpu.pipeline_mode<synchronous>, transform_indices = @transform_4, window_bounds = array<i64: 2, 1, 96>}, {pipeline_mode = #tpu.pipeline_mode<synchronous>, transform_indices = @transform_5, window_bounds = array<i64: 2, 32, 32>}, {pipeline_mode = #tpu.pipeline_mode<synchronous>, transform_indices = @transform_6, window_bounds = array<i64: 2, 1, 32>}, {pipeline_mode = #tpu.pipeline_mode<synchronous>, transform_indices = @transform_7, window_bounds = array<i64: 2, 1, 32>}, {pipeline_mode = #tpu.pipeline_mode<synchronous>, transform_indices = @transform_8, window_bounds = array<i64: 2, 1, 32>}, {pipeline_mode = #tpu.pipeline_mode<synchronous>, transform_indices = @transform_9, window_bounds = array<i64: 2, 32, 64>}, {pipeline_mode = #tpu.pipeline_mode<synchronous>, transform_indices = @transform_10, window_bounds = array<i64: 2, 1, 64>}, {pipeline_mode = #tpu.pipeline_mode<synchronous>, transform_indices = @transform_11, window_bounds = array<i64: 2, 64, 32>}, {pipeline_mode = #tpu.pipeline_mode<synchronous>, transform_indices = @transform_12, window_bounds = array<i64: 2, 1, 32>}, {pipeline_mode = #tpu.pipeline_mode<synchronous>, transform_indices = @transform_13, window_bounds = array<i64: 2, 1, 32>}, {pipeline_mode = #tpu.pipeline_mode<synchronous>, transform_indices = @transform_14, window_bounds = array<i64: 2, 1, 32>}, {pipeline_mode = #tpu.pipeline_mode<synchronous>, transform_indices = @transform_15, window_bounds = array<i64: 1, 32>}, {pipeline_mode = #tpu.pipeline_mode<synchronous>, transform_indices = @transform_16, window_bounds = array<i64: 1, 32>}, {transform_indices = @transform_17, window_bounds = array<i64: 1, 64, 32>}]} {
    %c0_i32 = arith.constant 0 : i32
    %0 = arith.cmpi eq, %arg1, %c0_i32 : i32
    %1 = arith.extui %0 : i1 to i32
    %c0_i32_0 = arith.constant 0 : i32
    %2 = arith.cmpi ne, %1, %c0_i32_0 : i32
    scf.if %2 {
      %c0_59 = arith.constant 0 : index
      %c0_60 = arith.constant 0 : index
      %c0_61 = arith.constant 0 : index
      %c0_62 = arith.constant 0 : index
      %170 = vector.load %arg2[%c0_59, %c0_60, %c0_61, %c0_62] : memref<1x8x8x32xf32, #tpu.memory_space<vmem>>, vector<1x8x8x32xf32>
      %171 = vector.shape_cast %170 : vector<1x8x8x32xf32> to vector<8x8x32xf32>
      %cst_63 = arith.constant 0.000000e+00 : f32
      %172 = vector.broadcast %cst_63 : f32 to vector<3x14x32xf32>
      %c0_64 = arith.constant 0 : index
      %c0_65 = arith.constant 0 : index
      %c0_66 = arith.constant 0 : index
      %173 = vector.load %arg21[%c0_64, %c0_65, %c0_66] : memref<14x14x32xf32, #tpu.memory_space<vmem>>, vector<3x14x32xf32>
      tpu.vector_store %arg21[%c0_64, %c0_65, %c0_66], %172 {strides = array<i32>} : memref<14x14x32xf32, #tpu.memory_space<vmem>>, vector<3x14x32xf32>,
      %c11 = arith.constant 11 : index
      %c0_67 = arith.constant 0 : index
      %c0_68 = arith.constant 0 : index
      %174 = vector.load %arg21[%c11, %c0_67, %c0_68] : memref<14x14x32xf32, #tpu.memory_space<vmem>>, vector<3x14x32xf32>
      tpu.vector_store %arg21[%c11, %c0_67, %c0_68], %172 {strides = array<i32>} : memref<14x14x32xf32, #tpu.memory_space<vmem>>, vector<3x14x32xf32>,
      %cst_69 = arith.constant 0.000000e+00 : f32
      %175 = vector.broadcast %cst_69 : f32 to vector<8x3x32xf32>
      %c3 = arith.constant 3 : index
      %c0_70 = arith.constant 0 : index
      %c0_71 = arith.constant 0 : index
      %176 = vector.load %arg21[%c3, %c0_70, %c0_71] : memref<14x14x32xf32, #tpu.memory_space<vmem>>, vector<8x3x32xf32>
      tpu.vector_store %arg21[%c3, %c0_70, %c0_71], %175 {strides = array<i32>} : memref<14x14x32xf32, #tpu.memory_space<vmem>>, vector<8x3x32xf32>,
      %c3_72 = arith.constant 3 : index
      %c11_73 = arith.constant 11 : index
      %c0_74 = arith.constant 0 : index
      %177 = vector.load %arg21[%c3_72, %c11_73, %c0_74] : memref<14x14x32xf32, #tpu.memory_space<vmem>>, vector<8x3x32xf32>
      tpu.vector_store %arg21[%c3_72, %c11_73, %c0_74], %175 {strides = array<i32>} : memref<14x14x32xf32, #tpu.memory_space<vmem>>, vector<8x3x32xf32>,
      %c3_75 = arith.constant 3 : index
      %c3_76 = arith.constant 3 : index
      %c0_77 = arith.constant 0 : index
      %178 = vector.load %arg21[%c3_75, %c3_76, %c0_77] : memref<14x14x32xf32, #tpu.memory_space<vmem>>, vector<8x8x32xf32>
      tpu.vector_store %arg21[%c3_75, %c3_76, %c0_77], %171 {strides = array<i32>} : memref<14x14x32xf32, #tpu.memory_space<vmem>>, vector<8x8x32xf32>,
      %c0_78 = arith.constant 0 : index
      %c0_79 = arith.constant 0 : index
      %c0_80 = arith.constant 0 : index
      %179 = vector.load %arg3[%c0_78, %c0_79, %c0_80] : memref<7x7x32xf32, #tpu.memory_space<vmem>>, vector<7x7x32xf32>
      %c0_81 = arith.constant 0 : index
      %c0_82 = arith.constant 0 : index
      %180 = vector.load %arg4[%c0_81, %c0_82] : memref<1x32xf32, #tpu.memory_space<vmem>>, vector<1x32xf32>
      %181 = vector.shape_cast %180 : vector<1x32xf32> to vector<32xf32>
      %182 = vector.shape_cast %181 : vector<32xf32> to vector<1x1x32xf32>
      %183 = vector.broadcast %182 : vector<1x1x32xf32> to vector<8x8x32xf32>
      %184 = arith.addf %171, %183 : vector<8x8x32xf32>
      %c0_83 = arith.constant 0 : index
      %c0_84 = arith.constant 0 : index
      %c0_85 = arith.constant 0 : index
      %185 = vector.load %arg21[%c0_83, %c0_84, %c0_85] : memref<14x14x32xf32, #tpu.memory_space<vmem>>, vector<8x8x32xf32>
      %186 = vector.extract_strided_slice %179 {offsets = [0, 0, 0], sizes = [1, 1, 32], strides = [1, 1, 1]} : vector<7x7x32xf32> to vector<1x1x32xf32>
      %187 = vector.shape_cast %186 : vector<1x1x32xf32> to vector<32xf32>
      %188 = vector.shape_cast %187 : vector<32xf32> to vector<1x1x32xf32>
      %189 = vector.broadcast %188 : vector<1x1x32xf32> to vector<8x8x32xf32>
      %190 = arith.mulf %185, %189 : vector<8x8x32xf32>
      %191 = arith.addf %184, %190 : vector<8x8x32xf32>
      %c0_86 = arith.constant 0 : index
      %c1 = arith.constant 1 : index
      %c0_87 = arith.constant 0 : index
      %192 = vector.load %arg21[%c0_86, %c1, %c0_87] : memref<14x14x32xf32, #tpu.memory_space<vmem>>, vector<8x8x32xf32>
      %193 = vector.extract_strided_slice %179 {offsets = [0, 1, 0], sizes = [1, 1, 32], strides = [1, 1, 1]} : vector<7x7x32xf32> to vector<1x1x32xf32>
      %194 = vector.shape_cast %193 : vector<1x1x32xf32> to vector<32xf32>
      %195 = vector.shape_cast %194 : vector<32xf32> to vector<1x1x32xf32>
      %196 = vector.broadcast %195 : vector<1x1x32xf32> to vector<8x8x32xf32>
      %197 = arith.mulf %192, %196 : vector<8x8x32xf32>
      %198 = arith.addf %191, %197 : vector<8x8x32xf32>
      %c0_88 = arith.constant 0 : index
      %c2 = arith.constant 2 : index
      %c0_89 = arith.constant 0 : index
      %199 = vector.load %arg21[%c0_88, %c2, %c0_89] : memref<14x14x32xf32, #tpu.memory_space<vmem>>, vector<8x8x32xf32>
      %200 = vector.extract_strided_slice %179 {offsets = [0, 2, 0], sizes = [1, 1, 32], strides = [1, 1, 1]} : vector<7x7x32xf32> to vector<1x1x32xf32>
      %201 = vector.shape_cast %200 : vector<1x1x32xf32> to vector<32xf32>
      %202 = vector.shape_cast %201 : vector<32xf32> to vector<1x1x32xf32>
      %203 = vector.broadcast %202 : vector<1x1x32xf32> to vector<8x8x32xf32>
      %204 = arith.mulf %199, %203 : vector<8x8x32xf32>
      %205 = arith.addf %198, %204 : vector<8x8x32xf32>
      %c0_90 = arith.constant 0 : index
      %c3_91 = arith.constant 3 : index
      %c0_92 = arith.constant 0 : index
      %206 = vector.load %arg21[%c0_90, %c3_91, %c0_92] : memref<14x14x32xf32, #tpu.memory_space<vmem>>, vector<8x8x32xf32>
      %207 = vector.extract_strided_slice %179 {offsets = [0, 3, 0], sizes = [1, 1, 32], strides = [1, 1, 1]} : vector<7x7x32xf32> to vector<1x1x32xf32>
      %208 = vector.shape_cast %207 : vector<1x1x32xf32> to vector<32xf32>
      %209 = vector.shape_cast %208 : vector<32xf32> to vector<1x1x32xf32>
      %210 = vector.broadcast %209 : vector<1x1x32xf32> to vector<8x8x32xf32>
      %211 = arith.mulf %206, %210 : vector<8x8x32xf32>
      %212 = arith.addf %205, %211 : vector<8x8x32xf32>
      %c0_93 = arith.constant 0 : index
      %c4 = arith.constant 4 : index
      %c0_94 = arith.constant 0 : index
      %213 = vector.load %arg21[%c0_93, %c4, %c0_94] : memref<14x14x32xf32, #tpu.memory_space<vmem>>, vector<8x8x32xf32>
      %214 = vector.extract_strided_slice %179 {offsets = [0, 4, 0], sizes = [1, 1, 32], strides = [1, 1, 1]} : vector<7x7x32xf32> to vector<1x1x32xf32>
      %215 = vector.shape_cast %214 : vector<1x1x32xf32> to vector<32xf32>
      %216 = vector.shape_cast %215 : vector<32xf32> to vector<1x1x32xf32>
      %217 = vector.broadcast %216 : vector<1x1x32xf32> to vector<8x8x32xf32>
      %218 = arith.mulf %213, %217 : vector<8x8x32xf32>
      %219 = arith.addf %212, %218 : vector<8x8x32xf32>
      %c0_95 = arith.constant 0 : index
      %c5 = arith.constant 5 : index
      %c0_96 = arith.constant 0 : index
      %220 = vector.load %arg21[%c0_95, %c5, %c0_96] : memref<14x14x32xf32, #tpu.memory_space<vmem>>, vector<8x8x32xf32>
      %221 = vector.extract_strided_slice %179 {offsets = [0, 5, 0], sizes = [1, 1, 32], strides = [1, 1, 1]} : vector<7x7x32xf32> to vector<1x1x32xf32>
      %222 = vector.shape_cast %221 : vector<1x1x32xf32> to vector<32xf32>
      %223 = vector.shape_cast %222 : vector<32xf32> to vector<1x1x32xf32>
      %224 = vector.broadcast %223 : vector<1x1x32xf32> to vector<8x8x32xf32>
      %225 = arith.mulf %220, %224 : vector<8x8x32xf32>
      %226 = arith.addf %219, %225 : vector<8x8x32xf32>
      %c0_97 = arith.constant 0 : index
      %c6 = arith.constant 6 : index
      %c0_98 = arith.constant 0 : index
      %227 = vector.load %arg21[%c0_97, %c6, %c0_98] : memref<14x14x32xf32, #tpu.memory_space<vmem>>, vector<8x8x32xf32>
      %228 = vector.extract_strided_slice %179 {offsets = [0, 6, 0], sizes = [1, 1, 32], strides = [1, 1, 1]} : vector<7x7x32xf32> to vector<1x1x32xf32>
      %229 = vector.shape_cast %228 : vector<1x1x32xf32> to vector<32xf32>
      %230 = vector.shape_cast %229 : vector<32xf32> to vector<1x1x32xf32>
      %231 = vector.broadcast %230 : vector<1x1x32xf32> to vector<8x8x32xf32>
      %232 = arith.mulf %227, %231 : vector<8x8x32xf32>
      %233 = arith.addf %226, %232 : vector<8x8x32xf32>
      %c1_99 = arith.constant 1 : index
      %c0_100 = arith.constant 0 : index
      %c0_101 = arith.constant 0 : index
      %234 = vector.load %arg21[%c1_99, %c0_100, %c0_101] : memref<14x14x32xf32, #tpu.memory_space<vmem>>, vector<8x8x32xf32>
      %235 = vector.extract_strided_slice %179 {offsets = [1, 0, 0], sizes = [1, 1, 32], strides = [1, 1, 1]} : vector<7x7x32xf32> to vector<1x1x32xf32>
      %236 = vector.shape_cast %235 : vector<1x1x32xf32> to vector<32xf32>
      %237 = vector.shape_cast %236 : vector<32xf32> to vector<1x1x32xf32>
      %238 = vector.broadcast %237 : vector<1x1x32xf32> to vector<8x8x32xf32>
      %239 = arith.mulf %234, %238 : vector<8x8x32xf32>
      %240 = arith.addf %233, %239 : vector<8x8x32xf32>
      %c1_102 = arith.constant 1 : index
      %c1_103 = arith.constant 1 : index
      %c0_104 = arith.constant 0 : index
      %241 = vector.load %arg21[%c1_102, %c1_103, %c0_104] : memref<14x14x32xf32, #tpu.memory_space<vmem>>, vector<8x8x32xf32>
      %242 = vector.extract_strided_slice %179 {offsets = [1, 1, 0], sizes = [1, 1, 32], strides = [1, 1, 1]} : vector<7x7x32xf32> to vector<1x1x32xf32>
      %243 = vector.shape_cast %242 : vector<1x1x32xf32> to vector<32xf32>
      %244 = vector.shape_cast %243 : vector<32xf32> to vector<1x1x32xf32>
      %245 = vector.broadcast %244 : vector<1x1x32xf32> to vector<8x8x32xf32>
      %246 = arith.mulf %241, %245 : vector<8x8x32xf32>
      %247 = arith.addf %240, %246 : vector<8x8x32xf32>
      %c1_105 = arith.constant 1 : index
      %c2_106 = arith.constant 2 : index
      %c0_107 = arith.constant 0 : index
      %248 = vector.load %arg21[%c1_105, %c2_106, %c0_107] : memref<14x14x32xf32, #tpu.memory_space<vmem>>, vector<8x8x32xf32>
      %249 = vector.extract_strided_slice %179 {offsets = [1, 2, 0], sizes = [1, 1, 32], strides = [1, 1, 1]} : vector<7x7x32xf32> to vector<1x1x32xf32>
      %250 = vector.shape_cast %249 : vector<1x1x32xf32> to vector<32xf32>
      %251 = vector.shape_cast %250 : vector<32xf32> to vector<1x1x32xf32>
      %252 = vector.broadcast %251 : vector<1x1x32xf32> to vector<8x8x32xf32>
      %253 = arith.mulf %248, %252 : vector<8x8x32xf32>
      %254 = arith.addf %247, %253 : vector<8x8x32xf32>
      %c1_108 = arith.constant 1 : index
      %c3_109 = arith.constant 3 : index
      %c0_110 = arith.constant 0 : index
      %255 = vector.load %arg21[%c1_108, %c3_109, %c0_110] : memref<14x14x32xf32, #tpu.memory_space<vmem>>, vector<8x8x32xf32>
      %256 = vector.extract_strided_slice %179 {offsets = [1, 3, 0], sizes = [1, 1, 32], strides = [1, 1, 1]} : vector<7x7x32xf32> to vector<1x1x32xf32>
      %257 = vector.shape_cast %256 : vector<1x1x32xf32> to vector<32xf32>
      %258 = vector.shape_cast %257 : vector<32xf32> to vector<1x1x32xf32>
      %259 = vector.broadcast %258 : vector<1x1x32xf32> to vector<8x8x32xf32>
      %260 = arith.mulf %255, %259 : vector<8x8x32xf32>
      %261 = arith.addf %254, %260 : vector<8x8x32xf32>
      %c1_111 = arith.constant 1 : index
      %c4_112 = arith.constant 4 : index
      %c0_113 = arith.constant 0 : index
      %262 = vector.load %arg21[%c1_111, %c4_112, %c0_113] : memref<14x14x32xf32, #tpu.memory_space<vmem>>, vector<8x8x32xf32>
      %263 = vector.extract_strided_slice %179 {offsets = [1, 4, 0], sizes = [1, 1, 32], strides = [1, 1, 1]} : vector<7x7x32xf32> to vector<1x1x32xf32>
      %264 = vector.shape_cast %263 : vector<1x1x32xf32> to vector<32xf32>
      %265 = vector.shape_cast %264 : vector<32xf32> to vector<1x1x32xf32>
      %266 = vector.broadcast %265 : vector<1x1x32xf32> to vector<8x8x32xf32>
      %267 = arith.mulf %262, %266 : vector<8x8x32xf32>
      %268 = arith.addf %261, %267 : vector<8x8x32xf32>
      %c1_114 = arith.constant 1 : index
      %c5_115 = arith.constant 5 : index
      %c0_116 = arith.constant 0 : index
      %269 = vector.load %arg21[%c1_114, %c5_115, %c0_116] : memref<14x14x32xf32, #tpu.memory_space<vmem>>, vector<8x8x32xf32>
      %270 = vector.extract_strided_slice %179 {offsets = [1, 5, 0], sizes = [1, 1, 32], strides = [1, 1, 1]} : vector<7x7x32xf32> to vector<1x1x32xf32>
      %271 = vector.shape_cast %270 : vector<1x1x32xf32> to vector<32xf32>
      %272 = vector.shape_cast %271 : vector<32xf32> to vector<1x1x32xf32>
      %273 = vector.broadcast %272 : vector<1x1x32xf32> to vector<8x8x32xf32>
      %274 = arith.mulf %269, %273 : vector<8x8x32xf32>
      %275 = arith.addf %268, %274 : vector<8x8x32xf32>
      %c1_117 = arith.constant 1 : index
      %c6_118 = arith.constant 6 : index
      %c0_119 = arith.constant 0 : index
      %276 = vector.load %arg21[%c1_117, %c6_118, %c0_119] : memref<14x14x32xf32, #tpu.memory_space<vmem>>, vector<8x8x32xf32>
      %277 = vector.extract_strided_slice %179 {offsets = [1, 6, 0], sizes = [1, 1, 32], strides = [1, 1, 1]} : vector<7x7x32xf32> to vector<1x1x32xf32>
      %278 = vector.shape_cast %277 : vector<1x1x32xf32> to vector<32xf32>
      %279 = vector.shape_cast %278 : vector<32xf32> to vector<1x1x32xf32>
      %280 = vector.broadcast %279 : vector<1x1x32xf32> to vector<8x8x32xf32>
      %281 = arith.mulf %276, %280 : vector<8x8x32xf32>
      %282 = arith.addf %275, %281 : vector<8x8x32xf32>
      %c2_120 = arith.constant 2 : index
      %c0_121 = arith.constant 0 : index
      %c0_122 = arith.constant 0 : index
      %283 = vector.load %arg21[%c2_120, %c0_121, %c0_122] : memref<14x14x32xf32, #tpu.memory_space<vmem>>, vector<8x8x32xf32>
      %284 = vector.extract_strided_slice %179 {offsets = [2, 0, 0], sizes = [1, 1, 32], strides = [1, 1, 1]} : vector<7x7x32xf32> to vector<1x1x32xf32>
      %285 = vector.shape_cast %284 : vector<1x1x32xf32> to vector<32xf32>
      %286 = vector.shape_cast %285 : vector<32xf32> to vector<1x1x32xf32>
      %287 = vector.broadcast %286 : vector<1x1x32xf32> to vector<8x8x32xf32>
      %288 = arith.mulf %283, %287 : vector<8x8x32xf32>
      %289 = arith.addf %282, %288 : vector<8x8x32xf32>
      %c2_123 = arith.constant 2 : index
      %c1_124 = arith.constant 1 : index
      %c0_125 = arith.constant 0 : index
      %290 = vector.load %arg21[%c2_123, %c1_124, %c0_125] : memref<14x14x32xf32, #tpu.memory_space<vmem>>, vector<8x8x32xf32>
      %291 = vector.extract_strided_slice %179 {offsets = [2, 1, 0], sizes = [1, 1, 32], strides = [1, 1, 1]} : vector<7x7x32xf32> to vector<1x1x32xf32>
      %292 = vector.shape_cast %291 : vector<1x1x32xf32> to vector<32xf32>
      %293 = vector.shape_cast %292 : vector<32xf32> to vector<1x1x32xf32>
      %294 = vector.broadcast %293 : vector<1x1x32xf32> to vector<8x8x32xf32>
      %295 = arith.mulf %290, %294 : vector<8x8x32xf32>
      %296 = arith.addf %289, %295 : vector<8x8x32xf32>
      %c2_126 = arith.constant 2 : index
      %c2_127 = arith.constant 2 : index
      %c0_128 = arith.constant 0 : index
      %297 = vector.load %arg21[%c2_126, %c2_127, %c0_128] : memref<14x14x32xf32, #tpu.memory_space<vmem>>, vector<8x8x32xf32>
      %298 = vector.extract_strided_slice %179 {offsets = [2, 2, 0], sizes = [1, 1, 32], strides = [1, 1, 1]} : vector<7x7x32xf32> to vector<1x1x32xf32>
      %299 = vector.shape_cast %298 : vector<1x1x32xf32> to vector<32xf32>
      %300 = vector.shape_cast %299 : vector<32xf32> to vector<1x1x32xf32>
      %301 = vector.broadcast %300 : vector<1x1x32xf32> to vector<8x8x32xf32>
      %302 = arith.mulf %297, %301 : vector<8x8x32xf32>
      %303 = arith.addf %296, %302 : vector<8x8x32xf32>
      %c2_129 = arith.constant 2 : index
      %c3_130 = arith.constant 3 : index
      %c0_131 = arith.constant 0 : index
      %304 = vector.load %arg21[%c2_129, %c3_130, %c0_131] : memref<14x14x32xf32, #tpu.memory_space<vmem>>, vector<8x8x32xf32>
      %305 = vector.extract_strided_slice %179 {offsets = [2, 3, 0], sizes = [1, 1, 32], strides = [1, 1, 1]} : vector<7x7x32xf32> to vector<1x1x32xf32>
      %306 = vector.shape_cast %305 : vector<1x1x32xf32> to vector<32xf32>
      %307 = vector.shape_cast %306 : vector<32xf32> to vector<1x1x32xf32>
      %308 = vector.broadcast %307 : vector<1x1x32xf32> to vector<8x8x32xf32>
      %309 = arith.mulf %304, %308 : vector<8x8x32xf32>
      %310 = arith.addf %303, %309 : vector<8x8x32xf32>
      %c2_132 = arith.constant 2 : index
      %c4_133 = arith.constant 4 : index
      %c0_134 = arith.constant 0 : index
      %311 = vector.load %arg21[%c2_132, %c4_133, %c0_134] : memref<14x14x32xf32, #tpu.memory_space<vmem>>, vector<8x8x32xf32>
      %312 = vector.extract_strided_slice %179 {offsets = [2, 4, 0], sizes = [1, 1, 32], strides = [1, 1, 1]} : vector<7x7x32xf32> to vector<1x1x32xf32>
      %313 = vector.shape_cast %312 : vector<1x1x32xf32> to vector<32xf32>
      %314 = vector.shape_cast %313 : vector<32xf32> to vector<1x1x32xf32>
      %315 = vector.broadcast %314 : vector<1x1x32xf32> to vector<8x8x32xf32>
      %316 = arith.mulf %311, %315 : vector<8x8x32xf32>
      %317 = arith.addf %310, %316 : vector<8x8x32xf32>
      %c2_135 = arith.constant 2 : index
      %c5_136 = arith.constant 5 : index
      %c0_137 = arith.constant 0 : index
      %318 = vector.load %arg21[%c2_135, %c5_136, %c0_137] : memref<14x14x32xf32, #tpu.memory_space<vmem>>, vector<8x8x32xf32>
      %319 = vector.extract_strided_slice %179 {offsets = [2, 5, 0], sizes = [1, 1, 32], strides = [1, 1, 1]} : vector<7x7x32xf32> to vector<1x1x32xf32>
      %320 = vector.shape_cast %319 : vector<1x1x32xf32> to vector<32xf32>
      %321 = vector.shape_cast %320 : vector<32xf32> to vector<1x1x32xf32>
      %322 = vector.broadcast %321 : vector<1x1x32xf32> to vector<8x8x32xf32>
      %323 = arith.mulf %318, %322 : vector<8x8x32xf32>
      %324 = arith.addf %317, %323 : vector<8x8x32xf32>
      %c2_138 = arith.constant 2 : index
      %c6_139 = arith.constant 6 : index
      %c0_140 = arith.constant 0 : index
      %325 = vector.load %arg21[%c2_138, %c6_139, %c0_140] : memref<14x14x32xf32, #tpu.memory_space<vmem>>, vector<8x8x32xf32>
      %326 = vector.extract_strided_slice %179 {offsets = [2, 6, 0], sizes = [1, 1, 32], strides = [1, 1, 1]} : vector<7x7x32xf32> to vector<1x1x32xf32>
      %327 = vector.shape_cast %326 : vector<1x1x32xf32> to vector<32xf32>
      %328 = vector.shape_cast %327 : vector<32xf32> to vector<1x1x32xf32>
      %329 = vector.broadcast %328 : vector<1x1x32xf32> to vector<8x8x32xf32>
      %330 = arith.mulf %325, %329 : vector<8x8x32xf32>
      %331 = arith.addf %324, %330 : vector<8x8x32xf32>
      %c3_141 = arith.constant 3 : index
      %c0_142 = arith.constant 0 : index
      %c0_143 = arith.constant 0 : index
      %332 = vector.load %arg21[%c3_141, %c0_142, %c0_143] : memref<14x14x32xf32, #tpu.memory_space<vmem>>, vector<8x8x32xf32>
      %333 = vector.extract_strided_slice %179 {offsets = [3, 0, 0], sizes = [1, 1, 32], strides = [1, 1, 1]} : vector<7x7x32xf32> to vector<1x1x32xf32>
      %334 = vector.shape_cast %333 : vector<1x1x32xf32> to vector<32xf32>
      %335 = vector.shape_cast %334 : vector<32xf32> to vector<1x1x32xf32>
      %336 = vector.broadcast %335 : vector<1x1x32xf32> to vector<8x8x32xf32>
      %337 = arith.mulf %332, %336 : vector<8x8x32xf32>
      %338 = arith.addf %331, %337 : vector<8x8x32xf32>
      %c3_144 = arith.constant 3 : index
      %c1_145 = arith.constant 1 : index
      %c0_146 = arith.constant 0 : index
      %339 = vector.load %arg21[%c3_144, %c1_145, %c0_146] : memref<14x14x32xf32, #tpu.memory_space<vmem>>, vector<8x8x32xf32>
      %340 = vector.extract_strided_slice %179 {offsets = [3, 1, 0], sizes = [1, 1, 32], strides = [1, 1, 1]} : vector<7x7x32xf32> to vector<1x1x32xf32>
      %341 = vector.shape_cast %340 : vector<1x1x32xf32> to vector<32xf32>
      %342 = vector.shape_cast %341 : vector<32xf32> to vector<1x1x32xf32>
      %343 = vector.broadcast %342 : vector<1x1x32xf32> to vector<8x8x32xf32>
      %344 = arith.mulf %339, %343 : vector<8x8x32xf32>
      %345 = arith.addf %338, %344 : vector<8x8x32xf32>
      %c3_147 = arith.constant 3 : index
      %c2_148 = arith.constant 2 : index
      %c0_149 = arith.constant 0 : index
      %346 = vector.load %arg21[%c3_147, %c2_148, %c0_149] : memref<14x14x32xf32, #tpu.memory_space<vmem>>, vector<8x8x32xf32>
      %347 = vector.extract_strided_slice %179 {offsets = [3, 2, 0], sizes = [1, 1, 32], strides = [1, 1, 1]} : vector<7x7x32xf32> to vector<1x1x32xf32>
      %348 = vector.shape_cast %347 : vector<1x1x32xf32> to vector<32xf32>
      %349 = vector.shape_cast %348 : vector<32xf32> to vector<1x1x32xf32>
      %350 = vector.broadcast %349 : vector<1x1x32xf32> to vector<8x8x32xf32>
      %351 = arith.mulf %346, %350 : vector<8x8x32xf32>
      %352 = arith.addf %345, %351 : vector<8x8x32xf32>
      %c3_150 = arith.constant 3 : index
      %c3_151 = arith.constant 3 : index
      %c0_152 = arith.constant 0 : index
      %353 = vector.load %arg21[%c3_150, %c3_151, %c0_152] : memref<14x14x32xf32, #tpu.memory_space<vmem>>, vector<8x8x32xf32>
      %354 = vector.extract_strided_slice %179 {offsets = [3, 3, 0], sizes = [1, 1, 32], strides = [1, 1, 1]} : vector<7x7x32xf32> to vector<1x1x32xf32>
      %355 = vector.shape_cast %354 : vector<1x1x32xf32> to vector<32xf32>
      %356 = vector.shape_cast %355 : vector<32xf32> to vector<1x1x32xf32>
      %357 = vector.broadcast %356 : vector<1x1x32xf32> to vector<8x8x32xf32>
      %358 = arith.mulf %353, %357 : vector<8x8x32xf32>
      %359 = arith.addf %352, %358 : vector<8x8x32xf32>
      %c3_153 = arith.constant 3 : index
      %c4_154 = arith.constant 4 : index
      %c0_155 = arith.constant 0 : index
      %360 = vector.load %arg21[%c3_153, %c4_154, %c0_155] : memref<14x14x32xf32, #tpu.memory_space<vmem>>, vector<8x8x32xf32>
      %361 = vector.extract_strided_slice %179 {offsets = [3, 4, 0], sizes = [1, 1, 32], strides = [1, 1, 1]} : vector<7x7x32xf32> to vector<1x1x32xf32>
      %362 = vector.shape_cast %361 : vector<1x1x32xf32> to vector<32xf32>
      %363 = vector.shape_cast %362 : vector<32xf32> to vector<1x1x32xf32>
      %364 = vector.broadcast %363 : vector<1x1x32xf32> to vector<8x8x32xf32>
      %365 = arith.mulf %360, %364 : vector<8x8x32xf32>
      %366 = arith.addf %359, %365 : vector<8x8x32xf32>
      %c3_156 = arith.constant 3 : index
      %c5_157 = arith.constant 5 : index
      %c0_158 = arith.constant 0 : index
      %367 = vector.load %arg21[%c3_156, %c5_157, %c0_158] : memref<14x14x32xf32, #tpu.memory_space<vmem>>, vector<8x8x32xf32>
      %368 = vector.extract_strided_slice %179 {offsets = [3, 5, 0], sizes = [1, 1, 32], strides = [1, 1, 1]} : vector<7x7x32xf32> to vector<1x1x32xf32>
      %369 = vector.shape_cast %368 : vector<1x1x32xf32> to vector<32xf32>
      %370 = vector.shape_cast %369 : vector<32xf32> to vector<1x1x32xf32>
      %371 = vector.broadcast %370 : vector<1x1x32xf32> to vector<8x8x32xf32>
      %372 = arith.mulf %367, %371 : vector<8x8x32xf32>
      %373 = arith.addf %366, %372 : vector<8x8x32xf32>
      %c3_159 = arith.constant 3 : index
      %c6_160 = arith.constant 6 : index
      %c0_161 = arith.constant 0 : index
      %374 = vector.load %arg21[%c3_159, %c6_160, %c0_161] : memref<14x14x32xf32, #tpu.memory_space<vmem>>, vector<8x8x32xf32>
      %375 = vector.extract_strided_slice %179 {offsets = [3, 6, 0], sizes = [1, 1, 32], strides = [1, 1, 1]} : vector<7x7x32xf32> to vector<1x1x32xf32>
      %376 = vector.shape_cast %375 : vector<1x1x32xf32> to vector<32xf32>
      %377 = vector.shape_cast %376 : vector<32xf32> to vector<1x1x32xf32>
      %378 = vector.broadcast %377 : vector<1x1x32xf32> to vector<8x8x32xf32>
      %379 = arith.mulf %374, %378 : vector<8x8x32xf32>
      %380 = arith.addf %373, %379 : vector<8x8x32xf32>
      %c4_162 = arith.constant 4 : index
      %c0_163 = arith.constant 0 : index
      %c0_164 = arith.constant 0 : index
      %381 = vector.load %arg21[%c4_162, %c0_163, %c0_164] : memref<14x14x32xf32, #tpu.memory_space<vmem>>, vector<8x8x32xf32>
      %382 = vector.extract_strided_slice %179 {offsets = [4, 0, 0], sizes = [1, 1, 32], strides = [1, 1, 1]} : vector<7x7x32xf32> to vector<1x1x32xf32>
      %383 = vector.shape_cast %382 : vector<1x1x32xf32> to vector<32xf32>
      %384 = vector.shape_cast %383 : vector<32xf32> to vector<1x1x32xf32>
      %385 = vector.broadcast %384 : vector<1x1x32xf32> to vector<8x8x32xf32>
      %386 = arith.mulf %381, %385 : vector<8x8x32xf32>
      %387 = arith.addf %380, %386 : vector<8x8x32xf32>
      %c4_165 = arith.constant 4 : index
      %c1_166 = arith.constant 1 : index
      %c0_167 = arith.constant 0 : index
      %388 = vector.load %arg21[%c4_165, %c1_166, %c0_167] : memref<14x14x32xf32, #tpu.memory_space<vmem>>, vector<8x8x32xf32>
      %389 = vector.extract_strided_slice %179 {offsets = [4, 1, 0], sizes = [1, 1, 32], strides = [1, 1, 1]} : vector<7x7x32xf32> to vector<1x1x32xf32>
      %390 = vector.shape_cast %389 : vector<1x1x32xf32> to vector<32xf32>
      %391 = vector.shape_cast %390 : vector<32xf32> to vector<1x1x32xf32>
      %392 = vector.broadcast %391 : vector<1x1x32xf32> to vector<8x8x32xf32>
      %393 = arith.mulf %388, %392 : vector<8x8x32xf32>
      %394 = arith.addf %387, %393 : vector<8x8x32xf32>
      %c4_168 = arith.constant 4 : index
      %c2_169 = arith.constant 2 : index
      %c0_170 = arith.constant 0 : index
      %395 = vector.load %arg21[%c4_168, %c2_169, %c0_170] : memref<14x14x32xf32, #tpu.memory_space<vmem>>, vector<8x8x32xf32>
      %396 = vector.extract_strided_slice %179 {offsets = [4, 2, 0], sizes = [1, 1, 32], strides = [1, 1, 1]} : vector<7x7x32xf32> to vector<1x1x32xf32>
      %397 = vector.shape_cast %396 : vector<1x1x32xf32> to vector<32xf32>
      %398 = vector.shape_cast %397 : vector<32xf32> to vector<1x1x32xf32>
      %399 = vector.broadcast %398 : vector<1x1x32xf32> to vector<8x8x32xf32>
      %400 = arith.mulf %395, %399 : vector<8x8x32xf32>
      %401 = arith.addf %394, %400 : vector<8x8x32xf32>
      %c4_171 = arith.constant 4 : index
      %c3_172 = arith.constant 3 : index
      %c0_173 = arith.constant 0 : index
      %402 = vector.load %arg21[%c4_171, %c3_172, %c0_173] : memref<14x14x32xf32, #tpu.memory_space<vmem>>, vector<8x8x32xf32>
      %403 = vector.extract_strided_slice %179 {offsets = [4, 3, 0], sizes = [1, 1, 32], strides = [1, 1, 1]} : vector<7x7x32xf32> to vector<1x1x32xf32>
      %404 = vector.shape_cast %403 : vector<1x1x32xf32> to vector<32xf32>
      %405 = vector.shape_cast %404 : vector<32xf32> to vector<1x1x32xf32>
      %406 = vector.broadcast %405 : vector<1x1x32xf32> to vector<8x8x32xf32>
      %407 = arith.mulf %402, %406 : vector<8x8x32xf32>
      %408 = arith.addf %401, %407 : vector<8x8x32xf32>
      %c4_174 = arith.constant 4 : index
      %c4_175 = arith.constant 4 : index
      %c0_176 = arith.constant 0 : index
      %409 = vector.load %arg21[%c4_174, %c4_175, %c0_176] : memref<14x14x32xf32, #tpu.memory_space<vmem>>, vector<8x8x32xf32>
      %410 = vector.extract_strided_slice %179 {offsets = [4, 4, 0], sizes = [1, 1, 32], strides = [1, 1, 1]} : vector<7x7x32xf32> to vector<1x1x32xf32>
      %411 = vector.shape_cast %410 : vector<1x1x32xf32> to vector<32xf32>
      %412 = vector.shape_cast %411 : vector<32xf32> to vector<1x1x32xf32>
      %413 = vector.broadcast %412 : vector<1x1x32xf32> to vector<8x8x32xf32>
      %414 = arith.mulf %409, %413 : vector<8x8x32xf32>
      %415 = arith.addf %408, %414 : vector<8x8x32xf32>
      %c4_177 = arith.constant 4 : index
      %c5_178 = arith.constant 5 : index
      %c0_179 = arith.constant 0 : index
      %416 = vector.load %arg21[%c4_177, %c5_178, %c0_179] : memref<14x14x32xf32, #tpu.memory_space<vmem>>, vector<8x8x32xf32>
      %417 = vector.extract_strided_slice %179 {offsets = [4, 5, 0], sizes = [1, 1, 32], strides = [1, 1, 1]} : vector<7x7x32xf32> to vector<1x1x32xf32>
      %418 = vector.shape_cast %417 : vector<1x1x32xf32> to vector<32xf32>
      %419 = vector.shape_cast %418 : vector<32xf32> to vector<1x1x32xf32>
      %420 = vector.broadcast %419 : vector<1x1x32xf32> to vector<8x8x32xf32>
      %421 = arith.mulf %416, %420 : vector<8x8x32xf32>
      %422 = arith.addf %415, %421 : vector<8x8x32xf32>
      %c4_180 = arith.constant 4 : index
      %c6_181 = arith.constant 6 : index
      %c0_182 = arith.constant 0 : index
      %423 = vector.load %arg21[%c4_180, %c6_181, %c0_182] : memref<14x14x32xf32, #tpu.memory_space<vmem>>, vector<8x8x32xf32>
      %424 = vector.extract_strided_slice %179 {offsets = [4, 6, 0], sizes = [1, 1, 32], strides = [1, 1, 1]} : vector<7x7x32xf32> to vector<1x1x32xf32>
      %425 = vector.shape_cast %424 : vector<1x1x32xf32> to vector<32xf32>
      %426 = vector.shape_cast %425 : vector<32xf32> to vector<1x1x32xf32>
      %427 = vector.broadcast %426 : vector<1x1x32xf32> to vector<8x8x32xf32>
      %428 = arith.mulf %423, %427 : vector<8x8x32xf32>
      %429 = arith.addf %422, %428 : vector<8x8x32xf32>
      %c5_183 = arith.constant 5 : index
      %c0_184 = arith.constant 0 : index
      %c0_185 = arith.constant 0 : index
      %430 = vector.load %arg21[%c5_183, %c0_184, %c0_185] : memref<14x14x32xf32, #tpu.memory_space<vmem>>, vector<8x8x32xf32>
      %431 = vector.extract_strided_slice %179 {offsets = [5, 0, 0], sizes = [1, 1, 32], strides = [1, 1, 1]} : vector<7x7x32xf32> to vector<1x1x32xf32>
      %432 = vector.shape_cast %431 : vector<1x1x32xf32> to vector<32xf32>
      %433 = vector.shape_cast %432 : vector<32xf32> to vector<1x1x32xf32>
      %434 = vector.broadcast %433 : vector<1x1x32xf32> to vector<8x8x32xf32>
      %435 = arith.mulf %430, %434 : vector<8x8x32xf32>
      %436 = arith.addf %429, %435 : vector<8x8x32xf32>
      %c5_186 = arith.constant 5 : index
      %c1_187 = arith.constant 1 : index
      %c0_188 = arith.constant 0 : index
      %437 = vector.load %arg21[%c5_186, %c1_187, %c0_188] : memref<14x14x32xf32, #tpu.memory_space<vmem>>, vector<8x8x32xf32>
      %438 = vector.extract_strided_slice %179 {offsets = [5, 1, 0], sizes = [1, 1, 32], strides = [1, 1, 1]} : vector<7x7x32xf32> to vector<1x1x32xf32>
      %439 = vector.shape_cast %438 : vector<1x1x32xf32> to vector<32xf32>
      %440 = vector.shape_cast %439 : vector<32xf32> to vector<1x1x32xf32>
      %441 = vector.broadcast %440 : vector<1x1x32xf32> to vector<8x8x32xf32>
      %442 = arith.mulf %437, %441 : vector<8x8x32xf32>
      %443 = arith.addf %436, %442 : vector<8x8x32xf32>
      %c5_189 = arith.constant 5 : index
      %c2_190 = arith.constant 2 : index
      %c0_191 = arith.constant 0 : index
      %444 = vector.load %arg21[%c5_189, %c2_190, %c0_191] : memref<14x14x32xf32, #tpu.memory_space<vmem>>, vector<8x8x32xf32>
      %445 = vector.extract_strided_slice %179 {offsets = [5, 2, 0], sizes = [1, 1, 32], strides = [1, 1, 1]} : vector<7x7x32xf32> to vector<1x1x32xf32>
      %446 = vector.shape_cast %445 : vector<1x1x32xf32> to vector<32xf32>
      %447 = vector.shape_cast %446 : vector<32xf32> to vector<1x1x32xf32>
      %448 = vector.broadcast %447 : vector<1x1x32xf32> to vector<8x8x32xf32>
      %449 = arith.mulf %444, %448 : vector<8x8x32xf32>
      %450 = arith.addf %443, %449 : vector<8x8x32xf32>
      %c5_192 = arith.constant 5 : index
      %c3_193 = arith.constant 3 : index
      %c0_194 = arith.constant 0 : index
      %451 = vector.load %arg21[%c5_192, %c3_193, %c0_194] : memref<14x14x32xf32, #tpu.memory_space<vmem>>, vector<8x8x32xf32>
      %452 = vector.extract_strided_slice %179 {offsets = [5, 3, 0], sizes = [1, 1, 32], strides = [1, 1, 1]} : vector<7x7x32xf32> to vector<1x1x32xf32>
      %453 = vector.shape_cast %452 : vector<1x1x32xf32> to vector<32xf32>
      %454 = vector.shape_cast %453 : vector<32xf32> to vector<1x1x32xf32>
      %455 = vector.broadcast %454 : vector<1x1x32xf32> to vector<8x8x32xf32>
      %456 = arith.mulf %451, %455 : vector<8x8x32xf32>
      %457 = arith.addf %450, %456 : vector<8x8x32xf32>
      %c5_195 = arith.constant 5 : index
      %c4_196 = arith.constant 4 : index
      %c0_197 = arith.constant 0 : index
      %458 = vector.load %arg21[%c5_195, %c4_196, %c0_197] : memref<14x14x32xf32, #tpu.memory_space<vmem>>, vector<8x8x32xf32>
      %459 = vector.extract_strided_slice %179 {offsets = [5, 4, 0], sizes = [1, 1, 32], strides = [1, 1, 1]} : vector<7x7x32xf32> to vector<1x1x32xf32>
      %460 = vector.shape_cast %459 : vector<1x1x32xf32> to vector<32xf32>
      %461 = vector.shape_cast %460 : vector<32xf32> to vector<1x1x32xf32>
      %462 = vector.broadcast %461 : vector<1x1x32xf32> to vector<8x8x32xf32>
      %463 = arith.mulf %458, %462 : vector<8x8x32xf32>
      %464 = arith.addf %457, %463 : vector<8x8x32xf32>
      %c5_198 = arith.constant 5 : index
      %c5_199 = arith.constant 5 : index
      %c0_200 = arith.constant 0 : index
      %465 = vector.load %arg21[%c5_198, %c5_199, %c0_200] : memref<14x14x32xf32, #tpu.memory_space<vmem>>, vector<8x8x32xf32>
      %466 = vector.extract_strided_slice %179 {offsets = [5, 5, 0], sizes = [1, 1, 32], strides = [1, 1, 1]} : vector<7x7x32xf32> to vector<1x1x32xf32>
      %467 = vector.shape_cast %466 : vector<1x1x32xf32> to vector<32xf32>
      %468 = vector.shape_cast %467 : vector<32xf32> to vector<1x1x32xf32>
      %469 = vector.broadcast %468 : vector<1x1x32xf32> to vector<8x8x32xf32>
      %470 = arith.mulf %465, %469 : vector<8x8x32xf32>
      %471 = arith.addf %464, %470 : vector<8x8x32xf32>
      %c5_201 = arith.constant 5 : index
      %c6_202 = arith.constant 6 : index
      %c0_203 = arith.constant 0 : index
      %472 = vector.load %arg21[%c5_201, %c6_202, %c0_203] : memref<14x14x32xf32, #tpu.memory_space<vmem>>, vector<8x8x32xf32>
      %473 = vector.extract_strided_slice %179 {offsets = [5, 6, 0], sizes = [1, 1, 32], strides = [1, 1, 1]} : vector<7x7x32xf32> to vector<1x1x32xf32>
      %474 = vector.shape_cast %473 : vector<1x1x32xf32> to vector<32xf32>
      %475 = vector.shape_cast %474 : vector<32xf32> to vector<1x1x32xf32>
      %476 = vector.broadcast %475 : vector<1x1x32xf32> to vector<8x8x32xf32>
      %477 = arith.mulf %472, %476 : vector<8x8x32xf32>
      %478 = arith.addf %471, %477 : vector<8x8x32xf32>
      %c6_204 = arith.constant 6 : index
      %c0_205 = arith.constant 0 : index
      %c0_206 = arith.constant 0 : index
      %479 = vector.load %arg21[%c6_204, %c0_205, %c0_206] : memref<14x14x32xf32, #tpu.memory_space<vmem>>, vector<8x8x32xf32>
      %480 = vector.extract_strided_slice %179 {offsets = [6, 0, 0], sizes = [1, 1, 32], strides = [1, 1, 1]} : vector<7x7x32xf32> to vector<1x1x32xf32>
      %481 = vector.shape_cast %480 : vector<1x1x32xf32> to vector<32xf32>
      %482 = vector.shape_cast %481 : vector<32xf32> to vector<1x1x32xf32>
      %483 = vector.broadcast %482 : vector<1x1x32xf32> to vector<8x8x32xf32>
      %484 = arith.mulf %479, %483 : vector<8x8x32xf32>
      %485 = arith.addf %478, %484 : vector<8x8x32xf32>
      %c6_207 = arith.constant 6 : index
      %c1_208 = arith.constant 1 : index
      %c0_209 = arith.constant 0 : index
      %486 = vector.load %arg21[%c6_207, %c1_208, %c0_209] : memref<14x14x32xf32, #tpu.memory_space<vmem>>, vector<8x8x32xf32>
      %487 = vector.extract_strided_slice %179 {offsets = [6, 1, 0], sizes = [1, 1, 32], strides = [1, 1, 1]} : vector<7x7x32xf32> to vector<1x1x32xf32>
      %488 = vector.shape_cast %487 : vector<1x1x32xf32> to vector<32xf32>
      %489 = vector.shape_cast %488 : vector<32xf32> to vector<1x1x32xf32>
      %490 = vector.broadcast %489 : vector<1x1x32xf32> to vector<8x8x32xf32>
      %491 = arith.mulf %486, %490 : vector<8x8x32xf32>
      %492 = arith.addf %485, %491 : vector<8x8x32xf32>
      %c6_210 = arith.constant 6 : index
      %c2_211 = arith.constant 2 : index
      %c0_212 = arith.constant 0 : index
      %493 = vector.load %arg21[%c6_210, %c2_211, %c0_212] : memref<14x14x32xf32, #tpu.memory_space<vmem>>, vector<8x8x32xf32>
      %494 = vector.extract_strided_slice %179 {offsets = [6, 2, 0], sizes = [1, 1, 32], strides = [1, 1, 1]} : vector<7x7x32xf32> to vector<1x1x32xf32>
      %495 = vector.shape_cast %494 : vector<1x1x32xf32> to vector<32xf32>
      %496 = vector.shape_cast %495 : vector<32xf32> to vector<1x1x32xf32>
      %497 = vector.broadcast %496 : vector<1x1x32xf32> to vector<8x8x32xf32>
      %498 = arith.mulf %493, %497 : vector<8x8x32xf32>
      %499 = arith.addf %492, %498 : vector<8x8x32xf32>
      %c6_213 = arith.constant 6 : index
      %c3_214 = arith.constant 3 : index
      %c0_215 = arith.constant 0 : index
      %500 = vector.load %arg21[%c6_213, %c3_214, %c0_215] : memref<14x14x32xf32, #tpu.memory_space<vmem>>, vector<8x8x32xf32>
      %501 = vector.extract_strided_slice %179 {offsets = [6, 3, 0], sizes = [1, 1, 32], strides = [1, 1, 1]} : vector<7x7x32xf32> to vector<1x1x32xf32>
      %502 = vector.shape_cast %501 : vector<1x1x32xf32> to vector<32xf32>
      %503 = vector.shape_cast %502 : vector<32xf32> to vector<1x1x32xf32>
      %504 = vector.broadcast %503 : vector<1x1x32xf32> to vector<8x8x32xf32>
      %505 = arith.mulf %500, %504 : vector<8x8x32xf32>
      %506 = arith.addf %499, %505 : vector<8x8x32xf32>
      %c6_216 = arith.constant 6 : index
      %c4_217 = arith.constant 4 : index
      %c0_218 = arith.constant 0 : index
      %507 = vector.load %arg21[%c6_216, %c4_217, %c0_218] : memref<14x14x32xf32, #tpu.memory_space<vmem>>, vector<8x8x32xf32>
      %508 = vector.extract_strided_slice %179 {offsets = [6, 4, 0], sizes = [1, 1, 32], strides = [1, 1, 1]} : vector<7x7x32xf32> to vector<1x1x32xf32>
      %509 = vector.shape_cast %508 : vector<1x1x32xf32> to vector<32xf32>
      %510 = vector.shape_cast %509 : vector<32xf32> to vector<1x1x32xf32>
      %511 = vector.broadcast %510 : vector<1x1x32xf32> to vector<8x8x32xf32>
      %512 = arith.mulf %507, %511 : vector<8x8x32xf32>
      %513 = arith.addf %506, %512 : vector<8x8x32xf32>
      %c6_219 = arith.constant 6 : index
      %c5_220 = arith.constant 5 : index
      %c0_221 = arith.constant 0 : index
      %514 = vector.load %arg21[%c6_219, %c5_220, %c0_221] : memref<14x14x32xf32, #tpu.memory_space<vmem>>, vector<8x8x32xf32>
      %515 = vector.extract_strided_slice %179 {offsets = [6, 5, 0], sizes = [1, 1, 32], strides = [1, 1, 1]} : vector<7x7x32xf32> to vector<1x1x32xf32>
      %516 = vector.shape_cast %515 : vector<1x1x32xf32> to vector<32xf32>
      %517 = vector.shape_cast %516 : vector<32xf32> to vector<1x1x32xf32>
      %518 = vector.broadcast %517 : vector<1x1x32xf32> to vector<8x8x32xf32>
      %519 = arith.mulf %514, %518 : vector<8x8x32xf32>
      %520 = arith.addf %513, %519 : vector<8x8x32xf32>
      %c6_222 = arith.constant 6 : index
      %c6_223 = arith.constant 6 : index
      %c0_224 = arith.constant 0 : index
      %521 = vector.load %arg21[%c6_222, %c6_223, %c0_224] : memref<14x14x32xf32, #tpu.memory_space<vmem>>, vector<8x8x32xf32>
      %522 = vector.extract_strided_slice %179 {offsets = [6, 6, 0], sizes = [1, 1, 32], strides = [1, 1, 1]} : vector<7x7x32xf32> to vector<1x1x32xf32>
      %523 = vector.shape_cast %522 : vector<1x1x32xf32> to vector<32xf32>
      %524 = vector.shape_cast %523 : vector<32xf32> to vector<1x1x32xf32>
      %525 = vector.broadcast %524 : vector<1x1x32xf32> to vector<8x8x32xf32>
      %526 = arith.mulf %521, %525 : vector<8x8x32xf32>
      %527 = arith.addf %520, %526 : vector<8x8x32xf32>
      %528 = vector.extract_strided_slice %527 {offsets = [0, 0, 0], sizes = [1, 8, 32], strides = [1, 1, 1]} : vector<8x8x32xf32> to vector<1x8x32xf32>
      %529 = vector.shape_cast %528 : vector<1x8x32xf32> to vector<8x32xf32>
      %c0_225 = arith.constant 0 : index
      %c0_226 = arith.constant 0 : index
      %530 = vector.load %arg20[%c0_225, %c0_226] : memref<64x32xf32, #tpu.memory_space<vmem>>, vector<8x32xf32>
      tpu.vector_store %arg20[%c0_225, %c0_226], %529 {strides = array<i32>} : memref<64x32xf32, #tpu.memory_space<vmem>>, vector<8x32xf32>,
      %531 = vector.extract_strided_slice %527 {offsets = [1, 0, 0], sizes = [1, 8, 32], strides = [1, 1, 1]} : vector<8x8x32xf32> to vector<1x8x32xf32>
      %532 = vector.shape_cast %531 : vector<1x8x32xf32> to vector<8x32xf32>
      %c8 = arith.constant 8 : index
      %c0_227 = arith.constant 0 : index
      %533 = vector.load %arg20[%c8, %c0_227] : memref<64x32xf32, #tpu.memory_space<vmem>>, vector<8x32xf32>
      tpu.vector_store %arg20[%c8, %c0_227], %532 {strides = array<i32>} : memref<64x32xf32, #tpu.memory_space<vmem>>, vector<8x32xf32>,
      %534 = vector.extract_strided_slice %527 {offsets = [2, 0, 0], sizes = [1, 8, 32], strides = [1, 1, 1]} : vector<8x8x32xf32> to vector<1x8x32xf32>
      %535 = vector.shape_cast %534 : vector<1x8x32xf32> to vector<8x32xf32>
      %c16 = arith.constant 16 : index
      %c0_228 = arith.constant 0 : index
      %536 = vector.load %arg20[%c16, %c0_228] : memref<64x32xf32, #tpu.memory_space<vmem>>, vector<8x32xf32>
      tpu.vector_store %arg20[%c16, %c0_228], %535 {strides = array<i32>} : memref<64x32xf32, #tpu.memory_space<vmem>>, vector<8x32xf32>,
      %537 = vector.extract_strided_slice %527 {offsets = [3, 0, 0], sizes = [1, 8, 32], strides = [1, 1, 1]} : vector<8x8x32xf32> to vector<1x8x32xf32>
      %538 = vector.shape_cast %537 : vector<1x8x32xf32> to vector<8x32xf32>
      %c24 = arith.constant 24 : index
      %c0_229 = arith.constant 0 : index
      %539 = vector.load %arg20[%c24, %c0_229] : memref<64x32xf32, #tpu.memory_space<vmem>>, vector<8x32xf32>
      tpu.vector_store %arg20[%c24, %c0_229], %538 {strides = array<i32>} : memref<64x32xf32, #tpu.memory_space<vmem>>, vector<8x32xf32>,
      %540 = vector.extract_strided_slice %527 {offsets = [4, 0, 0], sizes = [1, 8, 32], strides = [1, 1, 1]} : vector<8x8x32xf32> to vector<1x8x32xf32>
      %541 = vector.shape_cast %540 : vector<1x8x32xf32> to vector<8x32xf32>
      %c32 = arith.constant 32 : index
      %c0_230 = arith.constant 0 : index
      %542 = vector.load %arg20[%c32, %c0_230] : memref<64x32xf32, #tpu.memory_space<vmem>>, vector<8x32xf32>
      tpu.vector_store %arg20[%c32, %c0_230], %541 {strides = array<i32>} : memref<64x32xf32, #tpu.memory_space<vmem>>, vector<8x32xf32>,
      %543 = vector.extract_strided_slice %527 {offsets = [5, 0, 0], sizes = [1, 8, 32], strides = [1, 1, 1]} : vector<8x8x32xf32> to vector<1x8x32xf32>
      %544 = vector.shape_cast %543 : vector<1x8x32xf32> to vector<8x32xf32>
      %c40 = arith.constant 40 : index
      %c0_231 = arith.constant 0 : index
      %545 = vector.load %arg20[%c40, %c0_231] : memref<64x32xf32, #tpu.memory_space<vmem>>, vector<8x32xf32>
      tpu.vector_store %arg20[%c40, %c0_231], %544 {strides = array<i32>} : memref<64x32xf32, #tpu.memory_space<vmem>>, vector<8x32xf32>,
      %546 = vector.extract_strided_slice %527 {offsets = [6, 0, 0], sizes = [1, 8, 32], strides = [1, 1, 1]} : vector<8x8x32xf32> to vector<1x8x32xf32>
      %547 = vector.shape_cast %546 : vector<1x8x32xf32> to vector<8x32xf32>
      %c48 = arith.constant 48 : index
      %c0_232 = arith.constant 0 : index
      %548 = vector.load %arg20[%c48, %c0_232] : memref<64x32xf32, #tpu.memory_space<vmem>>, vector<8x32xf32>
      tpu.vector_store %arg20[%c48, %c0_232], %547 {strides = array<i32>} : memref<64x32xf32, #tpu.memory_space<vmem>>, vector<8x32xf32>,
      %549 = vector.extract_strided_slice %527 {offsets = [7, 0, 0], sizes = [1, 8, 32], strides = [1, 1, 1]} : vector<8x8x32xf32> to vector<1x8x32xf32>
      %550 = vector.shape_cast %549 : vector<1x8x32xf32> to vector<8x32xf32>
      %c56 = arith.constant 56 : index
      %c0_233 = arith.constant 0 : index
      %551 = vector.load %arg20[%c56, %c0_233] : memref<64x32xf32, #tpu.memory_space<vmem>>, vector<8x32xf32>
      tpu.vector_store %arg20[%c56, %c0_233], %550 {strides = array<i32>} : memref<64x32xf32, #tpu.memory_space<vmem>>, vector<8x32xf32>,
    } else {
    }
    %c0 = arith.constant 0 : index
    %c0_1 = arith.constant 0 : index
    %3 = vector.load %arg20[%c0, %c0_1] : memref<64x32xf32, #tpu.memory_space<vmem>>, vector<64x32xf32>
    %4 = arith.truncf %3 : vector<64x32xf32> to vector<64x32xbf16>
    %5 = arith.index_cast %arg1 : i32 to index
    %c0_2 = arith.constant 0 : index
    %c0_3 = arith.constant 0 : index
    %6 = vector.load %arg5[%5, %c0_2, %c0_3] : memref<2x32x96xbf16, #tpu.memory_space<vmem>>, vector<1x32x96xbf16>
    %7 = vector.shape_cast %6 : vector<1x32x96xbf16> to vector<32x96xbf16>
    %cst = arith.constant dense<0.000000e+00> : vector<64x96xf32>
    %8 = tpu.matmul %4, %7, %cst {dimension_numbers = #tpu.dot_dimension_numbers<[1], [0], [0], [1], [0, 0, 1, 1], [], []>} : vector<64x32xbf16>, vector<32x96xbf16>, vector<64x96xf32> -> vector<64x96xf32>
    %9 = arith.index_cast %arg1 : i32 to index
    %c0_4 = arith.constant 0 : index
    %c0_5 = arith.constant 0 : index
    %10 = vector.load %arg6[%9, %c0_4, %c0_5] : memref<2x1x96xf32, #tpu.memory_space<vmem>>, vector<1x1x96xf32>
    %11 = vector.shape_cast %10 : vector<1x1x96xf32> to vector<1x96xf32>
    %12 = vector.broadcast %11 : vector<1x96xf32> to vector<64x96xf32>
    %13 = arith.addf %8, %12 : vector<64x96xf32>
    %14 = arith.truncf %13 : vector<64x96xf32> to vector<64x96xbf16>
    %15 = vector.extract_strided_slice %14 {offsets = [0, 0], sizes = [64, 8], strides = [1, 1]} : vector<64x96xbf16> to vector<64x8xbf16>
    %16 = vector.extract_strided_slice %14 {offsets = [0, 32], sizes = [64, 8], strides = [1, 1]} : vector<64x96xbf16> to vector<64x8xbf16>
    %17 = vector.extract_strided_slice %14 {offsets = [0, 64], sizes = [64, 8], strides = [1, 1]} : vector<64x96xbf16> to vector<64x8xbf16>
    "tpu.trace_start"() <{level = 10 : i32, message = "qe,ke->qk"}> : () -> ()
    %cst_6 = arith.constant dense<0.000000e+00> : vector<64x64xf32>
    %18 = tpu.matmul %15, %16, %cst_6 {dimension_numbers = #tpu.dot_dimension_numbers<[1], [1], [0], [0], [0, 0, 1, 0], [], []>} : vector<64x8xbf16>, vector<64x8xbf16>, vector<64x64xf32> -> vector<64x64xf32>
    "tpu.trace_stop"() : () -> ()
    %cst_7 = arith.constant dense<0xFF800000> : vector<64xf32>
    %19 = vector.multi_reduction <maximumf>, %18, %cst_7 [1] : vector<64x64xf32> to vector<64xf32>
    %20 = vector.shape_cast %19 : vector<64xf32> to vector<64x1xf32>
    %21 = vector.broadcast %20 : vector<64x1xf32> to vector<64x64xf32>
    %22 = arith.subf %18, %21 : vector<64x64xf32>
    %23 = math.exp %22 : vector<64x64xf32>
    %cst_8 = arith.constant dense<0.000000e+00> : vector<64xf32>
    %24 = vector.multi_reduction <add>, %23, %cst_8 [1] : vector<64x64xf32> to vector<64xf32>
    %25 = vector.shape_cast %24 : vector<64xf32> to vector<64x1xf32>
    %26 = vector.broadcast %25 : vector<64x1xf32> to vector<64x64xf32>
    %27 = arith.divf %23, %26 : vector<64x64xf32>
    %28 = arith.truncf %27 : vector<64x64xf32> to vector<64x64xbf16>
    %cst_9 = arith.constant dense<0.000000e+00> : vector<64x8xf32>
    %29 = tpu.matmul %28, %17, %cst_9 {dimension_numbers = #tpu.dot_dimension_numbers<[1], [0], [0], [1], [0, 0, 1, 1], [], []>} : vector<64x64xbf16>, vector<64x8xbf16>, vector<64x8xf32> -> vector<64x8xf32>
    %30 = vector.extract_strided_slice %14 {offsets = [0, 8], sizes = [64, 8], strides = [1, 1]} : vector<64x96xbf16> to vector<64x8xbf16>
    %31 = vector.extract_strided_slice %14 {offsets = [0, 40], sizes = [64, 8], strides = [1, 1]} : vector<64x96xbf16> to vector<64x8xbf16>
    %32 = vector.extract_strided_slice %14 {offsets = [0, 72], sizes = [64, 8], strides = [1, 1]} : vector<64x96xbf16> to vector<64x8xbf16>
    "tpu.trace_start"() <{level = 10 : i32, message = "qe,ke->qk"}> : () -> ()
    %cst_10 = arith.constant dense<0.000000e+00> : vector<64x64xf32>
    %33 = tpu.matmul %30, %31, %cst_10 {dimension_numbers = #tpu.dot_dimension_numbers<[1], [1], [0], [0], [0, 0, 1, 0], [], []>} : vector<64x8xbf16>, vector<64x8xbf16>, vector<64x64xf32> -> vector<64x64xf32>
    "tpu.trace_stop"() : () -> ()
    %cst_11 = arith.constant dense<0xFF800000> : vector<64xf32>
    %34 = vector.multi_reduction <maximumf>, %33, %cst_11 [1] : vector<64x64xf32> to vector<64xf32>
    %35 = vector.shape_cast %34 : vector<64xf32> to vector<64x1xf32>
    %36 = vector.broadcast %35 : vector<64x1xf32> to vector<64x64xf32>
    %37 = arith.subf %33, %36 : vector<64x64xf32>
    %38 = math.exp %37 : vector<64x64xf32>
    %cst_12 = arith.constant dense<0.000000e+00> : vector<64xf32>
    %39 = vector.multi_reduction <add>, %38, %cst_12 [1] : vector<64x64xf32> to vector<64xf32>
    %40 = vector.shape_cast %39 : vector<64xf32> to vector<64x1xf32>
    %41 = vector.broadcast %40 : vector<64x1xf32> to vector<64x64xf32>
    %42 = arith.divf %38, %41 : vector<64x64xf32>
    %43 = arith.truncf %42 : vector<64x64xf32> to vector<64x64xbf16>
    %cst_13 = arith.constant dense<0.000000e+00> : vector<64x8xf32>
    %44 = tpu.matmul %43, %32, %cst_13 {dimension_numbers = #tpu.dot_dimension_numbers<[1], [0], [0], [1], [0, 0, 1, 1], [], []>} : vector<64x64xbf16>, vector<64x8xbf16>, vector<64x8xf32> -> vector<64x8xf32>
    %45 = vector.extract_strided_slice %14 {offsets = [0, 16], sizes = [64, 8], strides = [1, 1]} : vector<64x96xbf16> to vector<64x8xbf16>
    %46 = vector.extract_strided_slice %14 {offsets = [0, 48], sizes = [64, 8], strides = [1, 1]} : vector<64x96xbf16> to vector<64x8xbf16>
    %47 = vector.extract_strided_slice %14 {offsets = [0, 80], sizes = [64, 8], strides = [1, 1]} : vector<64x96xbf16> to vector<64x8xbf16>
    "tpu.trace_start"() <{level = 10 : i32, message = "qe,ke->qk"}> : () -> ()
    %cst_14 = arith.constant dense<0.000000e+00> : vector<64x64xf32>
    %48 = tpu.matmul %45, %46, %cst_14 {dimension_numbers = #tpu.dot_dimension_numbers<[1], [1], [0], [0], [0, 0, 1, 0], [], []>} : vector<64x8xbf16>, vector<64x8xbf16>, vector<64x64xf32> -> vector<64x64xf32>
    "tpu.trace_stop"() : () -> ()
    %cst_15 = arith.constant dense<0xFF800000> : vector<64xf32>
    %49 = vector.multi_reduction <maximumf>, %48, %cst_15 [1] : vector<64x64xf32> to vector<64xf32>
    %50 = vector.shape_cast %49 : vector<64xf32> to vector<64x1xf32>
    %51 = vector.broadcast %50 : vector<64x1xf32> to vector<64x64xf32>
    %52 = arith.subf %48, %51 : vector<64x64xf32>
    %53 = math.exp %52 : vector<64x64xf32>
    %cst_16 = arith.constant dense<0.000000e+00> : vector<64xf32>
    %54 = vector.multi_reduction <add>, %53, %cst_16 [1] : vector<64x64xf32> to vector<64xf32>
    %55 = vector.shape_cast %54 : vector<64xf32> to vector<64x1xf32>
    %56 = vector.broadcast %55 : vector<64x1xf32> to vector<64x64xf32>
    %57 = arith.divf %53, %56 : vector<64x64xf32>
    %58 = arith.truncf %57 : vector<64x64xf32> to vector<64x64xbf16>
    %cst_17 = arith.constant dense<0.000000e+00> : vector<64x8xf32>
    %59 = tpu.matmul %58, %47, %cst_17 {dimension_numbers = #tpu.dot_dimension_numbers<[1], [0], [0], [1], [0, 0, 1, 1], [], []>} : vector<64x64xbf16>, vector<64x8xbf16>, vector<64x8xf32> -> vector<64x8xf32>
    %60 = vector.extract_strided_slice %14 {offsets = [0, 24], sizes = [64, 8], strides = [1, 1]} : vector<64x96xbf16> to vector<64x8xbf16>
    %61 = vector.extract_strided_slice %14 {offsets = [0, 56], sizes = [64, 8], strides = [1, 1]} : vector<64x96xbf16> to vector<64x8xbf16>
    %62 = vector.extract_strided_slice %14 {offsets = [0, 88], sizes = [64, 8], strides = [1, 1]} : vector<64x96xbf16> to vector<64x8xbf16>
    "tpu.trace_start"() <{level = 10 : i32, message = "qe,ke->qk"}> : () -> ()
    %cst_18 = arith.constant dense<0.000000e+00> : vector<64x64xf32>
    %63 = tpu.matmul %60, %61, %cst_18 {dimension_numbers = #tpu.dot_dimension_numbers<[1], [1], [0], [0], [0, 0, 1, 0], [], []>} : vector<64x8xbf16>, vector<64x8xbf16>, vector<64x64xf32> -> vector<64x64xf32>
    "tpu.trace_stop"() : () -> ()
    %cst_19 = arith.constant dense<0xFF800000> : vector<64xf32>
    %64 = vector.multi_reduction <maximumf>, %63, %cst_19 [1] : vector<64x64xf32> to vector<64xf32>
    %65 = vector.shape_cast %64 : vector<64xf32> to vector<64x1xf32>
    %66 = vector.broadcast %65 : vector<64x1xf32> to vector<64x64xf32>
    %67 = arith.subf %63, %66 : vector<64x64xf32>
    %68 = math.exp %67 : vector<64x64xf32>
    %cst_20 = arith.constant dense<0.000000e+00> : vector<64xf32>
    %69 = vector.multi_reduction <add>, %68, %cst_20 [1] : vector<64x64xf32> to vector<64xf32>
    %70 = vector.shape_cast %69 : vector<64xf32> to vector<64x1xf32>
    %71 = vector.broadcast %70 : vector<64x1xf32> to vector<64x64xf32>
    %72 = arith.divf %68, %71 : vector<64x64xf32>
    %73 = arith.truncf %72 : vector<64x64xf32> to vector<64x64xbf16>
    %cst_21 = arith.constant dense<0.000000e+00> : vector<64x8xf32>
    %74 = tpu.matmul %73, %62, %cst_21 {dimension_numbers = #tpu.dot_dimension_numbers<[1], [0], [0], [1], [0, 0, 1, 1], [], []>} : vector<64x64xbf16>, vector<64x8xbf16>, vector<64x8xf32> -> vector<64x8xf32>
    %75 = tpu.concatenate %29, %44, %59, %74 in 1 : vector<64x8xf32>, vector<64x8xf32>, vector<64x8xf32>, vector<64x8xf32> -> vector<64x32xf32>
    %76 = arith.truncf %75 : vector<64x32xf32> to vector<64x32xbf16>
    %77 = arith.index_cast %arg1 : i32 to index
    %c0_22 = arith.constant 0 : index
    %c0_23 = arith.constant 0 : index
    %78 = vector.load %arg7[%77, %c0_22, %c0_23] : memref<2x32x32xbf16, #tpu.memory_space<vmem>>, vector<1x32x32xbf16>
    %79 = vector.shape_cast %78 : vector<1x32x32xbf16> to vector<32x32xbf16>
    %cst_24 = arith.constant dense<0.000000e+00> : vector<64x32xf32>
    %80 = tpu.matmul %76, %79, %cst_24 {dimension_numbers = #tpu.dot_dimension_numbers<[1], [0], [0], [1], [0, 0, 1, 1], [], []>} : vector<64x32xbf16>, vector<32x32xbf16>, vector<64x32xf32> -> vector<64x32xf32>
    %81 = arith.index_cast %arg1 : i32 to index
    %c0_25 = arith.constant 0 : index
    %c0_26 = arith.constant 0 : index
    %82 = vector.load %arg8[%81, %c0_25, %c0_26] : memref<2x1x32xf32, #tpu.memory_space<vmem>>, vector<1x1x32xf32>
    %83 = vector.shape_cast %82 : vector<1x1x32xf32> to vector<1x32xf32>
    %84 = vector.broadcast %83 : vector<1x32xf32> to vector<64x32xf32>
    %85 = arith.addf %80, %84 : vector<64x32xf32>
    %86 = arith.addf %3, %85 : vector<64x32xf32>
    %87 = arith.index_cast %arg1 : i32 to index
    %c0_27 = arith.constant 0 : index
    %c0_28 = arith.constant 0 : index
    %88 = vector.load %arg9[%87, %c0_27, %c0_28] : memref<2x1x32xf32, #tpu.memory_space<vmem>>, vector<1x1x32xf32>
    %89 = vector.shape_cast %88 : vector<1x1x32xf32> to vector<1x32xf32>
    %90 = arith.index_cast %arg1 : i32 to index
    %c0_29 = arith.constant 0 : index
    %c0_30 = arith.constant 0 : index
    %91 = vector.load %arg10[%90, %c0_29, %c0_30] : memref<2x1x32xf32, #tpu.memory_space<vmem>>, vector<1x1x32xf32>
    %92 = vector.shape_cast %91 : vector<1x1x32xf32> to vector<1x32xf32>
    %cst_31 = arith.constant dense<0.000000e+00> : vector<64xf32>
    %93 = vector.multi_reduction <add>, %86, %cst_31 [1] : vector<64x32xf32> to vector<64xf32>
    %94 = vector.shape_cast %93 : vector<64xf32> to vector<64x1xf32>
    %cst_32 = arith.constant 3.200000e+01 : f32
    %95 = vector.broadcast %cst_32 : f32 to vector<64x1xf32>
    %96 = arith.divf %94, %95 : vector<64x1xf32>
    %97 = vector.broadcast %96 : vector<64x1xf32> to vector<64x32xf32>
    %98 = arith.subf %86, %97 : vector<64x32xf32>
    %99 = arith.mulf %98, %98 : vector<64x32xf32>
    %cst_33 = arith.constant dense<0.000000e+00> : vector<64xf32>
    %100 = vector.multi_reduction <add>, %99, %cst_33 [1] : vector<64x32xf32> to vector<64xf32>
    %101 = vector.shape_cast %100 : vector<64xf32> to vector<64x1xf32>
    %cst_34 = arith.constant 3.200000e+01 : f32
    %102 = vector.broadcast %cst_34 : f32 to vector<64x1xf32>
    %103 = arith.divf %101, %102 : vector<64x1xf32>
    %104 = vector.broadcast %96 : vector<64x1xf32> to vector<64x32xf32>
    %105 = arith.subf %86, %104 : vector<64x32xf32>
    %cst_35 = arith.constant 9.99999974E-6 : f32
    %106 = vector.broadcast %cst_35 : f32 to vector<64x1xf32>
    %107 = arith.addf %103, %106 : vector<64x1xf32>
    %108 = math.rsqrt %107 : vector<64x1xf32>
    %109 = vector.broadcast %108 : vector<64x1xf32> to vector<64x32xf32>
    %110 = arith.mulf %105, %109 : vector<64x32xf32>
    %111 = vector.broadcast %89 : vector<1x32xf32> to vector<64x32xf32>
    %112 = arith.mulf %110, %111 : vector<64x32xf32>
    %113 = vector.broadcast %92 : vector<1x32xf32> to vector<64x32xf32>
    %114 = arith.addf %112, %113 : vector<64x32xf32>
    %115 = arith.truncf %114 : vector<64x32xf32> to vector<64x32xbf16>
    %116 = arith.index_cast %arg1 : i32 to index
    %c0_36 = arith.constant 0 : index
    %c0_37 = arith.constant 0 : index
    %117 = vector.load %arg11[%116, %c0_36, %c0_37] : memref<2x32x64xbf16, #tpu.memory_space<vmem>>, vector<1x32x64xbf16>
    %118 = vector.shape_cast %117 : vector<1x32x64xbf16> to vector<32x64xbf16>
    %cst_38 = arith.constant dense<0.000000e+00> : vector<64x64xf32>
    %119 = tpu.matmul %115, %118, %cst_38 {dimension_numbers = #tpu.dot_dimension_numbers<[1], [0], [0], [1], [0, 0, 1, 1], [], []>} : vector<64x32xbf16>, vector<32x64xbf16>, vector<64x64xf32> -> vector<64x64xf32>
    %120 = arith.index_cast %arg1 : i32 to index
    %c0_39 = arith.constant 0 : index
    %c0_40 = arith.constant 0 : index
    %121 = vector.load %arg12[%120, %c0_39, %c0_40] : memref<2x1x64xf32, #tpu.memory_space<vmem>>, vector<1x1x64xf32>
    %122 = vector.shape_cast %121 : vector<1x1x64xf32> to vector<1x64xf32>
    %123 = vector.broadcast %122 : vector<1x64xf32> to vector<64x64xf32>
    %124 = arith.addf %119, %123 : vector<64x64xf32>
    %cst_41 = arith.constant 0.000000e+00 : f32
    %125 = vector.broadcast %cst_41 : f32 to vector<64x64xf32>
    %126 = arith.maximumf %124, %125 : vector<64x64xf32>
    %127 = arith.truncf %126 : vector<64x64xf32> to vector<64x64xbf16>
    %128 = arith.index_cast %arg1 : i32 to index
    %c0_42 = arith.constant 0 : index
    %c0_43 = arith.constant 0 : index
    %129 = vector.load %arg13[%128, %c0_42, %c0_43] : memref<2x64x32xbf16, #tpu.memory_space<vmem>>, vector<1x64x32xbf16>
    %130 = vector.shape_cast %129 : vector<1x64x32xbf16> to vector<64x32xbf16>
    %cst_44 = arith.constant dense<0.000000e+00> : vector<64x32xf32>
    %131 = tpu.matmul %127, %130, %cst_44 {dimension_numbers = #tpu.dot_dimension_numbers<[1], [0], [0], [1], [0, 0, 1, 1], [], []>} : vector<64x64xbf16>, vector<64x32xbf16>, vector<64x32xf32> -> vector<64x32xf32>
    %132 = arith.addf %114, %131 : vector<64x32xf32>
    %133 = arith.index_cast %arg1 : i32 to index
    %c0_45 = arith.constant 0 : index
    %c0_46 = arith.constant 0 : index
    %134 = vector.load %arg14[%133, %c0_45, %c0_46] : memref<2x1x32xf32, #tpu.memory_space<vmem>>, vector<1x1x32xf32>
    %135 = vector.shape_cast %134 : vector<1x1x32xf32> to vector<1x32xf32>
    %136 = vector.broadcast %135 : vector<1x32xf32> to vector<64x32xf32>
    %137 = arith.addf %132, %136 : vector<64x32xf32>
    %138 = arith.index_cast %arg1 : i32 to index
    %c0_47 = arith.constant 0 : index
    %c0_48 = arith.constant 0 : index
    %139 = vector.load %arg15[%138, %c0_47, %c0_48] : memref<2x1x32xf32, #tpu.memory_space<vmem>>, vector<1x1x32xf32>
    %140 = vector.shape_cast %139 : vector<1x1x32xf32> to vector<1x32xf32>
    %141 = arith.index_cast %arg1 : i32 to index
    %c0_49 = arith.constant 0 : index
    %c0_50 = arith.constant 0 : index
    %142 = vector.load %arg16[%141, %c0_49, %c0_50] : memref<2x1x32xf32, #tpu.memory_space<vmem>>, vector<1x1x32xf32>
    %143 = vector.shape_cast %142 : vector<1x1x32xf32> to vector<1x32xf32>
    %cst_51 = arith.constant dense<0.000000e+00> : vector<64xf32>
    %144 = vector.multi_reduction <add>, %137, %cst_51 [1] : vector<64x32xf32> to vector<64xf32>
    %145 = vector.shape_cast %144 : vector<64xf32> to vector<64x1xf32>
    %cst_52 = arith.constant 3.200000e+01 : f32
    %146 = vector.broadcast %cst_52 : f32 to vector<64x1xf32>
    %147 = arith.divf %145, %146 : vector<64x1xf32>
    %148 = vector.broadcast %147 : vector<64x1xf32> to vector<64x32xf32>
    %149 = arith.subf %137, %148 : vector<64x32xf32>
    %150 = arith.mulf %149, %149 : vector<64x32xf32>
    %cst_53 = arith.constant dense<0.000000e+00> : vector<64xf32>
    %151 = vector.multi_reduction <add>, %150, %cst_53 [1] : vector<64x32xf32> to vector<64xf32>
    %152 = vector.shape_cast %151 : vector<64xf32> to vector<64x1xf32>
    %cst_54 = arith.constant 3.200000e+01 : f32
    %153 = vector.broadcast %cst_54 : f32 to vector<64x1xf32>
    %154 = arith.divf %152, %153 : vector<64x1xf32>
    %155 = vector.broadcast %147 : vector<64x1xf32> to vector<64x32xf32>
    %156 = arith.subf %137, %155 : vector<64x32xf32>
    %cst_55 = arith.constant 9.99999974E-6 : f32
    %157 = vector.broadcast %cst_55 : f32 to vector<64x1xf32>
    %158 = arith.addf %154, %157 : vector<64x1xf32>
    %159 = math.rsqrt %158 : vector<64x1xf32>
    %160 = vector.broadcast %159 : vector<64x1xf32> to vector<64x32xf32>
    %161 = arith.mulf %156, %160 : vector<64x32xf32>
    %162 = vector.broadcast %140 : vector<1x32xf32> to vector<64x32xf32>
    %163 = arith.mulf %161, %162 : vector<64x32xf32>
    %164 = vector.broadcast %143 : vector<1x32xf32> to vector<64x32xf32>
    %165 = arith.addf %163, %164 : vector<64x32xf32>
    %c0_56 = arith.constant 0 : index
    %c0_57 = arith.constant 0 : index
    %166 = vector.load %arg20[%c0_56, %c0_57] : memref<64x32xf32, #tpu.memory_space<vmem>>, vector<64x32xf32>
    tpu.vector_store %arg20[%c0_56, %c0_57], %165 {strides = array<i32>} : memref<64x32xf32, #tpu.memory_space<vmem>>, vector<64x32xf32>,
    %c1_i32 = arith.constant 1 : i32
    %167 = arith.cmpi eq, %arg1, %c1_i32 : i32
    %168 = arith.extui %167 : i1 to i32
    %c0_i32_58 = arith.constant 0 : i32
    %169 = arith.cmpi ne, %168, %c0_i32_58 : i32
    scf.if %169 {
      %c0_59 = arith.constant 0 : index
      %c0_60 = arith.constant 0 : index
      %170 = vector.load %arg17[%c0_59, %c0_60] : memref<1x32xf32, #tpu.memory_space<vmem>>, vector<1x32xf32>
      %171 = vector.shape_cast %170 : vector<1x32xf32> to vector<32xf32>
      %c0_61 = arith.constant 0 : index
      %c0_62 = arith.constant 0 : index
      %172 = vector.load %arg18[%c0_61, %c0_62] : memref<1x32xf32, #tpu.memory_space<vmem>>, vector<1x32xf32>
      %173 = vector.shape_cast %172 : vector<1x32xf32> to vector<32xf32>
      %cst_63 = arith.constant dense<0.000000e+00> : vector<64xf32>
      %174 = vector.multi_reduction <add>, %165, %cst_63 [1] : vector<64x32xf32> to vector<64xf32>
      %175 = vector.shape_cast %174 : vector<64xf32> to vector<64x1xf32>
      %cst_64 = arith.constant 3.200000e+01 : f32
      %176 = vector.broadcast %cst_64 : f32 to vector<64x1xf32>
      %177 = arith.divf %175, %176 : vector<64x1xf32>
      %178 = vector.broadcast %177 : vector<64x1xf32> to vector<64x32xf32>
      %179 = arith.subf %165, %178 : vector<64x32xf32>
      %180 = arith.mulf %179, %179 : vector<64x32xf32>
      %cst_65 = arith.constant dense<0.000000e+00> : vector<64xf32>
      %181 = vector.multi_reduction <add>, %180, %cst_65 [1] : vector<64x32xf32> to vector<64xf32>
      %182 = vector.shape_cast %181 : vector<64xf32> to vector<64x1xf32>
      %cst_66 = arith.constant 3.200000e+01 : f32
      %183 = vector.broadcast %cst_66 : f32 to vector<64x1xf32>
      %184 = arith.divf %182, %183 : vector<64x1xf32>
      %185 = vector.broadcast %177 : vector<64x1xf32> to vector<64x32xf32>
      %186 = arith.subf %165, %185 : vector<64x32xf32>
      %cst_67 = arith.constant 9.99999974E-6 : f32
      %187 = vector.broadcast %cst_67 : f32 to vector<64x1xf32>
      %188 = arith.addf %184, %187 : vector<64x1xf32>
      %189 = math.rsqrt %188 : vector<64x1xf32>
      %190 = vector.broadcast %189 : vector<64x1xf32> to vector<64x32xf32>
      %191 = arith.mulf %186, %190 : vector<64x32xf32>
      %192 = vector.shape_cast %171 : vector<32xf32> to vector<1x32xf32>
      %193 = vector.broadcast %192 : vector<1x32xf32> to vector<64x32xf32>
      %194 = arith.mulf %191, %193 : vector<64x32xf32>
      %195 = vector.shape_cast %173 : vector<32xf32> to vector<1x32xf32>
      %196 = vector.broadcast %195 : vector<1x32xf32> to vector<64x32xf32>
      %197 = arith.addf %194, %196 : vector<64x32xf32>
      %c0_68 = arith.constant 0 : index
      %c0_69 = arith.constant 0 : index
      %c0_70 = arith.constant 0 : index
      %198 = vector.load %arg19[%c0_68, %c0_69, %c0_70] : memref<1x64x32xf32, #tpu.memory_space<vmem>>, vector<1x64x32xf32>
      %199 = vector.shape_cast %198 : vector<1x64x32xf32> to vector<64x32xf32>
      %200 = vector.shape_cast %197 : vector<64x32xf32> to vector<1x64x32xf32>
      tpu.vector_store %arg19[%c0_68, %c0_69, %c0_70], %200 {strides = array<i32>} : memref<1x64x32xf32, #tpu.memory_space<vmem>>, vector<1x64x32xf32>,
    } else {
    }
    return
  }
  func.func @transform_0(%arg0: i32, %arg1: i32) -> (i32, i32, i32, i32) {
    %c0_i32 = arith.constant 0 : i32
    %c0_i32_0 = arith.constant 0 : i32
    %c0_i32_1 = arith.constant 0 : i32
    %c0_i32_2 = arith.constant 0 : i32
    return %arg0, %c0_i32, %c0_i32_0, %c0_i32_1 : i32, i32, i32, i32
  }
  func.func @transform_1(%arg0: i32, %arg1: i32) -> (i32, i32, i32) {
    %c0_i32 = arith.constant 0 : i32
    %c0_i32_0 = arith.constant 0 : i32
    %c0_i32_1 = arith.constant 0 : i32
    %c0_i32_2 = arith.constant 0 : i32
    return %c0_i32, %c0_i32_0, %c0_i32_1 : i32, i32, i32
  }
  func.func @transform_2(%arg0: i32, %arg1: i32) -> (i32, i32) {
    %c0_i32 = arith.constant 0 : i32
    %c0_i32_0 = arith.constant 0 : i32
    %c0_i32_1 = arith.constant 0 : i32
    return %c0_i32, %c0_i32_0 : i32, i32
  }
  func.func @transform_3(%arg0: i32, %arg1: i32) -> (i32, i32, i32) {
    %c0_i32 = arith.constant 0 : i32
    %c0_i32_0 = arith.constant 0 : i32
    %c0_i32_1 = arith.constant 0 : i32
    %c0_i32_2 = arith.constant 0 : i32
    return %c0_i32, %c0_i32_0, %c0_i32_1 : i32, i32, i32
  }
  func.func @transform_4(%arg0: i32, %arg1: i32) -> (i32, i32, i32) {
    %c0_i32 = arith.constant 0 : i32
    %c0_i32_0 = arith.constant 0 : i32
    %c0_i32_1 = arith.constant 0 : i32
    %c0_i32_2 = arith.constant 0 : i32
    return %c0_i32, %c0_i32_0, %c0_i32_1 : i32, i32, i32
  }
  func.func @transform_5(%arg0: i32, %arg1: i32) -> (i32, i32, i32) {
    %c0_i32 = arith.constant 0 : i32
    %c0_i32_0 = arith.constant 0 : i32
    %c0_i32_1 = arith.constant 0 : i32
    %c0_i32_2 = arith.constant 0 : i32
    return %c0_i32, %c0_i32_0, %c0_i32_1 : i32, i32, i32
  }
  func.func @transform_6(%arg0: i32, %arg1: i32) -> (i32, i32, i32) {
    %c0_i32 = arith.constant 0 : i32
    %c0_i32_0 = arith.constant 0 : i32
    %c0_i32_1 = arith.constant 0 : i32
    %c0_i32_2 = arith.constant 0 : i32
    return %c0_i32, %c0_i32_0, %c0_i32_1 : i32, i32, i32
  }
  func.func @transform_7(%arg0: i32, %arg1: i32) -> (i32, i32, i32) {
    %c0_i32 = arith.constant 0 : i32
    %c0_i32_0 = arith.constant 0 : i32
    %c0_i32_1 = arith.constant 0 : i32
    %c0_i32_2 = arith.constant 0 : i32
    return %c0_i32, %c0_i32_0, %c0_i32_1 : i32, i32, i32
  }
  func.func @transform_8(%arg0: i32, %arg1: i32) -> (i32, i32, i32) {
    %c0_i32 = arith.constant 0 : i32
    %c0_i32_0 = arith.constant 0 : i32
    %c0_i32_1 = arith.constant 0 : i32
    %c0_i32_2 = arith.constant 0 : i32
    return %c0_i32, %c0_i32_0, %c0_i32_1 : i32, i32, i32
  }
  func.func @transform_9(%arg0: i32, %arg1: i32) -> (i32, i32, i32) {
    %c0_i32 = arith.constant 0 : i32
    %c0_i32_0 = arith.constant 0 : i32
    %c0_i32_1 = arith.constant 0 : i32
    %c0_i32_2 = arith.constant 0 : i32
    return %c0_i32, %c0_i32_0, %c0_i32_1 : i32, i32, i32
  }
  func.func @transform_10(%arg0: i32, %arg1: i32) -> (i32, i32, i32) {
    %c0_i32 = arith.constant 0 : i32
    %c0_i32_0 = arith.constant 0 : i32
    %c0_i32_1 = arith.constant 0 : i32
    %c0_i32_2 = arith.constant 0 : i32
    return %c0_i32, %c0_i32_0, %c0_i32_1 : i32, i32, i32
  }
  func.func @transform_11(%arg0: i32, %arg1: i32) -> (i32, i32, i32) {
    %c0_i32 = arith.constant 0 : i32
    %c0_i32_0 = arith.constant 0 : i32
    %c0_i32_1 = arith.constant 0 : i32
    %c0_i32_2 = arith.constant 0 : i32
    return %c0_i32, %c0_i32_0, %c0_i32_1 : i32, i32, i32
  }
  func.func @transform_12(%arg0: i32, %arg1: i32) -> (i32, i32, i32) {
    %c0_i32 = arith.constant 0 : i32
    %c0_i32_0 = arith.constant 0 : i32
    %c0_i32_1 = arith.constant 0 : i32
    %c0_i32_2 = arith.constant 0 : i32
    return %c0_i32, %c0_i32_0, %c0_i32_1 : i32, i32, i32
  }
  func.func @transform_13(%arg0: i32, %arg1: i32) -> (i32, i32, i32) {
    %c0_i32 = arith.constant 0 : i32
    %c0_i32_0 = arith.constant 0 : i32
    %c0_i32_1 = arith.constant 0 : i32
    %c0_i32_2 = arith.constant 0 : i32
    return %c0_i32, %c0_i32_0, %c0_i32_1 : i32, i32, i32
  }
  func.func @transform_14(%arg0: i32, %arg1: i32) -> (i32, i32, i32) {
    %c0_i32 = arith.constant 0 : i32
    %c0_i32_0 = arith.constant 0 : i32
    %c0_i32_1 = arith.constant 0 : i32
    %c0_i32_2 = arith.constant 0 : i32
    return %c0_i32, %c0_i32_0, %c0_i32_1 : i32, i32, i32
  }
  func.func @transform_15(%arg0: i32, %arg1: i32) -> (i32, i32) {
    %c0_i32 = arith.constant 0 : i32
    %c0_i32_0 = arith.constant 0 : i32
    %c0_i32_1 = arith.constant 0 : i32
    return %c0_i32, %c0_i32_0 : i32, i32
  }
  func.func @transform_16(%arg0: i32, %arg1: i32) -> (i32, i32) {
    %c0_i32 = arith.constant 0 : i32
    %c0_i32_0 = arith.constant 0 : i32
    %c0_i32_1 = arith.constant 0 : i32
    return %c0_i32, %c0_i32_0 : i32, i32
  }
  func.func @transform_17(%arg0: i32, %arg1: i32) -> (i32, i32, i32) {
    %c0_i32 = arith.constant 0 : i32
    %c0_i32_0 = arith.constant 0 : i32
    %c0_i32_1 = arith.constant 0 : i32
    return %arg0, %c0_i32, %c0_i32_0 : i32, i32, i32
  }
}

</mosaic_0001>

<bundles_post_ra>
// kernel: tf_aggregation_forward.1
= control target key start
LH: loop header
LB: loop body
LE: loop exit
PB: predicated region body
PF: predicated region fallthrough
CT: control target
= control target key end

     0   :  { %s7741_s0 = inlined_call_operand.vmem [shape: f32[2,8,8,32], index: 0, kind: input, shape index: {}]   ;;  %s7742_s1 = inlined_call_operand.vmem [shape: f32[7,7,32], index: 1, kind: input, shape index: {}]   ;;  %s7743_s2 = inlined_call_operand.vmem [shape: f32[1,32], index: 2, kind: input, shape index: {}]   ;;  %s7744_s3 = inlined_call_operand.vmem [shape: bf16[2,32,96], index: 3, kind: input, shape index: {}]   ;;  %s7745_s4 = inlined_call_operand.vmem [shape: f32[2,1,96], index: 4, kind: input, shape index: {}]   ;;  %s7746_s5 = inlined_call_operand.vmem [shape: bf16[2,32,32], index: 5, kind: input, shape index: {}]   ;;  %s7747_s6 = inlined_call_operand.vmem [shape: f32[2,1,32], index: 6, kind: input, shape index: {}]   ;;  %s7748_s7 = inlined_call_operand.vmem [shape: f32[2,1,32], index: 7, kind: input, shape index: {}]   ;;  %s7749_s8 = inlined_call_operand.vmem [shape: f32[2,1,32], index: 8, kind: input, shape index: {}]   ;;  %s7750_s9 = inlined_call_operand.vmem [shape: bf16[2,32,64], index: 9, kind: input, shape index: {}]   ;;  %s7751_s10 = inlined_call_operand.vmem [shape: f32[2,1,64], index: 10, kind: input, shape index: {}]   ;;  %s7752_s11 = inlined_call_operand.vmem [shape: bf16[2,64,32], index: 11, kind: input, shape index: {}]   ;;  %s7753_s12 = inlined_call_operand.vmem [shape: f32[2,1,32], index: 12, kind: input, shape index: {}]   ;;  %s7754_s13 = inlined_call_operand.vmem [shape: f32[2,1,32], index: 13, kind: input, shape index: {}]   ;;  %s7755_s14 = inlined_call_operand.vmem [shape: f32[2,1,32], index: 14, kind: input, shape index: {}]   ;;  %s7756_s15 = inlined_call_operand.vmem [shape: f32[1,32], index: 15, kind: input, shape index: {}]   ;;  %s7757_s16 = inlined_call_operand.vmem [shape: f32[1,32], index: 16, kind: input, shape index: {}]   ;;  %s7758_s17 = inlined_call_operand.hbm [shape: f32[2,64,32], index: 17, kind: output, shape index: {}]  }
   0x1   :  { %7925 = sst [smem:[#allocation108_spill]] %s7741_s0 }
   0x2   :  { %7926 = sst [smem:[#allocation109_spill]] %s7742_s1 }
   0x3   :  { %7927 = sst [smem:[#allocation110_spill]] %s7743_s2 }
   0x4   :  { %7928 = sst [smem:[#allocation111_spill]] %s7744_s3 }
   0x5   :  { %7929 = sst [smem:[#allocation112_spill]] %s7757_s16 }
   0x6   :  { %7930 = sst [smem:[#allocation113_spill]] %s7758_s17 }
   0x7   :  { %22 = vsyncpa [#allocation5], 0 }
   0x8   :  { %24 = vsyncpa [#allocation5 + $0x1], 0  ;;  %s5232_s24 = smov 0   ;;  %s5234_s25 = smov 0  }
   0x9   :  { %s5236_s26 = smov 0   ;;  %s5238_s27 = smov 0  }
   0xa   :  { %s5240_s28 = smov 0   ;;  %s5242_s29 = smov 0  }
   0xb   :  { %s5244_s0 = smov 0   ;;  %s5246_s30 = smov 0  }
   0xc LB: > { %7931 = sst [smem:[#allocation7_spill]] %s5095_s24  ;;  %s4305_s18 = sadd.s32 4294967295, %s5123_s30   ;;  %s5123_s30 = sphi %s5246_s30, %s30_s30   ;;  %s5119_s0 = sphi %s5244_s0, %s8433_s0   ;;  %s5115_s29 = sphi %s5242_s29, %s8427_s29   ;;  %s5111_s28 = sphi %s5240_s28, %s8432_s28   ;;  %s5107_s27 = sphi %s5238_s27, %s8426_s27   ;;  %s5103_s26 = sphi %s5236_s26, %s8431_s26   ;;  %s5099_s25 = sphi %s5234_s25, %s8430_s25   ;;  %s5095_s24 = sphi %s5232_s24, %s8429_s24  }
   0xd   : > { %7932 = sst [smem:[#allocation8_spill]] %s5115_s29  ;;  %s4306_s19 = sadd.s32 4294967294, %s5123_s30  }
   0xe   : > { %7933 = sst [smem:[#allocation9_spill]] %s5123_s30  ;;  %s39_s1 = sadd.s32 1, %s5115_s29 }
   0xf   : > { %p40_p0 = scmp.ge.s32.totalorder %s39_s1, 2  ;;  %s42_s20 = sadd.s32 1, %s5119_s0 }
  0x10   : > { %p421_p1 = scmp.ne.s32.totalorder %s5103_s26, %s5099_s25  ;;  %p422_p2 = scmp.eq.s32.totalorder %s4305_s18, 3 }
  0x11   : > { %s8435_s1 = smov (%p40_p0, %s39_s1), 0  ;;  %s8437_s20 = smov (!%p40_p0, %s42_s20), %s5119_s0 }
  0x12   : > { %7934 = sst [smem:[#allocation10_spill]] %s8435_s1  ;;  %p5281_p3 = por %p422_p2, %p421_p1 }
  0x13   : > { %p427_p4 = scmp.ne.s32.totalorder %s5099_s25, %s5095_s24  ;;  %p44_p5 = scmp.ge.s32.totalorder %s8437_s20, 2 }
  0x14   : > { %s7935_s21 = scalar_select %p5281_p3, 1, 0 }
  0x15   : > { %p428_p6 = scmp.eq.s32.totalorder %s4306_s19, 3  ;;  %p4309_p7 = scmp.ge.s32.totalorder %s5123_s30, 1 }
  0x16   : > { %7936 = sst [smem:[#allocation11_spill]] %s7935_s21  ;;  %p502_p8 = scmp.lt.s32.totalorder %s5123_s30, 5 }
  0x17   : > { %s8439_s20 = smov (%p44_p5, %s8437_s20), 0  ;;  %p5291_p9 = por %p428_p6, %p427_p4 }
  0x18   : > { %7937 = sst [smem:[#allocation12_spill]] %s8439_s20  ;;  %p503_p10 = pnand %p4309_p7, %p502_p8 }
  0x19   : > { %s7938_s22 = scalar_select %p5291_p9, 1, 0 }
  0x1a   : > { %s408_s23 = ssub.s32 %s5119_s0, %s8439_s20  ;;  %s411_s18 = sadd.s32 1, %s5103_s26 }
  0x1b   : > { %7939 = sst [smem:[#allocation13_spill]] %s7938_s22  ;;  %p409_p11 = scmp.eq.s32.totalorder %s408_s23, 0 }
  0x1c   : > { %506 = sbr.rel (%p503_p10) target bundleno = 5021 (0x139d), region = 88  ;;  %s551_s19 = sand.u32 (!%p503_p10), 1, %s5099_s25  }
  0x1d   : > { %s5299_s1 = scalar_select %p409_p11, %s5103_s26, %s411_s18  }
  0x1e   : > { %p554_p12 = scmp.lt.s32.totalorder (!%p503_p10), %s5111_s28, 1  ;;  %s4310_s29 = sshll.u32 (!%p503_p10), %s551_s19, 6 }
  0x1f   : > { %s7940_s22 = sld [smem:[#allocation108_spill]] (!%p503_p10)  ;;  %s5311_s20 = scalar_lea.vmem (!%p503_p10), [#allocation4], %s4310_s29 }
  0x20   : > { %p4313_p13 = scmp.ne.s32.totalorder (!%p503_p10), %s5107_s27, 0 }
  0x23   : > { %s555_s24 = scalar_select %p554_p12, %s5111_s28, 1 }
  0x24   : > { %563 = sbr.rel (%p4313_p13) target bundleno = 315 (0x13b), region = 92 }
  0x25   : > { %s4395_s30 = sshll.u32 %s555_s24, 6 }
  0x26   : > { %s5309_s16 = scalar_lea.vmem %s7940_s22, %s4395_s30 }
  0x2b   : > { %vm572_vm0 = vcmask 261120   ;;  %vm574_vm1 = vcmask 259072   ;;  %v643_v0 = vlaneseq  ;;  %v564_v1 = vld [vmem:[%s5309_s16] sm:$0xff]  ;;  %v5125_v2 = vmov 0.0   ;;  %v565_v3 = vld [vmem:[%s5309_s16 + $0x8] sm:$0xff]  ;;  %v566_v5 = vld [vmem:[%s5309_s16 + $0x10] sm:$0xff] }
  0x2c   : > { %573 = vst.msk [vmem:[#allocation3] sm:$0xff] %vm572_vm0, %v5125_v2  ;;  %576 = vst.msk [vmem:[#allocation3 + $0x10] sm:$0xff] %vm572_vm0, %v5125_v2  ;;  %vm588_vm2 = vcmask 256000   ;;  %v567_v6 = vld [vmem:[%s5309_s16 + $0x18] sm:$0xff]  ;;  %v5344_v7 = vld [vmem:[%s5309_s16 + $0x20] sm:$0xff]  ;;  %s7946_s29 = sld [smem:[#allocation109_spill]] }
  0x2d   : > { %578 = vst.msk [vmem:[#allocation3 + $0x20] sm:$0xff] %vm572_vm0, %v5125_v2  ;;  %581 = vst.msk [vmem:[#allocation3 + $0xb0] sm:$0xff] %vm572_vm0, %v5125_v2  ;;  %v644_v4 = vshrl.u32 %v643_v0, 7  ;;  %v5350_v8 = vld [vmem:[%s5309_s16 + $0x28] sm:$0xff]  ;;  %v5353_v9 = vld [vmem:[%s5309_s16 + $0x30] sm:$0xff]  ;;  %s7952_s2 = sld [smem:[#allocation110_spill]] }
  0x2e   : > { %583 = vst.msk [vmem:[#allocation3 + $0xc0] sm:$0xff] %vm572_vm0, %v5125_v2  ;;  %585 = vst.msk [vmem:[#allocation3 + $0xd0] sm:$0xff] %vm572_vm0, %v5125_v2  ;;  %v5360_v10 = vld [vmem:[%s5309_s16 + $0x38] sm:$0xff] }
  0x2f   : > { %575 = vst.msk [vmem:[#allocation3 + $0x8] sm:$0x3f] %vm574_vm1, %v5125_v2  ;;  %577 = vst.msk [vmem:[#allocation3 + $0x18] sm:$0x3f] %vm574_vm1, %v5125_v2  ;;  %v5362_v11 = vsub.s32 0, %v644_v4  ;;  %v5369_v13 = vsub.s32 1, %v644_v4 }
  0x30   : > { %579 = vst.msk [vmem:[#allocation3 + $0x28] sm:$0x3f] %vm574_vm1, %v5125_v2  ;;  %582 = vst.msk [vmem:[#allocation3 + $0xb8] sm:$0x3f] %vm574_vm1, %v5125_v2  ;;  %v5371_v14 = vsub.s32 6, %v644_v4  ;;  %v5376_v16 = vsub.s32 2, %v644_v4 }
  0x31   : > { %584 = vst.msk [vmem:[#allocation3 + $0xc8] sm:$0x3f] %vm574_vm1, %v5125_v2  ;;  %586 = vst.msk [vmem:[#allocation3 + $0xd8] sm:$0x3f] %vm574_vm1, %v5125_v2  ;;  %v5378_v17 = vsub.s32 3, %v644_v4  ;;  %v5385_v19 = vsub.s32 4, %v644_v4 }
  0x32   : > { %605 = vst.msk [vmem:[#allocation3 + $0x33] sm:$0xff] %vm572_vm0, %v564_v1  ;;  %606 = vst.msk [vmem:[#allocation3 + $0x43] sm:$0xff] %vm572_vm0, %v565_v3  ;;  %s7947_s21 = smov %s7946_s29  ;;  %v615_v12 = vld [vmem:[%s7946_s29 + $0x10] sm:$0x7f]  ;;  %v5387_v20 = vsub.s32 5, %v644_v4 }
  0x33   : > { %589 = vst.msk [vmem:[#allocation3 + $0x30] sm:$0x7] %vm588_vm2, %v5125_v2  ;;  %590 = vst.msk [vmem:[#allocation3 + $0x40] sm:$0x7] %vm588_vm2, %v5125_v2  ;;  %v613_v15 = vld [vmem:[%s7947_s21] sm:$0x7f]  ;;  %v5390_v21 = vrot.slane %v615_v12, %v5362_v11  ;;  %v5398_v24 = vrot.slane %v615_v12, %v5369_v13  ;;  %v5401_v25 = vrot.slane %v615_v12, %v5371_v14 }
  0x34   : > { %591 = vst.msk [vmem:[#allocation3 + $0x50] sm:$0x7] %vm588_vm2, %v5125_v2  ;;  %592 = vst.msk [vmem:[#allocation3 + $0x60] sm:$0x7] %vm588_vm2, %v5125_v2  ;;  %v5383_v18 = vld [vmem:[%s7952_s2] ss:$0 sm:$0xff]  ;;  %v5393_v22 = vrot.slane %v613_v15, %v5362_v11  ;;  %v5414_v31 = vrot.slane %v615_v12, %v5376_v16  ;;  %v5417_v32 = vrot.slane %v615_v12, %v5378_v17 }
  0x35   : > { %593 = vst.msk [vmem:[#allocation3 + $0x70] sm:$0x7] %vm588_vm2, %v5125_v2  ;;  %594 = vst.msk [vmem:[#allocation3 + $0x80] sm:$0x7] %vm588_vm2, %v5125_v2  ;;  %v5395_v23 = vld [vmem:[#allocation3 + $0x20] sm:$0xff]  ;;  %v627_v26 = vadd.f32 %v5383_v18, %v564_v1  ;;  %v5405_v27 = vadd.f32 %v5383_v18, %v565_v3  ;;  %v5420_v33 = vrot.slane %v613_v15, %v5369_v13 }
  0x36   : > { %595 = vst.msk [vmem:[#allocation3 + $0x90] sm:$0x7] %vm588_vm2, %v5125_v2  ;;  %596 = vst.msk [vmem:[#allocation3 + $0xa0] sm:$0x7] %vm588_vm2, %v5125_v2  ;;  %v5423_v34 = vadd.f32 %v5383_v18, %v566_v5  ;;  %v5428_v36 = vrot.slane %v615_v12, %v5385_v19  ;;  %v5431_v37 = vrot.slane %v615_v12, %v5387_v20  ;;  %v635_v38 = vld [vmem:[#allocation3] sm:$0xff]  ;;  %v5499_v0 = vld [vmem:[#allocation3 + $0x16] sm:$0xff] }
  0x37   : > { %597 = vst.msk [vmem:[#allocation3 + $0x3b] sm:$0x7] %vm588_vm2, %v5125_v2  ;;  %598 = vst.msk [vmem:[#allocation3 + $0x4b] sm:$0x7] %vm588_vm2, %v5125_v2  ;;  %v5407_v28 = vld [vmem:[#allocation3 + $0x26] sm:$0xff]  ;;  %v5434_v40 = vrot.slane %v613_v15, %v5376_v16  ;;  %v5437_v41 = vadd.f32 %v5383_v18, %v567_v6  ;;  %v5445_v44 = vmul.f32 %v5390_v21, %v5395_v23 }
  0x38   : > { %599 = vst.msk [vmem:[#allocation3 + $0x5b] sm:$0x7] %vm588_vm2, %v5125_v2  ;;  %600 = vst.msk [vmem:[#allocation3 + $0x6b] sm:$0x7] %vm588_vm2, %v5125_v2  ;;  %v5409_v29 = vld [vmem:[#allocation3 + $0x21] sm:$0xff]  ;;  %v647_v46 = vmul.f32 %v5393_v22, %v635_v38  ;;  %v5452_v47 = vrot.slane %v613_v15, %v5378_v17  ;;  %v5455_v48 = vrot.slane %v613_v15, %v5385_v19 }
  0x39   : > { %601 = vst.msk [vmem:[#allocation3 + $0x7b] sm:$0x7] %vm588_vm2, %v5125_v2  ;;  %602 = vst.msk [vmem:[#allocation3 + $0x8b] sm:$0x7] %vm588_vm2, %v5125_v2  ;;  %v5411_v30 = vld [vmem:[#allocation3 + $0x22] sm:$0xff]  ;;  %v5459_v49 = vmul.f32 %v5398_v24, %v5409_v29  ;;  %v5463_v50 = vmul.f32 %v5401_v25, %v5407_v28  ;;  %v5466_v52 = vrot.slane %v613_v15, %v5387_v20 }
  0x3a   : > { %603 = vst.msk [vmem:[#allocation3 + $0x9b] sm:$0x7] %vm588_vm2, %v5125_v2  ;;  %604 = vst.msk [vmem:[#allocation3 + $0xab] sm:$0x7] %vm588_vm2, %v5125_v2  ;;  %v5425_v35 = vld [vmem:[#allocation3 + $0x23] sm:$0xff]  ;;  %v5469_v53 = vrot.slane %v613_v15, %v5371_v14  ;;  %v5473_v54 = vmul.f32 %v5414_v31, %v5411_v30  ;;  %v655_v57 = vadd.f32 %v647_v46, %v627_v26  ;;  %v832_v15 = vld [vmem:[#allocation3 + $0x10] sm:$0xff] }
  0x3b   : > { %607 = vst.msk [vmem:[#allocation3 + $0x53] sm:$0xff] %vm572_vm0, %v566_v5  ;;  %7941 = vst [vmem:[#allocation14_spill] sm:$0xff] %v5344_v7  ;;  %v663_v39 = vld [vmem:[#allocation3 + $0x1] sm:$0xff]  ;;  %v5477_v55 = vmul.f32 %v5417_v32, %v5425_v35  ;;  %v5482_v56 = vld [vmem:[%s7947_s21 + $0x18] sm:$0x7f] }
  0x3c   : > { %608 = vst.msk [vmem:[#allocation3 + $0x63] sm:$0xff] %vm572_vm0, %v567_v6  ;;  %609 = vst.msk [vmem:[#allocation3 + $0x73] sm:$0xff] %vm572_vm0, %v5344_v7  ;;  %v5439_v42 = vld [vmem:[#allocation3 + $0x24] sm:$0xff]  ;;  %v675_v58 = vmul.f32 %v5420_v33, %v663_v39  ;;  %v5519_v46 = vrot.slane %v5482_v56, %v5362_v11 }
  0x3d   : > { %7942 = vst [vmem:[#allocation15_spill] sm:$0xff] %v5350_v8  ;;  %7943 = vst [vmem:[#allocation16_spill] sm:$0xff] %v5353_v9  ;;  %v5441_v43 = vld [vmem:[#allocation3 + $0x25] sm:$0xff]  ;;  %v5487_v59 = vmul.f32 %v5428_v36, %v5439_v42 }
  0x3e   : > { %610 = vst.msk [vmem:[#allocation3 + $0x83] sm:$0xff] %vm572_vm0, %v5350_v8  ;;  %611 = vst.msk [vmem:[#allocation3 + $0x93] sm:$0xff] %vm572_vm0, %v5353_v9  ;;  %v614_v45 = vld [vmem:[%s7947_s21 + $0x8] sm:$0x7f]  ;;  %v5491_v60 = vmul.f32 %v5431_v37, %v5441_v43  ;;  %v683_v1 = vadd.f32 %v675_v58, %v655_v57  ;;  %v860_v58 = vld [vmem:[#allocation3 + $0x11] sm:$0xff]  ;;  %v5524_v8 = vrot.slane %v5482_v56, %v5369_v13 }
  0x3f   : > { %7944 = vst [vmem:[#allocation17_spill] sm:$0xff] %v5360_v10  ;;  %7945 = vst [vmem:[#allocation18_spill] sm:$0xff] %v5362_v11  ;;  %v691_v51 = vld [vmem:[#allocation3 + $0x2] sm:$0xff]  ;;  %v5494_v62 = vrot.slane %v614_v45, %v5362_v11  ;;  %v5497_v63 = vrot.slane %v614_v45, %v5371_v14  ;;  %v5503_v5 = vrot.slane %v614_v45, %v5369_v13  ;;  %v916_v9 = vld [vmem:[#allocation3 + $0x13] sm:$0xff] }
  0x40   : > { %612 = vst.msk [vmem:[#allocation3 + $0xa3] sm:$0xff] %vm572_vm0, %v5360_v10  ;;  %7948 = vst [vmem:[#allocation19_spill] sm:$0xff] %v5369_v13  ;;  %v719_v61 = vld [vmem:[#allocation3 + $0x3] sm:$0xff]  ;;  %v703_v2 = vmul.f32 %v5434_v40, %v691_v51  ;;  %v5506_v6 = vrot.slane %v614_v45, %v5376_v16  ;;  %v5509_v26 = vrot.slane %v614_v45, %v5378_v17  ;;  %v888_v10 = vld [vmem:[#allocation3 + $0x12] sm:$0xff] }
  0x41   : > { %7949 = vst [vmem:[#allocation20_spill] sm:$0xff] %v5371_v14  ;;  %7950 = vst [vmem:[#allocation21_spill] sm:$0xff] %v5376_v16  ;;  %v747_v3 = vld [vmem:[#allocation3 + $0x4] sm:$0xff]  ;;  %v5512_v38 = vrot.slane %v614_v45, %v5385_v19  ;;  %v5515_v39 = vrot.slane %v614_v45, %v5387_v20  ;;  %v731_v57 = vmul.f32 %v5452_v47, %v719_v61  ;;  %v5572_v11 = vld [vmem:[#allocation3 + $0x34] sm:$0xff] }
  0x42   : > { %7951 = vst [vmem:[#allocation22_spill] sm:$0xff] %v5378_v17  ;;  %7953 = vst [vmem:[#allocation23_spill] sm:$0xff] %v5383_v18  ;;  %v775_v4 = vld [vmem:[#allocation3 + $0x5] sm:$0xff]  ;;  %v711_v51 = vadd.f32 %v703_v2, %v683_v1  ;;  %v5528_v18 = vrot.slane %v5482_v56, %v5376_v16  ;;  %v759_v45 = vmul.f32 %v5455_v48, %v747_v3 }
  0x43   : > { %7954 = vst [vmem:[#allocation24_spill] sm:$0xff] %v5385_v19  ;;  %7955 = vst [vmem:[#allocation25_spill] sm:$0xff] %v5387_v20  ;;  %v803_v12 = vld [vmem:[#allocation3 + $0x6] sm:$0xff]  ;;  %v787_v7 = vmul.f32 %v5466_v52, %v775_v4  ;;  %v5534_v1 = vmul.f32 %v5497_v63, %v5499_v0  ;;  %v5538_v61 = vrot.slane %v5482_v56, %v5378_v17  ;;  %v5559_v17 = vld [vmem:[#allocation3 + $0x32] sm:$0xff] }
  0x44   : > { %7956 = vst [vmem:[#allocation26_spill] sm:$0xff] %v5390_v21  ;;  %7957 = vst [vmem:[#allocation27_spill] sm:$0xff] %v5393_v22  ;;  %v739_v2 = vadd.f32 %v731_v57, %v711_v51  ;;  %v5547_v3 = vrot.slane %v5482_v56, %v5385_v19  ;;  %v648_v4 = vmul.f32 %v832_v15, %v5393_v22  ;;  %v5561_v19 = vld [vmem:[#allocation3 + $0x33] sm:$0xff] }
  0x45   : > { %7958 = vst [vmem:[#allocation28_spill] sm:$0xff] %v5398_v24  ;;  %7959 = vst [vmem:[#allocation29_spill] sm:$0xff] %v5417_v32  ;;  %v928_v51 = vmul.f32 %v5509_v26, %v916_v9 }
  0x46   : > { %7960 = vst [vmem:[#allocation30_spill] sm:$0xff] %v5420_v33  ;;  %7961 = vst [vmem:[#allocation31_spill] sm:$0xff] %v5423_v34  ;;  %v767_v57 = vadd.f32 %v759_v45, %v739_v2  ;;  %v656_v16 = vadd.f32 %v648_v4, %v5405_v27  ;;  %v5580_v2 = vrot.slane %v5482_v56, %v5387_v20  ;;  %v5586_v4 = vld [vmem:[#allocation3 + $0x35] sm:$0xff] }
  0x47   : > { %7962 = vst [vmem:[#allocation32_spill] sm:$0xff] %v5437_v41  ;;  %7963 = vst [vmem:[#allocation33_spill] sm:$0xff] %v5445_v44  ;;  %v972_v41 = vld [vmem:[#allocation3 + $0x15] sm:$0xff]  ;;  %v900_v44 = vmul.f32 %v5506_v6, %v888_v10 }
  0x48   : > { %7964 = vst [vmem:[#allocation34_spill] sm:$0xff] %v5459_v49  ;;  %7965 = vst [vmem:[#allocation35_spill] sm:$0xff] %v5463_v50  ;;  %v944_v50 = vld [vmem:[#allocation3 + $0x14] sm:$0xff]  ;;  %v872_v49 = vmul.f32 %v5503_v5, %v860_v58  ;;  %v5566_v34 = vmul.f32 %v5515_v39, %v972_v41  ;;  %v795_v27 = vadd.f32 %v787_v7, %v767_v57 }
  0x49   : > { %7966 = vst [vmem:[#allocation36_spill] sm:$0xff] %v5469_v53  ;;  %7967 = vst [vmem:[#allocation37_spill] sm:$0xff] %v5473_v54  ;;  %v844_v54 = vmul.f32 %v5494_v62, %v832_v15  ;;  %v676_v15 = vmul.f32 %v860_v58, %v5420_v33  ;;  %v5591_v33 = vmul.f32 %v5414_v31, %v5559_v17 }
  0x4a   : > { %7968 = vst [vmem:[#allocation38_spill] sm:$0xff] %v5477_v55  ;;  %7969 = vst [vmem:[#allocation39_spill] sm:$0xff] %v5487_v59  ;;  %v5541_v59 = vld [vmem:[#allocation3 + $0x36] sm:$0xff]  ;;  %v5603_v57 = vrot.slane %v5482_v56, %v5371_v14  ;;  %v5620_v56 = vmul.f32 %v5528_v18, %v5559_v17  ;;  %v5633_v14 = vmul.f32 %v5580_v2, %v5586_v4 }
  0x4b   : > { %7970 = vst [vmem:[#allocation40_spill] sm:$0xff] %v5491_v60  ;;  %7971 = vst [vmem:[#allocation41_spill] sm:$0xff] %v5494_v62  ;;  %v815_v60 = vmul.f32 %v5469_v53, %v803_v12  ;;  %v5543_v55 = vld [vmem:[#allocation3 + $0x30] sm:$0xff]  ;;  %v5576_v45 = vmul.f32 %v5401_v25, %v5541_v59 }
  0x4c   : > { %7972 = vst [vmem:[#allocation42_spill] sm:$0xff] %v5497_v63  ;;  %7973 = vst [vmem:[#allocation43_spill] sm:$0xff] %v5503_v5  ;;  %v5554_v12 = vld [vmem:[#allocation3 + $0x31] sm:$0xff]  ;;  %v5570_v13 = vmul.f32 %v5390_v21, %v5543_v55  ;;  %v5599_v7 = vmul.f32 %v5519_v46, %v5543_v55 }
  0x4d   : > { %7974 = vst [vmem:[#allocation44_spill] sm:$0xff] %v5506_v6  ;;  %7975 = vst [vmem:[#allocation45_spill] sm:$0xff] %v5509_v26  ;;  %v5584_v58 = vmul.f32 %v5398_v24, %v5554_v12 }
  0x4e   : > { %7976 = vst [vmem:[#allocation46_spill] sm:$0xff] %v5512_v38  ;;  %7977 = vst [vmem:[#allocation47_spill] sm:$0xff] %v5515_v39 }
  0x4f   : > { %7978 = vst [vmem:[#allocation48_spill] sm:$0xff] %v5519_v46  ;;  %7979 = vst [vmem:[#allocation49_spill] sm:$0xff] %v5524_v8 }
  0x50   : > { %7980 = vst [vmem:[#allocation50_spill] sm:$0xff] %v5528_v18  ;;  %7981 = vst [vmem:[#allocation51_spill] sm:$0xff] %v5534_v1  ;;  %v5557_v1 = vmul.f32 %v5512_v38, %v944_v50 }
  0x51   : > { %7982 = vst [vmem:[#allocation52_spill] sm:$0xff] %v5538_v61  ;;  %7983 = vst [vmem:[#allocation53_spill] sm:$0xff] %v5541_v59 }
  0x52   : > { %7984 = vst [vmem:[#allocation54_spill] sm:$0xff] %v5547_v3  ;;  %7985 = vst [vmem:[#allocation55_spill] sm:$0xff] %v5566_v34  ;;  %v684_v34 = vadd.f32 %v676_v15, %v656_v16  ;;  %v732_v15 = vmul.f32 %v916_v9, %v5452_v47  ;;  %v5628_v9 = vmul.f32 %v5547_v3, %v5572_v11 }
  0x53   : > { %7986 = vst [vmem:[#allocation56_spill] sm:$0xff] %v5570_v13  ;;  %7987 = vst [vmem:[#allocation57_spill] sm:$0xff] %v5572_v11  ;;  %v704_v13 = vmul.f32 %v888_v10, %v5434_v40  ;;  %v5607_v10 = vmul.f32 %v5428_v36, %v5572_v11 }
  0x54   : > { %7988 = vst [vmem:[#allocation58_spill] sm:$0xff] %v5576_v45  ;;  %7989 = vst [vmem:[#allocation59_spill] sm:$0xff] %v5584_v58  ;;  %v5595_v45 = vmul.f32 %v5417_v32, %v5561_v19  ;;  %v823_v58 = vadd.f32 %v815_v60, %v795_v27  ;;  %v5624_v60 = vmul.f32 %v5538_v61, %v5561_v19 }
  0x55   : > { %7990 = vst [vmem:[#allocation60_spill] sm:$0xff] %v5586_v4  ;;  %7991 = vst [vmem:[#allocation61_spill] sm:$0xff] %v5591_v33  ;;  %v712_v16 = vadd.f32 %v704_v13, %v684_v34  ;;  %v5612_v33 = vmul.f32 %v5431_v37, %v5586_v4  ;;  %v760_v34 = vmul.f32 %v944_v50, %v5455_v48 }
  0x56   : > { %7992 = vst [vmem:[#allocation62_spill] sm:$0xff] %v5595_v45  ;;  %7993 = vst [vmem:[#allocation63_spill] sm:$0xff] %v5599_v7  ;;  %v5616_v45 = vmul.f32 %v5524_v8, %v5554_v12  ;;  %v852_v27 = vadd.f32 %v844_v54, %v823_v58  ;;  %v816_v54 = vmul.f32 %v5499_v0, %v5469_v53  ;;  %v5642_v58 = vld [vmem:[#allocation3 + $0x40] sm:$0xff] }
  0x57   : > { %7994 = vst [vmem:[#allocation64_spill] sm:$0xff] %v5607_v10  ;;  %7995 = vst [vmem:[#allocation65_spill] sm:$0xff] %v5612_v33  ;;  %v740_v13 = vadd.f32 %v732_v15, %v712_v16  ;;  %v5637_v33 = vmul.f32 %v5603_v57, %v5541_v59  ;;  %v845_v50 = vmul.f32 %v5395_v23, %v5494_v62 }
  0x58   : > { %7996 = vst [vmem:[#allocation66_spill] sm:$0xff] %v5616_v45  ;;  %7997 = vst [vmem:[#allocation67_spill] sm:$0xff] %v5620_v56  ;;  %v788_v56 = vmul.f32 %v972_v41, %v5466_v52  ;;  %v880_v16 = vadd.f32 %v872_v49, %v852_v27  ;;  %v5654_v41 = vld [vmem:[#allocation3 + $0x44] sm:$0xff]  ;;  %v901_v0 = vmul.f32 %v5411_v30, %v5506_v6 }
  0x59   : > { %7998 = vst [vmem:[#allocation68_spill] sm:$0xff] %v5624_v60  ;;  %7999 = vst [vmem:[#allocation69_spill] sm:$0xff] %v5628_v9  ;;  %v5644_v60 = vld [vmem:[#allocation3 + $0x41] sm:$0xff]  ;;  %v768_v15 = vadd.f32 %v760_v34, %v740_v13  ;;  %v929_v10 = vmul.f32 %v5425_v35, %v5509_v26  ;;  %v957_v49 = vmul.f32 %v5439_v42, %v5512_v38 }
  0x5a   : > { %8000 = vst [vmem:[#allocation70_spill] sm:$0xff] %v5633_v14  ;;  %8001 = vst [vmem:[#allocation71_spill] sm:$0xff] %v5637_v33  ;;  %v873_v14 = vmul.f32 %v5409_v29, %v5503_v5  ;;  %v5650_v9 = vld [vmem:[#allocation3 + $0x42] sm:$0xff]  ;;  %v5664_v27 = vmul.f32 %v5441_v43, %v5515_v39  ;;  %v908_v45 = vadd.f32 %v900_v44, %v880_v16 }
  0x5b   : > { %v5652_v33 = vld [vmem:[#allocation3 + $0x43] sm:$0xff]  ;;  %v796_v7 = vadd.f32 %v788_v56, %v768_v15  ;;  %v5672_v59 = vmul.f32 %v5497_v63, %v5407_v28  ;;  %v5676_v4 = vmul.f32 %v5390_v21, %v5642_v58  ;;  %v5680_v11 = vmul.f32 %v5398_v24, %v5644_v60 }
  0x5c   : > { %v5666_v13 = vld [vmem:[#allocation3 + $0x46] sm:$0xff]  ;;  %v5684_v39 = vmul.f32 %v5414_v31, %v5650_v9  ;;  %v5688_v44 = vmul.f32 %v5417_v32, %v5652_v33  ;;  %v5692_v56 = vmul.f32 %v5428_v36, %v5654_v41  ;;  %v936_v16 = vadd.f32 %v928_v51, %v908_v45 }
  0x5d   : > { %8002 = vst [vmem:[#allocation72_spill] sm:$0xff] %v5666_v13  ;;  %v5668_v34 = vld [vmem:[#allocation3 + $0x45] sm:$0xff]  ;;  %8004 = vst [vmem:[#allocation74_spill] sm:$0xff] %v5676_v4  ;;  %v824_v4 = vadd.f32 %v816_v54, %v796_v7  ;;  %v5713_v51 = vmul.f32 %v5524_v8, %v5644_v60  ;;  %v5717_v45 = vmul.f32 %v5528_v18, %v5650_v9 }
  0x5e   : > { %8003 = vst [vmem:[#allocation73_spill] sm:$0xff] %v5668_v34  ;;  %8005 = vst [vmem:[#allocation75_spill] sm:$0xff] %v5680_v11  ;;  %v5697_v15 = vld [vmem:[%s7947_s21 + $0x20] sm:$0x7f]  ;;  %v5701_v11 = vmul.f32 %v5431_v37, %v5668_v34  ;;  %v649_v7 = vmul.f32 %v5395_v23, %v5393_v22  ;;  %v964_v54 = vadd.f32 %v5557_v1, %v936_v16  ;;  %v8018_v18 = vld [vmem:[#allocation19_spill] sm:$0xff] }
  0x5f   : > { %8006 = vst [vmem:[#allocation76_spill] sm:$0xff] %v5684_v39  ;;  %8007 = vst [vmem:[#allocation77_spill] sm:$0xff] %v5688_v44  ;;  %v5705_v39 = vmul.f32 %v5401_v25, %v5666_v13  ;;  %v5709_v44 = vmul.f32 %v5519_v46, %v5642_v58  ;;  %v8019_v23 = vld [vmem:[#allocation31_spill] sm:$0xff]  ;;  %v8020_v1 = vld [vmem:[#allocation30_spill] sm:$0xff] }
  0x60   : > { %8008 = vst [vmem:[#allocation78_spill] sm:$0xff] %v5692_v56  ;;  %8009 = vst [vmem:[#allocation79_spill] sm:$0xff] %v5697_v15  ;;  %v5728_v56 = vmul.f32 %v5547_v3, %v5654_v41  ;;  %v657_v8 = vadd.f32 %v649_v7, %v8019_v23  ;;  %v8025_v46 = vld [vmem:[#allocation24_spill] sm:$0xff]  ;;  %v5756_v7 = vrot.slane %v5697_v15, %v5387_v20 }
  0x61   : > { %8010 = vst [vmem:[#allocation80_spill] sm:$0xff] %v5701_v11  ;;  %8011 = vst [vmem:[#allocation81_spill] sm:$0xff] %v5705_v39  ;;  %v853_v11 = vadd.f32 %v845_v50, %v824_v4  ;;  %v5724_v39 = vmul.f32 %v5538_v61, %v5652_v33  ;;  %v677_v4 = vmul.f32 %v5409_v29, %v8020_v1  ;;  %v8021_v50 = vld [vmem:[#allocation55_spill] sm:$0xff]  ;;  %v8022_v61 = vld [vmem:[#allocation21_spill] sm:$0xff] }
  0x62   : > { %8012 = vst [vmem:[#allocation82_spill] sm:$0xff] %v5709_v44  ;;  %8013 = vst [vmem:[#allocation83_spill] sm:$0xff] %v5713_v51  ;;  %v8017_v44 = vld [vmem:[#allocation18_spill] sm:$0xff]  ;;  %v992_v16 = vadd.f32 %v8021_v50, %v964_v54  ;;  %v5744_v3 = vrot.slane %v5697_v15, %v8022_v61  ;;  %v5763_v50 = vmul.f32 %v5580_v2, %v5668_v34  ;;  %v1457_v61 = vld [vmem:[#allocation3 + $0xb1] sm:$0xff] }
  0x63   : > { %8014 = vst [vmem:[#allocation84_spill] sm:$0xff] %v5717_v45  ;;  %8015 = vst [vmem:[#allocation85_spill] sm:$0xff] %v5724_v39  ;;  %v5732_v51 = vrot.slane %v5697_v15, %v8017_v44  ;;  %v5736_v45 = vrot.slane %v5697_v15, %v8018_v18  ;;  %v881_v39 = vadd.f32 %v873_v14, %v853_v11  ;;  %v8028_v14 = vld [vmem:[#allocation51_spill] sm:$0xff] }
  0x64   : > { %8016 = vst [vmem:[#allocation86_spill] sm:$0xff] %v5728_v56  ;;  %v8023_v56 = vld [vmem:[#allocation22_spill] sm:$0xff]  ;;  %v5752_v18 = vrot.slane %v5697_v15, %v8025_v46  ;;  %8027 = vst [vmem:[#allocation55_spill] sm:$0xff] %v5756_v7  ;;  %v685_v29 = vadd.f32 %v677_v4, %v657_v8  ;;  %v705_v11 = vmul.f32 %v5411_v30, %v5434_v40  ;;  %v1429_v46 = vld [vmem:[#allocation3 + $0xb0] sm:$0xff] }
  0x65   : > { %v5748_v44 = vrot.slane %v5697_v15, %v8023_v56  ;;  %v1020_v54 = vadd.f32 %v8028_v14, %v992_v16  ;;  %v909_v23 = vadd.f32 %v901_v0, %v881_v39  ;;  %8029 = vst [vmem:[#allocation51_spill] sm:$0xff] %v5763_v50  ;;  %v5767_v56 = vmul.f32 %v5603_v57, %v5666_v13  ;;  %v1485_v0 = vld [vmem:[#allocation3 + $0xb2] sm:$0xff] }
  0x66   : > { %8026 = vst [vmem:[#allocation30_spill] sm:$0xff] %v5752_v18  ;;  %v5771_v20 = vmul.f32 %v5732_v51, %v5642_v58  ;;  %v5775_v8 = vmul.f32 %v5736_v45, %v5644_v60  ;;  %v713_v30 = vadd.f32 %v705_v11, %v685_v29  ;;  %v733_v39 = vmul.f32 %v5425_v35, %v5452_v47  ;;  %v1513_v4 = vld [vmem:[#allocation3 + $0xb3] sm:$0xff] }
  0x67   : > { %8024 = vst [vmem:[#allocation31_spill] sm:$0xff] %v5748_v44  ;;  %8030 = vst [vmem:[#allocation87_spill] sm:$0xff] %v5767_v56  ;;  %v8033_v16 = vld [vmem:[#allocation33_spill] sm:$0xff]  ;;  %v937_v15 = vadd.f32 %v929_v10, %v909_v23  ;;  %v5782_v56 = vmul.f32 %v5744_v3, %v5650_v9  ;;  %v5786_v50 = vmul.f32 %v5748_v44, %v5652_v33 }
  0x68   : > { %8031 = vst [vmem:[#allocation88_spill] sm:$0xff] %v5771_v20  ;;  %8032 = vst [vmem:[#allocation89_spill] sm:$0xff] %v5775_v8  ;;  %v1049_v14 = vadd.f32 %v8033_v16, %v1020_v54  ;;  %v1541_v20 = vld [vmem:[#allocation3 + $0xb4] sm:$0xff]  ;;  %v5790_v29 = vmul.f32 %v5752_v18, %v5654_v41  ;;  %v5794_v35 = vmul.f32 %v5756_v7, %v5668_v34  ;;  %v8038_v54 = vld [vmem:[#allocation34_spill] sm:$0xff] }
  0x69   : > { %8034 = vst [vmem:[#allocation33_spill] sm:$0xff] %v5782_v56  ;;  %8035 = vst [vmem:[#allocation90_spill] sm:$0xff] %v5786_v50  ;;  %v1569_v13 = vld [vmem:[#allocation3 + $0xb5] sm:$0xff]  ;;  %v741_v11 = vadd.f32 %v733_v39, %v713_v30  ;;  %v761_v10 = vmul.f32 %v5439_v42, %v5455_v48  ;;  %v965_v16 = vadd.f32 %v957_v49, %v937_v15 }
  0x6a   : > { %8036 = vst [vmem:[#allocation91_spill] sm:$0xff] %v5790_v29  ;;  %8037 = vst [vmem:[#allocation92_spill] sm:$0xff] %v5794_v35  ;;  %v1077_v23 = vadd.f32 %v8038_v54, %v1049_v14  ;;  %v5800_v56 = vmul.f32 %v5732_v51, %v1429_v46  ;;  %v5803_v50 = vmul.f32 %v5736_v45, %v1457_v61  ;;  %v8043_v42 = vld [vmem:[#allocation37_spill] sm:$0xff]  ;;  %v5827_v14 = vld [vmem:[#allocation3 + $0x50] sm:$0xff] }
  0x6b   : > { %v5806_v8 = vmul.f32 %v5744_v3, %v1485_v0  ;;  %v5809_v29 = vmul.f32 %v5748_v44, %v1513_v4  ;;  %v769_v35 = vadd.f32 %v761_v10, %v741_v11  ;;  %v789_v30 = vmul.f32 %v5441_v43, %v5466_v52  ;;  %v8046_v11 = vld [vmem:[#allocation38_spill] sm:$0xff]  ;;  %v5835_v10 = vld [vmem:[#allocation3 + $0x51] sm:$0xff] }
  0x6c   : > { %8039 = vst [vmem:[#allocation34_spill] sm:$0xff] %v5800_v56  ;;  %8040 = vst [vmem:[#allocation93_spill] sm:$0xff] %v5803_v50  ;;  %v1105_v39 = vadd.f32 %v8043_v42, %v1077_v23  ;;  %v993_v49 = vadd.f32 %v5664_v27, %v965_v16  ;;  %v5816_v46 = vmul.f32 %v5752_v18, %v1541_v20  ;;  %v8047_v54 = vld [vmem:[#allocation57_spill] sm:$0xff]  ;;  %v8048_v16 = vld [vmem:[#allocation47_spill] sm:$0xff] }
  0x6d   : > { %8041 = vst [vmem:[#allocation94_spill] sm:$0xff] %v5806_v8  ;;  %8042 = vst [vmem:[#allocation95_spill] sm:$0xff] %v5809_v29  ;;  %v5819_v61 = vmul.f32 %v5756_v7, %v1569_v13  ;;  %v797_v15 = vadd.f32 %v789_v30, %v769_v35  ;;  %v817_v0 = vmul.f32 %v5407_v28, %v5469_v53  ;;  %v8049_v30 = vld [vmem:[#allocation60_spill] sm:$0xff]  ;;  %v8054_v8 = vld [vmem:[#allocation53_spill] sm:$0xff] }
  0x6e   : > { %8044 = vst [vmem:[#allocation37_spill] sm:$0xff] %v5816_v46  ;;  %v846_v4 = vmul.f32 %v5543_v55, %v5494_v62  ;;  %v874_v43 = vmul.f32 %v5554_v12, %v5503_v5  ;;  %v1133_v27 = vadd.f32 %v8046_v11, %v1105_v39  ;;  %v1021_v20 = vadd.f32 %v5672_v59, %v993_v49  ;;  %v5843_v39 = vld [vmem:[#allocation3 + $0x53] sm:$0xff]  ;;  %v8052_v49 = vld [vmem:[#allocation39_spill] sm:$0xff] }
  0x6f   : > { %8045 = vst [vmem:[#allocation96_spill] sm:$0xff] %v5819_v61  ;;  %v902_v13 = vmul.f32 %v5559_v17, %v5506_v6  ;;  %v930_v35 = vmul.f32 %v5561_v19, %v5509_v26  ;;  %v825_v28 = vadd.f32 %v817_v0, %v797_v15  ;;  %v958_v23 = vmul.f32 %v8047_v54, %v5512_v38  ;;  %v5841_v61 = vld [vmem:[#allocation3 + $0x52] sm:$0xff] }
  0x70   : > { %v986_v42 = vmul.f32 %v8049_v30, %v8048_v16  ;;  %8050 = vst [vmem:[#allocation38_spill] sm:$0xff] %v5841_v61  ;;  %8051 = vst [vmem:[#allocation57_spill] sm:$0xff] %v5843_v39  ;;  %v650_v59 = vmul.f32 %v5543_v55, %v5393_v22  ;;  %v1161_v11 = vadd.f32 %v8052_v49, %v1133_v27  ;;  %v8053_v46 = vld [vmem:[#allocation56_spill] sm:$0xff] }
  0x71   : > { %v1050_v29 = vadd.f32 %v8053_v46, %v1021_v20  ;;  %v1014_v15 = vmul.f32 %v5497_v63, %v8054_v8  ;;  %v5853_v0 = vmul.f32 %v5390_v21, %v5827_v14  ;;  %v5855_v50 = vld [vmem:[#allocation3 + $0x54] sm:$0xff]  ;;  %v854_v56 = vadd.f32 %v846_v4, %v825_v28  ;;  %v8062_v21 = vld [vmem:[#allocation59_spill] sm:$0xff] }
  0x72   : > { %8056 = vst [vmem:[#allocation39_spill] sm:$0xff] %v5855_v50  ;;  %v5857_v34 = vld [vmem:[#allocation3 + $0x56] sm:$0xff]  ;;  %v5861_v16 = vmul.f32 %v5398_v24, %v5835_v10  ;;  %v678_v20 = vmul.f32 %v5554_v12, %v8020_v1  ;;  %v5872_v4 = vmul.f32 %v5414_v31, %v5841_v61  ;;  %v5876_v28 = vmul.f32 %v5417_v32, %v5843_v39 }
  0x73   : > { %8055 = vst [vmem:[#allocation60_spill] sm:$0xff] %v5853_v0  ;;  %8057 = vst [vmem:[#allocation56_spill] sm:$0xff] %v5857_v34  ;;  %v5863_v55 = vld [vmem:[#allocation3 + $0x55] sm:$0xff]  ;;  %v1078_v0 = vadd.f32 %v8062_v21, %v1050_v29  ;;  %v5880_v24 = vmul.f32 %v5428_v36, %v5855_v50  ;;  %v706_v12 = vmul.f32 %v5559_v17, %v5434_v40 }
  0x74   : > { %8058 = vst [vmem:[#allocation53_spill] sm:$0xff] %v5861_v16  ;;  %8059 = vst [vmem:[#allocation97_spill] sm:$0xff] %v5863_v55  ;;  %v8060_v27 = vld [vmem:[#allocation32_spill] sm:$0xff]  ;;  %v882_v16 = vadd.f32 %v874_v43, %v854_v56  ;;  %v8067_v21 = vld [vmem:[#allocation61_spill] sm:$0xff]  ;;  %v734_v17 = vmul.f32 %v5561_v19, %v5452_v47  ;;  %v762_v19 = vmul.f32 %v8047_v54, %v5455_v48 }
  0x75   : > { %v658_v46 = vadd.f32 %v650_v59, %v8060_v27  ;;  %v8061_v49 = vld [vmem:[#allocation40_spill] sm:$0xff]  ;;  %8063 = vst [vmem:[#allocation32_spill] sm:$0xff] %v5872_v4  ;;  %8065 = vst [vmem:[#allocation59_spill] sm:$0xff] %v5880_v24  ;;  %v1106_v29 = vadd.f32 %v8067_v21, %v1078_v0  ;;  %v8073_v0 = vld [vmem:[#allocation62_spill] sm:$0xff]  ;;  %v790_v54 = vmul.f32 %v8049_v30, %v5466_v52 }
  0x76   : > { %v1189_v63 = vadd.f32 %v8061_v49, %v1161_v11  ;;  %8064 = vst [vmem:[#allocation40_spill] sm:$0xff] %v5876_v28  ;;  %v8066_v11 = vld [vmem:[#allocation35_spill] sm:$0xff]  ;;  %v5888_v49 = vmul.f32 %v5431_v37, %v5863_v55  ;;  %v5892_v28 = vmul.f32 %v5401_v25, %v5857_v34  ;;  %v910_v56 = vadd.f32 %v902_v13, %v882_v16  ;;  %v8070_v43 = vld [vmem:[#allocation48_spill] sm:$0xff]  ;;  %v8074_v21 = vld [vmem:[#allocation49_spill] sm:$0xff] }
  0x77   : > { %v686_v59 = vadd.f32 %v678_v20, %v658_v46  ;;  %v5896_v24 = vmul.f32 %v8070_v43, %v5827_v14  ;;  %v8076_v4 = vld [vmem:[#allocation50_spill] sm:$0xff]  ;;  %v8078_v16 = vld [vmem:[#allocation52_spill] sm:$0xff]  ;;  %v818_v30 = vmul.f32 %v8054_v8, %v5469_v53  ;;  %v847_v8 = vmul.f32 %v5642_v58, %v5494_v62 }
  0x78   : > { %v1217_v27 = vadd.f32 %v8066_v11, %v1189_v63  ;;  %8068 = vst [vmem:[#allocation35_spill] sm:$0xff] %v5888_v49  ;;  %8069 = vst [vmem:[#allocation61_spill] sm:$0xff] %v5892_v28  ;;  %v8072_v63 = vld [vmem:[#allocation63_spill] sm:$0xff]  ;;  %v1134_v11 = vadd.f32 %v8073_v0, %v1106_v29  ;;  %v5904_v49 = vmul.f32 %v8074_v21, %v5835_v10  ;;  %v8081_v29 = vld [vmem:[#allocation64_spill] sm:$0xff] }
  0x79   : > { %8071 = vst [vmem:[#allocation48_spill] sm:$0xff] %v5896_v24  ;;  %v714_v46 = vadd.f32 %v706_v12, %v686_v59  ;;  %v5908_v28 = vmul.f32 %v8076_v4, %v5841_v61  ;;  %v938_v13 = vadd.f32 %v930_v35, %v910_v56  ;;  %v5912_v24 = vmul.f32 %v8078_v16, %v5843_v39  ;;  %v8080_v12 = vld [vmem:[#allocation66_spill] sm:$0xff] }
  0x7a   : > { %v1245_v20 = vadd.f32 %v8072_v63, %v1217_v27  ;;  %8075 = vst [vmem:[#allocation63_spill] sm:$0xff] %v5904_v49  ;;  %v1162_v63 = vadd.f32 %v8081_v29, %v1134_v11  ;;  %v8082_v0 = vld [vmem:[#allocation54_spill] sm:$0xff]  ;;  %v5928_v56 = vmul.f32 %v5603_v57, %v5857_v34  ;;  %v8087_v11 = vld [vmem:[#allocation65_spill] sm:$0xff]  ;;  %v5936_v29 = vmul.f32 %v5732_v51, %v5827_v14  ;;  %v8106_v34 = vld [vmem:[#allocation47_spill] sm:$0xff] }
  0x7b   : > { %8077 = vst [vmem:[#allocation62_spill] sm:$0xff] %v5908_v28  ;;  %8079 = vst [vmem:[#allocation49_spill] sm:$0xff] %v5912_v24  ;;  %v742_v59 = vadd.f32 %v734_v17, %v714_v46  ;;  %v5920_v49 = vmul.f32 %v8082_v0, %v5855_v50  ;;  %v5924_v28 = vmul.f32 %v5580_v2, %v5863_v55  ;;  %v8086_v17 = vld [vmem:[#allocation67_spill] sm:$0xff] }
  0x7c   : > { %v1273_v27 = vadd.f32 %v8080_v12, %v1245_v20  ;;  %v966_v35 = vadd.f32 %v958_v23, %v938_v13  ;;  %8085 = vst [vmem:[#allocation66_spill] sm:$0xff] %v5928_v56  ;;  %v1190_v12 = vadd.f32 %v8087_v11, %v1162_v63  ;;  %8088 = vst [vmem:[#allocation64_spill] sm:$0xff] %v5936_v29  ;;  %v8092_v63 = vld [vmem:[#allocation58_spill] sm:$0xff] }
  0x7d   : > { %8083 = vst [vmem:[#allocation50_spill] sm:$0xff] %v5920_v49  ;;  %8084 = vst [vmem:[#allocation52_spill] sm:$0xff] %v5924_v28  ;;  %v770_v46 = vadd.f32 %v762_v19, %v742_v59  ;;  %v5940_v28 = vmul.f32 %v5736_v45, %v5835_v10  ;;  %v5944_v13 = vmul.f32 %v5744_v3, %v5841_v61  ;;  %v8091_v19 = vld [vmem:[#allocation68_spill] sm:$0xff]  ;;  %v8104_v49 = vld [vmem:[#allocation23_spill] sm:$0xff] }
  0x7e   : > { %v1301_v20 = vadd.f32 %v8086_v17, %v1273_v27  ;;  %v994_v23 = vadd.f32 %v986_v42, %v966_v35  ;;  %v1218_v17 = vadd.f32 %v8092_v63, %v1190_v12  ;;  %v5952_v11 = vmul.f32 %v5748_v44, %v5843_v39  ;;  %v8097_v12 = vld [vmem:[#allocation82_spill] sm:$0xff] }
  0x7f   : > { %8089 = vst [vmem:[#allocation54_spill] sm:$0xff] %v5940_v28  ;;  %8090 = vst [vmem:[#allocation67_spill] sm:$0xff] %v5944_v13  ;;  %v798_v59 = vadd.f32 %v790_v54, %v770_v46  ;;  %v5956_v56 = vmul.f32 %v5752_v18, %v5855_v50  ;;  %v5960_v35 = vmul.f32 %v5756_v7, %v5863_v55  ;;  %v8096_v54 = vld [vmem:[#allocation69_spill] sm:$0xff]  ;;  %v5979_v13 = vld [vmem:[#allocation3 + $0x61] sm:$0xff] }
  0x80   : > { %v1329_v27 = vadd.f32 %v8091_v19, %v1301_v20  ;;  %8093 = vst [vmem:[#allocation65_spill] sm:$0xff] %v5952_v11  ;;  %v1022_v42 = vadd.f32 %v1014_v15, %v994_v23  ;;  %v1246_v19 = vadd.f32 %v8097_v12, %v1218_v17  ;;  %v875_v63 = vmul.f32 %v5644_v60, %v5503_v5  ;;  %v8101_v17 = vld [vmem:[#allocation83_spill] sm:$0xff]  ;;  %v8103_v28 = vld [vmem:[#allocation14_spill] sm:$0xff]  ;;  %v8107_v55 = vld [vmem:[#allocation73_spill] sm:$0xff] }
  0x81   : > { %8094 = vst [vmem:[#allocation68_spill] sm:$0xff] %v5956_v56  ;;  %8095 = vst [vmem:[#allocation58_spill] sm:$0xff] %v5960_v35  ;;  %v826_v46 = vadd.f32 %v818_v30, %v798_v59  ;;  %v903_v11 = vmul.f32 %v5650_v9, %v5506_v6  ;;  %v8098_v56 = vld [vmem:[#allocation74_spill] sm:$0xff]  ;;  %v931_v35 = vmul.f32 %v5652_v33, %v5509_v26  ;;  %v8108_v50 = vld [vmem:[#allocation72_spill] sm:$0xff] }
  0x82   : > { %v1357_v20 = vadd.f32 %v8096_v54, %v1329_v27  ;;  %v1051_v15 = vadd.f32 %v8098_v56, %v1022_v42  ;;  %v959_v59 = vmul.f32 %v5654_v41, %v5512_v38  ;;  %v5975_v30 = vld [vmem:[#allocation3 + $0x60] sm:$0xff]  ;;  %v1274_v12 = vadd.f32 %v8101_v17, %v1246_v19  ;;  %8102 = vst [vmem:[#allocation82_spill] sm:$0xff] %v5979_v13  ;;  %v8105_v42 = vld [vmem:[#allocation75_spill] sm:$0xff]  ;;  %v8111_v19 = vld [vmem:[#allocation84_spill] sm:$0xff] }
  0x83   : > { %v855_v23 = vadd.f32 %v847_v8, %v826_v46  ;;  %8099 = vst [vmem:[#allocation69_spill] sm:$0xff] %v5975_v30  ;;  %v8100_v27 = vld [vmem:[#allocation70_spill] sm:$0xff]  ;;  %v631_v24 = vadd.f32 %v8104_v49, %v8103_v28  ;;  %v651_v56 = vmul.f32 %v5642_v58, %v5393_v22  ;;  %v987_v29 = vmul.f32 %v8107_v55, %v8106_v34  ;;  %v8117_v22 = vld [vmem:[#allocation76_spill] sm:$0xff] }
  0x84   : > { %v1385_v54 = vadd.f32 %v8100_v27, %v1357_v20  ;;  %v1079_v46 = vadd.f32 %v8105_v42, %v1051_v15  ;;  %v8109_v38 = vld [vmem:[#allocation42_spill] sm:$0xff]  ;;  %v1302_v27 = vadd.f32 %v8111_v19, %v1274_v12  ;;  %v8118_v34 = vld [vmem:[#allocation28_spill] sm:$0xff] }
  0x85   : > { %v883_v8 = vadd.f32 %v875_v63, %v855_v23  ;;  %v1015_v39 = vmul.f32 %v8109_v38, %v8108_v50  ;;  %v5990_v20 = vld [vmem:[#allocation3 + $0x62] sm:$0xff]  ;;  %v659_v15 = vadd.f32 %v651_v56, %v631_v24  ;;  %v679_v63 = vmul.f32 %v5644_v60, %v8020_v1 }
  0x86   : > { %8110 = vst [vmem:[#allocation74_spill] sm:$0xff] %v5990_v20  ;;  %v8112_v17 = vld [vmem:[#allocation26_spill] sm:$0xff]  ;;  %v8116_v23 = vld [vmem:[#allocation71_spill] sm:$0xff]  ;;  %v1107_v49 = vadd.f32 %v8117_v22, %v1079_v46  ;;  %v6007_v12 = vmul.f32 %v8118_v34, %v5979_v13  ;;  %v6016_v24 = vmul.f32 %v5414_v31, %v5990_v20  ;;  %v8123_v22 = vld [vmem:[#allocation77_spill] sm:$0xff] }
  0x87   : > { %v5995_v26 = vmul.f32 %v8112_v17, %v5975_v30  ;;  %v5997_v28 = vld [vmem:[#allocation3 + $0x63] sm:$0xff]  ;;  %v1413_v42 = vadd.f32 %v8116_v23, %v1385_v54  ;;  %v911_v38 = vadd.f32 %v903_v11, %v883_v8  ;;  %v687_v60 = vadd.f32 %v679_v63, %v659_v15 }
  0x88   : > { %8114 = vst [vmem:[#allocation83_spill] sm:$0xff] %v5997_v28  ;;  %v5999_v58 = vld [vmem:[#allocation3 + $0x64] sm:$0xff]  ;;  %8122 = vst [vmem:[#allocation84_spill] sm:$0xff] %v6016_v24  ;;  %v707_v54 = vmul.f32 %v5650_v9, %v5434_v40  ;;  %v1135_v11 = vadd.f32 %v8123_v22, %v1107_v49  ;;  %v6023_v46 = vmul.f32 %v5417_v32, %v5997_v28  ;;  %v8128_v49 = vld [vmem:[#allocation88_spill] sm:$0xff] }
  0x89   : > { %8113 = vst [vmem:[#allocation70_spill] sm:$0xff] %v5995_v26  ;;  %8115 = vst [vmem:[#allocation14_spill] sm:$0xff] %v5999_v58  ;;  %v6009_v19 = vld [vmem:[#allocation3 + $0x65] sm:$0xff]  ;;  %v8120_v26 = vld [vmem:[#allocation85_spill] sm:$0xff]  ;;  %v939_v56 = vadd.f32 %v931_v35, %v911_v38  ;;  %v735_v9 = vmul.f32 %v5652_v33, %v5452_v47  ;;  %v1442_v38 = vadd.f32 %v8128_v49, %v1413_v42 }
  0x8a   : > { %8119 = vst [vmem:[#allocation75_spill] sm:$0xff] %v6009_v19  ;;  %v1330_v17 = vadd.f32 %v8120_v26, %v1302_v27  ;;  %v6012_v61 = vld [vmem:[#allocation3 + $0x66] sm:$0xff]  ;;  %8124 = vst [vmem:[#allocation71_spill] sm:$0xff] %v6023_v46  ;;  %v6027_v26 = vmul.f32 %v5428_v36, %v5999_v58  ;;  %v6032_v23 = vmul.f32 %v5431_v37, %v6009_v19  ;;  %v8131_v42 = vld [vmem:[#allocation80_spill] sm:$0xff] }
  0x8b   : > { %8121 = vst [vmem:[#allocation73_spill] sm:$0xff] %v6012_v61  ;;  %v8126_v8 = vld [vmem:[#allocation86_spill] sm:$0xff]  ;;  %v715_v15 = vadd.f32 %v707_v54, %v687_v60  ;;  %v967_v22 = vadd.f32 %v959_v59, %v939_v56  ;;  %v6040_v46 = vmul.f32 %v5401_v25, %v6012_v61  ;;  %v763_v33 = vmul.f32 %v5654_v41, %v5455_v48  ;;  %v8133_v49 = vld [vmem:[#allocation51_spill] sm:$0xff]  ;;  %v8162_v24 = vld [vmem:[#allocation56_spill] sm:$0xff] }
  0x8c   : > { %8125 = vst [vmem:[#allocation76_spill] sm:$0xff] %v6027_v26  ;;  %v1358_v27 = vadd.f32 %v8126_v8, %v1330_v17  ;;  %8127 = vst [vmem:[#allocation85_spill] sm:$0xff] %v6032_v23  ;;  %v8129_v35 = vld [vmem:[#allocation78_spill] sm:$0xff]  ;;  %v6044_v17 = vmul.f32 %v8070_v43, %v5975_v30  ;;  %v6048_v8 = vmul.f32 %v8074_v21, %v5979_v13  ;;  %v8147_v26 = vld [vmem:[#allocation53_spill] sm:$0xff] }
  0x8d   : > { %v1163_v63 = vadd.f32 %v8129_v35, %v1135_v11  ;;  %8130 = vst [vmem:[#allocation77_spill] sm:$0xff] %v6040_v46  ;;  %v743_v60 = vadd.f32 %v735_v9, %v715_v15  ;;  %v995_v11 = vadd.f32 %v987_v29, %v967_v22  ;;  %v6055_v59 = vmul.f32 %v8076_v4, %v5990_v20  ;;  %v8135_v9 = vld [vmem:[#allocation89_spill] sm:$0xff] }
  0x8e   : > { %v6059_v56 = vmul.f32 %v8078_v16, %v5997_v28  ;;  %v1386_v35 = vadd.f32 %v8133_v49, %v1358_v27  ;;  %v6064_v46 = vmul.f32 %v8082_v0, %v5999_v58  ;;  %v791_v41 = vmul.f32 %v8107_v55, %v5466_v52 }
  0x8f   : > { %v1191_v54 = vadd.f32 %v8131_v42, %v1163_v63  ;;  %v771_v15 = vadd.f32 %v763_v33, %v743_v60  ;;  %v1470_v29 = vadd.f32 %v8135_v9, %v1442_v38  ;;  %v8136_v63 = vld [vmem:[#allocation81_spill] sm:$0xff]  ;;  %v1023_v42 = vadd.f32 %v1015_v39, %v995_v11  ;;  %v8139_v38 = vld [vmem:[#allocation48_spill] sm:$0xff] }
  0x90   : > { %8132 = vst [vmem:[#allocation86_spill] sm:$0xff] %v6059_v56  ;;  %8134 = vst [vmem:[#allocation88_spill] sm:$0xff] %v6064_v46  ;;  %v6072_v23 = vmul.f32 %v5580_v2, %v6009_v19  ;;  %v6076_v27 = vmul.f32 %v5603_v57, %v6012_v61  ;;  %v6080_v49 = vmul.f32 %v5732_v51, %v5975_v30  ;;  %v8156_v61 = vld [vmem:[#allocation46_spill] sm:$0xff]  ;;  %v8169_v30 = vld [vmem:[#allocation40_spill] sm:$0xff] }
  0x91   : > { %v1219_v22 = vadd.f32 %v8136_v63, %v1191_v54  ;;  %v799_v60 = vadd.f32 %v791_v41, %v771_v15  ;;  %v819_v55 = vmul.f32 %v8108_v50, %v5469_v53  ;;  %v8140_v54 = vld [vmem:[#allocation60_spill] sm:$0xff]  ;;  %v6088_v11 = vmul.f32 %v5736_v45, %v5979_v13  ;;  %v8143_v63 = vld [vmem:[#allocation87_spill] sm:$0xff]  ;;  %v8163_v13 = vld [vmem:[#allocation42_spill] sm:$0xff] }
  0x92   : > { %8137 = vst [vmem:[#allocation78_spill] sm:$0xff] %v6072_v23  ;;  %8138 = vst [vmem:[#allocation80_spill] sm:$0xff] %v6076_v27  ;;  %v1052_v39 = vadd.f32 %v8140_v54, %v1023_v42  ;;  %v6092_v9 = vmul.f32 %v5744_v3, %v5990_v20  ;;  %v1414_v27 = vadd.f32 %v8143_v63, %v1386_v35  ;;  %v8146_v54 = vld [vmem:[#allocation63_spill] sm:$0xff]  ;;  %v8161_v20 = vld [vmem:[#allocation97_spill] sm:$0xff] }
  0x93   : > { %v1247_v33 = vadd.f32 %v8139_v38, %v1219_v22  ;;  %8141 = vst [vmem:[#allocation51_spill] sm:$0xff] %v6088_v11  ;;  %v6097_v15 = vmul.f32 %v5748_v44, %v5997_v28  ;;  %v827_v41 = vadd.f32 %v819_v55, %v799_v60  ;;  %v848_v22 = vmul.f32 %v5827_v14, %v5494_v62  ;;  %v8145_v38 = vld [vmem:[#allocation33_spill] sm:$0xff]  ;;  %v8150_v55 = vld [vmem:[#allocation38_spill] sm:$0xff]  ;;  %v8160_v28 = vld [vmem:[#allocation47_spill] sm:$0xff] }
  0x94   : > { %8142 = vst [vmem:[#allocation89_spill] sm:$0xff] %v6092_v9  ;;  %v1498_v42 = vadd.f32 %v8145_v38, %v1470_v29  ;;  %v1080_v23 = vadd.f32 %v8147_v26, %v1052_v39  ;;  %v6106_v11 = vmul.f32 %v5752_v18, %v5999_v58  ;;  %v6110_v35 = vmul.f32 %v5756_v7, %v6009_v19  ;;  %v6116_v29 = vld [vmem:[#allocation3 + $0x70] sm:$0xff]  ;;  %v8155_v9 = vld [vmem:[#allocation57_spill] sm:$0xff]  ;;  %v8157_v58 = vld [vmem:[#allocation39_spill] sm:$0xff] }
  0x95   : > { %8144 = vst [vmem:[#allocation81_spill] sm:$0xff] %v6097_v15  ;;  %v1275_v50 = vadd.f32 %v8146_v54, %v1247_v33  ;;  %v856_v63 = vadd.f32 %v848_v22, %v827_v41  ;;  %v876_v60 = vmul.f32 %v5835_v10, %v5503_v5  ;;  %v904_v15 = vmul.f32 %v8150_v55, %v5506_v6  ;;  %v8152_v33 = vld [vmem:[#allocation62_spill] sm:$0xff]  ;;  %v8153_v26 = vld [vmem:[#allocation32_spill] sm:$0xff]  ;;  %v8154_v54 = vld [vmem:[#allocation45_spill] sm:$0xff] }
  0x96   : > { %8148 = vst [vmem:[#allocation48_spill] sm:$0xff] %v6106_v11  ;;  %8149 = vst [vmem:[#allocation60_spill] sm:$0xff] %v6110_v35  ;;  %v1108_v39 = vadd.f32 %v8153_v26, %v1080_v23  ;;  %v932_v11 = vmul.f32 %v8155_v9, %v8154_v54  ;;  %v960_v19 = vmul.f32 %v8157_v58, %v8156_v61  ;;  %v6124_v35 = vld [vmem:[#allocation3 + $0x71] sm:$0xff] }
  0x97   : > { %8151 = vst [vmem:[#allocation87_spill] sm:$0xff] %v6116_v29  ;;  %v1303_v38 = vadd.f32 %v8152_v33, %v1275_v50  ;;  %8158 = vst [vmem:[#allocation33_spill] sm:$0xff] %v6124_v35  ;;  %v8159_v41 = vld [vmem:[#allocation64_spill] sm:$0xff]  ;;  %v884_v46 = vadd.f32 %v876_v60, %v856_v63  ;;  %v988_v6 = vmul.f32 %v8161_v20, %v8160_v28  ;;  %v8166_v33 = vld [vmem:[#allocation90_spill] sm:$0xff] }
  0x98   : > { %v1443_v22 = vadd.f32 %v8159_v41, %v1414_v27  ;;  %v1016_v5 = vmul.f32 %v8163_v13, %v8162_v24  ;;  %v6131_v50 = vld [vmem:[#allocation3 + $0x72] sm:$0xff]  ;;  %v6136_v26 = vadd.f32 %v8166_v33, %v1498_v42  ;;  %v1136_v62 = vadd.f32 %v8169_v30, %v1108_v39  ;;  %v8170_v27 = vld [vmem:[#allocation26_spill] sm:$0xff]  ;;  %v8176_v42 = vld [vmem:[#allocation15_spill] sm:$0xff] }
  0x99   : > { %8164 = vst [vmem:[#allocation63_spill] sm:$0xff] %v6131_v50  ;;  %v6133_v23 = vld [vmem:[#allocation3 + $0x73] sm:$0xff]  ;;  %v6142_v63 = vmul.f32 %v8170_v27, %v6116_v29  ;;  %v912_v60 = vadd.f32 %v904_v15, %v884_v46  ;;  %v6148_v13 = vmul.f32 %v8118_v34, %v6124_v35  ;;  %v8177_v33 = vld [vmem:[#allocation23_spill] sm:$0xff]  ;;  %v8179_v39 = vld [vmem:[#allocation50_spill] sm:$0xff]  ;;  %v6162_v15 = vmul.f32 %v5414_v31, %v6131_v50 }
  0x9a   : > { %8165 = vst [vmem:[#allocation53_spill] sm:$0xff] %v6133_v23  ;;  %8167 = vst [vmem:[#allocation38_spill] sm:$0xff] %v6136_v26  ;;  %v8168_v54 = vld [vmem:[#allocation49_spill] sm:$0xff]  ;;  %v8183_v34 = vld [vmem:[#allocation54_spill] sm:$0xff] }
  0x9b   : > { %v1331_v61 = vadd.f32 %v8168_v54, %v1303_v38  ;;  %8171 = vst [vmem:[#allocation62_spill] sm:$0xff] %v6142_v63  ;;  %v6144_v41 = vld [vmem:[#allocation3 + $0x76] sm:$0xff]  ;;  %8173 = vst [vmem:[#allocation57_spill] sm:$0xff] %v6148_v13  ;;  %v632_v38 = vadd.f32 %v8177_v33, %v8176_v42  ;;  %v8178_v54 = vld [vmem:[#allocation27_spill] sm:$0xff]  ;;  %v6166_v13 = vmul.f32 %v5417_v32, %v6133_v23 }
  0x9c   : > { %8172 = vst [vmem:[#allocation32_spill] sm:$0xff] %v6144_v41  ;;  %v6150_v28 = vld [vmem:[#allocation3 + $0x74] sm:$0xff]  ;;  %v652_v30 = vmul.f32 %v5827_v14, %v8178_v54  ;;  %v8180_v63 = vld [vmem:[#allocation59_spill] sm:$0xff]  ;;  %8181 = vst [vmem:[#allocation97_spill] sm:$0xff] %v6162_v15  ;;  %v1471_v27 = vadd.f32 %v8183_v34, %v1443_v22  ;;  %v940_v56 = vadd.f32 %v932_v11, %v912_v60 }
  0x9d   : > { %8174 = vst [vmem:[#allocation39_spill] sm:$0xff] %v6150_v28  ;;  %v6152_v7 = vld [vmem:[#allocation3 + $0x75] sm:$0xff]  ;;  %v1359_v26 = vadd.f32 %v8179_v39, %v1331_v61  ;;  %v1164_v46 = vadd.f32 %v8180_v63, %v1136_v62  ;;  %8182 = vst [vmem:[#allocation90_spill] sm:$0xff] %v6166_v13  ;;  %v680_v42 = vmul.f32 %v5835_v10, %v8020_v1  ;;  %v8184_v14 = vld [vmem:[#allocation35_spill] sm:$0xff] }
  0x9e   : > { %8175 = vst [vmem:[#allocation64_spill] sm:$0xff] %v6152_v7  ;;  %v660_v24 = vadd.f32 %v652_v30, %v632_v38  ;;  %v6174_v62 = vmul.f32 %v5428_v36, %v6150_v28  ;;  %v6178_v61 = vmul.f32 %v5431_v37, %v6152_v7  ;;  %v6182_v63 = vmul.f32 %v5401_v25, %v6144_v41  ;;  %v8188_v34 = vld [vmem:[#allocation52_spill] sm:$0xff]  ;;  %v8189_v38 = vld [vmem:[#allocation61_spill] sm:$0xff]  ;;  %v8218_v15 = vld [vmem:[#allocation46_spill] sm:$0xff] }
  0x9f   : > { %v1192_v54 = vadd.f32 %v8184_v14, %v1164_v46  ;;  %v1387_v11 = vadd.f32 %v8188_v34, %v1359_v26  ;;  %v968_v22 = vadd.f32 %v960_v19, %v940_v56  ;;  %v708_v10 = vmul.f32 %v8150_v55, %v5434_v40  ;;  %v8190_v26 = vld [vmem:[#allocation67_spill] sm:$0xff]  ;;  %v8210_v13 = vld [vmem:[#allocation84_spill] sm:$0xff] }
  0xa0   : > { %8185 = vst [vmem:[#allocation49_spill] sm:$0xff] %v6174_v62  ;;  %8186 = vst [vmem:[#allocation40_spill] sm:$0xff] %v6178_v61  ;;  %v688_v60 = vadd.f32 %v680_v42, %v660_v24  ;;  %v6190_v39 = vmul.f32 %v8070_v43, %v6116_v29  ;;  %v6194_v46 = vmul.f32 %v8074_v21, %v6124_v35  ;;  %v8209_v62 = vld [vmem:[#allocation82_spill] sm:$0xff] }
  0xa1   : > { %8187 = vst [vmem:[#allocation15_spill] sm:$0xff] %v6182_v63  ;;  %v1220_v30 = vadd.f32 %v8189_v38, %v1192_v54  ;;  %v6198_v14 = vmul.f32 %v8076_v4, %v6131_v50  ;;  %v1499_v19 = vadd.f32 %v8190_v26, %v1471_v27  ;;  %v996_v24 = vadd.f32 %v988_v6, %v968_v22  ;;  %v8194_v27 = vld [vmem:[#allocation66_spill] sm:$0xff]  ;;  %v8207_v63 = vld [vmem:[#allocation69_spill] sm:$0xff] }
  0xa2   : > { %v716_v56 = vadd.f32 %v708_v10, %v688_v60  ;;  %v736_v55 = vmul.f32 %v8155_v9, %v5452_v47  ;;  %v6206_v42 = vmul.f32 %v8078_v16, %v6133_v23  ;;  %v6210_v34 = vmul.f32 %v8082_v0, %v6150_v28 }
  0xa3   : > { %v1248_v54 = vadd.f32 %v6044_v17, %v1220_v30  ;;  %v6214_v38 = vmul.f32 %v5580_v2, %v6152_v7  ;;  %v1415_v6 = vadd.f32 %v8194_v27, %v1387_v11  ;;  %v1024_v22 = vadd.f32 %v1016_v5, %v996_v24  ;;  %v8196_v11 = vld [vmem:[#allocation65_spill] sm:$0xff]  ;;  %v8198_v24 = vld [vmem:[#allocation70_spill] sm:$0xff] }
  0xa4   : > { %8191 = vst [vmem:[#allocation23_spill] sm:$0xff] %v6206_v42  ;;  %8192 = vst [vmem:[#allocation50_spill] sm:$0xff] %v6210_v34  ;;  %v744_v60 = vadd.f32 %v736_v55, %v716_v56  ;;  %v764_v9 = vmul.f32 %v8157_v58, %v5455_v48  ;;  %v6222_v10 = vmul.f32 %v5603_v57, %v6144_v41  ;;  %v8220_v41 = vld [vmem:[#allocation47_spill] sm:$0xff] }
  0xa5   : > { %8193 = vst [vmem:[#allocation59_spill] sm:$0xff] %v6214_v38  ;;  %v1276_v17 = vadd.f32 %v6048_v8, %v1248_v54  ;;  %v6226_v30 = vmul.f32 %v5732_v51, %v6116_v29  ;;  %v6230_v26 = vmul.f32 %v5736_v45, %v6124_v35  ;;  %v6233_v5 = vadd.f32 %v8196_v11, %v1499_v19  ;;  %v8208_v38 = vld [vmem:[#allocation43_spill] sm:$0xff] }
  0xa6   : > { %8195 = vst [vmem:[#allocation54_spill] sm:$0xff] %v6222_v10  ;;  %v1053_v56 = vadd.f32 %v8198_v24, %v1024_v22  ;;  %v772_v58 = vadd.f32 %v764_v9, %v744_v60  ;;  %v792_v8 = vmul.f32 %v8161_v20, %v5466_v52  ;;  %v6241_v54 = vmul.f32 %v5744_v3, %v6131_v50  ;;  %v8202_v20 = vld [vmem:[#allocation56_spill] sm:$0xff]  ;;  %v8204_v24 = vld [vmem:[#allocation55_spill] sm:$0xff]  ;;  %v8206_v10 = vld [vmem:[#allocation41_spill] sm:$0xff] }
  0xa7   : > { %8197 = vst [vmem:[#allocation35_spill] sm:$0xff] %v6233_v5  ;;  %v1304_v55 = vadd.f32 %v6055_v59, %v1276_v17  ;;  %v6245_v27 = vmul.f32 %v5748_v44, %v6133_v23  ;;  %v6249_v19 = vmul.f32 %v5752_v18, %v6150_v28  ;;  %v1444_v22 = vadd.f32 %v6080_v49, %v1415_v6  ;;  %v8203_v17 = vld [vmem:[#allocation86_spill] sm:$0xff] }
  0xa8   : > { %8199 = vst [vmem:[#allocation52_spill] sm:$0xff] %v6241_v54  ;;  %v1081_v60 = vadd.f32 %v6007_v12, %v1053_v56  ;;  %v800_v9 = vadd.f32 %v792_v8, %v772_v58  ;;  %v820_v59 = vmul.f32 %v8202_v20, %v5469_v53  ;;  %v6258_v5 = vmul.f32 %v8204_v24, %v6152_v7  ;;  %v8211_v12 = vld [vmem:[#allocation44_spill] sm:$0xff]  ;;  %v8212_v56 = vld [vmem:[#allocation74_spill] sm:$0xff]  ;;  %v8213_v8 = vld [vmem:[#allocation45_spill] sm:$0xff] }
  0xa9   : > { %8200 = vst [vmem:[#allocation61_spill] sm:$0xff] %v6245_v27  ;;  %8201 = vst [vmem:[#allocation67_spill] sm:$0xff] %v6249_v19  ;;  %v1332_v11 = vadd.f32 %v8203_v17, %v1304_v55  ;;  %v849_v61 = vmul.f32 %v8207_v63, %v8206_v10  ;;  %v877_v19 = vmul.f32 %v8209_v62, %v8208_v38  ;;  %v8214_v20 = vld [vmem:[#allocation83_spill] sm:$0xff]  ;;  %v6269_v55 = vld [vmem:[#allocation3 + $0x80] sm:$0xff] }
  0xaa   : > { %8205 = vst [vmem:[#allocation66_spill] sm:$0xff] %v6258_v5  ;;  %v1109_v49 = vadd.f32 %v8210_v13, %v1081_v60  ;;  %v828_v6 = vadd.f32 %v820_v59, %v800_v9  ;;  %v905_v58 = vmul.f32 %v8212_v56, %v8211_v12  ;;  %v933_v27 = vmul.f32 %v8214_v20, %v8213_v8  ;;  %v6271_v17 = vld [vmem:[#allocation3 + $0x81] sm:$0xff]  ;;  %v8217_v5 = vld [vmem:[#allocation88_spill] sm:$0xff]  ;;  %v8222_v13 = vld [vmem:[#allocation73_spill] sm:$0xff] }
  0xab   : > { %8215 = vst [vmem:[#allocation65_spill] sm:$0xff] %v6269_v55  ;;  %8216 = vst [vmem:[#allocation70_spill] sm:$0xff] %v6271_v17  ;;  %v1360_v34 = vadd.f32 %v8217_v5, %v1332_v11  ;;  %v8219_v54 = vld [vmem:[#allocation14_spill] sm:$0xff]  ;;  %v8221_v7 = vld [vmem:[#allocation75_spill] sm:$0xff] }
  0xac   : > { %v961_v42 = vmul.f32 %v8219_v54, %v8218_v15  ;;  %v989_v28 = vmul.f32 %v8221_v7, %v8220_v41  ;;  %v8223_v60 = vld [vmem:[#allocation42_spill] sm:$0xff]  ;;  %v8226_v8 = vld [vmem:[#allocation51_spill] sm:$0xff]  ;;  %v857_v38 = vadd.f32 %v849_v61, %v828_v6  ;;  %v8230_v11 = vld [vmem:[#allocation16_spill] sm:$0xff] }
  0xad   : > { %v1017_v9 = vmul.f32 %v8223_v60, %v8222_v13  ;;  %v6280_v59 = vld [vmem:[#allocation3 + $0x82] sm:$0xff]  ;;  %v1472_v50 = vadd.f32 %v8226_v8, %v1444_v22  ;;  %v633_v15 = vadd.f32 %v8177_v33, %v8230_v11  ;;  %v8234_v53 = vld [vmem:[#allocation28_spill] sm:$0xff] }
  0xae   : > { %8224 = vst [vmem:[#allocation86_spill] sm:$0xff] %v6280_v59  ;;  %v6282_v23 = vld [vmem:[#allocation3 + $0x83] sm:$0xff]  ;;  %v6299_v24 = vmul.f32 %v8234_v53, %v6271_v17  ;;  %v6308_v33 = vmul.f32 %v5414_v31, %v6280_v59 }
  0xaf   : > { %8225 = vst [vmem:[#allocation84_spill] sm:$0xff] %v6282_v23  ;;  %v8227_v12 = vld [vmem:[#allocation71_spill] sm:$0xff]  ;;  %v8231_v41 = vld [vmem:[#allocation78_spill] sm:$0xff] }
  0xb0   : > { %v1137_v35 = vadd.f32 %v8227_v12, %v1109_v49  ;;  %v6286_v29 = vld [vmem:[#allocation3 + $0x84] sm:$0xff]  ;;  %v1388_v10 = vadd.f32 %v8231_v41, %v1360_v34  ;;  %8235 = vst [vmem:[#allocation16_spill] sm:$0xff] %v6299_v24  ;;  %v8237_v49 = vld [vmem:[#allocation76_spill] sm:$0xff]  ;;  %v885_v12 = vadd.f32 %v877_v19, %v857_v38  ;;  %v6312_v41 = vmul.f32 %v5417_v32, %v6282_v23  ;;  %v8245_v24 = vld [vmem:[#allocation85_spill] sm:$0xff] }
  0xb1   : > { %8228 = vst [vmem:[#allocation88_spill] sm:$0xff] %v6286_v29  ;;  %v6288_v5 = vld [vmem:[#allocation3 + $0x85] sm:$0xff]  ;;  %v6316_v34 = vmul.f32 %v5428_v36, %v6286_v29  ;;  %v681_v38 = vmul.f32 %v8209_v62, %v8020_v1  ;;  %v8243_v19 = vld [vmem:[#allocation80_spill] sm:$0xff] }
  0xb2   : > { %8229 = vst [vmem:[#allocation51_spill] sm:$0xff] %v6288_v5  ;;  %v8232_v60 = vld [vmem:[#allocation26_spill] sm:$0xff]  ;;  %v8236_v22 = vld [vmem:[#allocation27_spill] sm:$0xff]  ;;  %v1165_v6 = vadd.f32 %v8237_v49, %v1137_v35  ;;  %8240 = vst [vmem:[#allocation28_spill] sm:$0xff] %v6312_v41  ;;  %v6320_v11 = vmul.f32 %v5431_v37, %v6288_v5  ;;  %v1416_v49 = vadd.f32 %v8243_v19, %v1388_v10 }
  0xb3   : > { %v6295_v13 = vmul.f32 %v8232_v60, %v6269_v55  ;;  %v653_v61 = vmul.f32 %v8207_v63, %v8236_v22  ;;  %v6304_v8 = vld [vmem:[#allocation3 + $0x86] sm:$0xff]  ;;  %8239 = vst [vmem:[#allocation26_spill] sm:$0xff] %v6308_v33  ;;  %8241 = vst [vmem:[#allocation27_spill] sm:$0xff] %v6316_v34  ;;  %v8244_v63 = vld [vmem:[#allocation89_spill] sm:$0xff]  ;;  %v913_v32 = vadd.f32 %v905_v58, %v885_v12 }
  0xb4   : > { %8238 = vst [vmem:[#allocation78_spill] sm:$0xff] %v6304_v8  ;;  %8242 = vst [vmem:[#allocation76_spill] sm:$0xff] %v6320_v11  ;;  %v1500_v33 = vadd.f32 %v8244_v63, %v1472_v50  ;;  %v6329_v41 = vmul.f32 %v5401_v25, %v6304_v8  ;;  %v6333_v34 = vmul.f32 %v8070_v43, %v6269_v55 }
  0xb5   : > { %8233 = vst [vmem:[#allocation71_spill] sm:$0xff] %v6295_v13  ;;  %v661_v35 = vadd.f32 %v653_v61, %v633_v15  ;;  %v1193_v13 = vadd.f32 %v8245_v24, %v1165_v6  ;;  %v709_v15 = vmul.f32 %v8212_v56, %v5434_v40  ;;  %v8247_v61 = vld [vmem:[#allocation77_spill] sm:$0xff]  ;;  %v941_v10 = vadd.f32 %v933_v27, %v913_v32  ;;  %v8266_v56 = vld [vmem:[#allocation87_spill] sm:$0xff] }
  0xb6   : > { %8246 = vst [vmem:[#allocation80_spill] sm:$0xff] %v6329_v41  ;;  %v6340_v50 = vmul.f32 %v8074_v21, %v6271_v17  ;;  %v6344_v63 = vmul.f32 %v8076_v4, %v6280_v59  ;;  %v6348_v24 = vmul.f32 %v8078_v16, %v6282_v23  ;;  %v6352_v58 = vmul.f32 %v8082_v0, %v6286_v29  ;;  %v8252_v27 = vld [vmem:[#allocation81_spill] sm:$0xff] }
  0xb7   : > { %v689_v11 = vadd.f32 %v681_v38, %v661_v35  ;;  %v1221_v62 = vadd.f32 %v8247_v61, %v1193_v13  ;;  %v737_v32 = vmul.f32 %v8214_v20, %v5452_v47  ;;  %v6357_v13 = vadd.f32 %v8252_v27, %v1500_v33  ;;  %v8264_v20 = vld [vmem:[#allocation73_spill] sm:$0xff] }
  0xb8   : > { %8248 = vst [vmem:[#allocation89_spill] sm:$0xff] %v6340_v50  ;;  %8249 = vst [vmem:[#allocation85_spill] sm:$0xff] %v6344_v63  ;;  %v1445_v35 = vadd.f32 %v6226_v30, %v1416_v49  ;;  %v969_v38 = vadd.f32 %v961_v42, %v941_v10  ;;  %v6363_v19 = vmul.f32 %v5580_v2, %v6288_v5  ;;  %v6423_v63 = vld [vmem:[#allocation3 + $0x93] sm:$0xff] }
  0xb9   : > { %8250 = vst [vmem:[#allocation77_spill] sm:$0xff] %v6348_v24  ;;  %8251 = vst [vmem:[#allocation98_spill] sm:$0xff] %v6352_v58  ;;  %v717_v6 = vadd.f32 %v709_v15, %v689_v11  ;;  %v1249_v12 = vadd.f32 %v6190_v39, %v1221_v62  ;;  %v6367_v61 = vmul.f32 %v5603_v57, %v6304_v8  ;;  %v6411_v58 = vld [vmem:[#allocation3 + $0x90] sm:$0xff]  ;;  %v8278_v24 = vld [vmem:[#allocation47_spill] sm:$0xff] }
  0xba   : > { %8253 = vst [vmem:[#allocation81_spill] sm:$0xff] %v6357_v13  ;;  %8254 = vst [vmem:[#allocation99_spill] sm:$0xff] %v6363_v19  ;;  %v765_v15 = vmul.f32 %v8219_v54, %v5455_v48  ;;  %v997_v27 = vadd.f32 %v989_v28, %v969_v38  ;;  %v6374_v62 = vmul.f32 %v5732_v51, %v6269_v55  ;;  %v8263_v13 = vld [vmem:[#allocation36_spill] sm:$0xff]  ;;  %v8273_v19 = vld [vmem:[#allocation53_spill] sm:$0xff] }
  0xbb   : > { %8255 = vst [vmem:[#allocation100_spill] sm:$0xff] %v6367_v61  ;;  %v745_v11 = vadd.f32 %v737_v32, %v717_v6  ;;  %v1277_v33 = vadd.f32 %v6194_v46, %v1249_v12  ;;  %v6378_v39 = vmul.f32 %v5736_v45, %v6271_v17  ;;  %v6382_v42 = vmul.f32 %v5744_v3, %v6280_v59  ;;  %v8261_v12 = vld [vmem:[#allocation55_spill] sm:$0xff]  ;;  %v8281_v8 = vld [vmem:[#allocation42_spill] sm:$0xff]  ;;  %v8286_v59 = vld [vmem:[#allocation52_spill] sm:$0xff] }
  0xbc   : > { %8256 = vst [vmem:[#allocation101_spill] sm:$0xff] %v6374_v62  ;;  %v6386_v30 = vmul.f32 %v5748_v44, %v6282_v23  ;;  %v793_v28 = vmul.f32 %v8221_v7, %v5466_v52  ;;  %v1473_v10 = vadd.f32 %v6230_v26, %v1445_v35  ;;  %v1025_v6 = vadd.f32 %v1017_v9, %v997_v27  ;;  %v8269_v26 = vld [vmem:[#allocation33_spill] sm:$0xff]  ;;  %v8270_v35 = vld [vmem:[#allocation44_spill] sm:$0xff]  ;;  %v8271_v27 = vld [vmem:[#allocation63_spill] sm:$0xff] }
  0xbd   : > { %8257 = vst [vmem:[#allocation102_spill] sm:$0xff] %v6378_v39  ;;  %8258 = vst [vmem:[#allocation103_spill] sm:$0xff] %v6382_v42  ;;  %v773_v49 = vadd.f32 %v765_v15, %v745_v11  ;;  %v1305_v46 = vadd.f32 %v6198_v14, %v1277_v33  ;;  %v6394_v32 = vmul.f32 %v5752_v18, %v6286_v29  ;;  %v8265_v15 = vld [vmem:[#allocation41_spill] sm:$0xff]  ;;  %v8268_v33 = vld [vmem:[#allocation43_spill] sm:$0xff] }
  0xbe   : > { %8259 = vst [vmem:[#allocation104_spill] sm:$0xff] %v6386_v30  ;;  %v6398_v38 = vmul.f32 %v8261_v12, %v6288_v5  ;;  %v821_v11 = vmul.f32 %v8264_v20, %v8263_v13  ;;  %v850_v7 = vmul.f32 %v8266_v56, %v8265_v15  ;;  %v8267_v30 = vld [vmem:[#allocation62_spill] sm:$0xff]  ;;  %v878_v9 = vmul.f32 %v8269_v26, %v8268_v33  ;;  %v8277_v20 = vld [vmem:[#allocation39_spill] sm:$0xff]  ;;  %v8279_v39 = vld [vmem:[#allocation64_spill] sm:$0xff] }
  0xbf   : > { %8260 = vst [vmem:[#allocation105_spill] sm:$0xff] %v6394_v32  ;;  %v801_v54 = vadd.f32 %v793_v28, %v773_v49  ;;  %v1054_v14 = vadd.f32 %v8267_v30, %v1025_v6  ;;  %v906_v61 = vmul.f32 %v8271_v27, %v8270_v35  ;;  %v8272_v32 = vld [vmem:[#allocation45_spill] sm:$0xff]  ;;  %8274 = vst [vmem:[#allocation36_spill] sm:$0xff] %v6411_v58  ;;  %v8280_v6 = vld [vmem:[#allocation32_spill] sm:$0xff] }
  0xc0   : > { %8262 = vst [vmem:[#allocation106_spill] sm:$0xff] %v6398_v38  ;;  %v934_v41 = vmul.f32 %v8273_v19, %v8272_v32  ;;  %v6413_v49 = vld [vmem:[#allocation3 + $0x91] sm:$0xff]  ;;  %v8276_v38 = vld [vmem:[#allocation46_spill] sm:$0xff]  ;;  %v990_v30 = vmul.f32 %v8279_v39, %v8278_v24  ;;  %v1018_v5 = vmul.f32 %v8281_v8, %v8280_v6  ;;  %8283 = vst [vmem:[#allocation33_spill] sm:$0xff] %v6423_v63 }
  0xc1   : > { %8275 = vst [vmem:[#allocation41_spill] sm:$0xff] %v6413_v49  ;;  %v829_v28 = vadd.f32 %v821_v11, %v801_v54  ;;  %v962_v42 = vmul.f32 %v8277_v20, %v8276_v38  ;;  %v6421_v29 = vld [vmem:[#allocation3 + $0x92] sm:$0xff]  ;;  %v8285_v23 = vld [vmem:[#allocation23_spill] sm:$0xff]  ;;  %v1501_v35 = vadd.f32 %v8286_v59, %v1473_v10  ;;  %v4774_v24 = vld [vmem:[%s7952_s2] ss:$0 sm:$0xff]  ;;  %v6438_v33 = vmul.f32 %v8232_v60, %v6411_v58 }
  0xc2   : > { %8282 = vst [vmem:[#allocation62_spill] sm:$0xff] %v6421_v29  ;;  %v6425_v62 = vld [vmem:[#allocation3 + $0x94] sm:$0xff]  ;;  %v1333_v32 = vadd.f32 %v8285_v23, %v1305_v46  ;;  %v6442_v23 = vmul.f32 %v8234_v53, %v6413_v49  ;;  %v654_v46 = vmul.f32 %v8266_v56, %v8236_v22 }
  0xc3   : > { %8284 = vst [vmem:[#allocation107_spill] sm:$0xff] %v6425_v62  ;;  %v8287_v54 = vld [vmem:[#allocation57_spill] sm:$0xff]  ;;  %v858_v17 = vadd.f32 %v850_v7, %v829_v28  ;;  %v6459_v60 = vmul.f32 %v5428_v36, %v6425_v62  ;;  %v682_v28 = vmul.f32 %v8269_v26, %v8020_v1  ;;  %v710_v1 = vmul.f32 %v8271_v27, %v5434_v40 }
  0xc4   : > { %v1082_v11 = vadd.f32 %v8287_v54, %v1054_v14  ;;  %v6430_v50 = vld [vmem:[#allocation3 + $0x95] sm:$0xff]  ;;  %v6451_v54 = vmul.f32 %v5414_v31, %v6421_v29 }
  0xc5   : > { %8288 = vst [vmem:[#allocation23_spill] sm:$0xff] %v6430_v50  ;;  %v8289_v38 = vld [vmem:[#allocation17_spill] sm:$0xff]  ;;  %v886_v53 = vadd.f32 %v878_v9, %v858_v17 }
  0xc6   : > { %v634_v8 = vadd.f32 %v4774_v24, %v8289_v38  ;;  %v6444_v59 = vld [vmem:[#allocation3 + $0x96] sm:$0xff]  ;;  %v6463_v38 = vmul.f32 %v5431_v37, %v6430_v50  ;;  %v6478_v37 = vmul.f32 %v8070_v43, %v6411_v58 }
  0xc7   : > { %8290 = vst [vmem:[#allocation52_spill] sm:$0xff] %v6444_v59  ;;  %v8291_v10 = vld [vmem:[#allocation97_spill] sm:$0xff]  ;;  %v6474_v36 = vmul.f32 %v5401_v25, %v6444_v59  ;;  %v914_v17 = vadd.f32 %v906_v61, %v886_v53  ;;  %v6493_v25 = vmul.f32 %v8078_v16, %v6423_v63  ;;  %v8299_v53 = vld [vmem:[#allocation59_spill] sm:$0xff] }
  0xc8   : > { %v1110_v14 = vadd.f32 %v8291_v10, %v1082_v11  ;;  %v8292_v7 = vld [vmem:[#allocation29_spill] sm:$0xff]  ;;  %v662_v22 = vadd.f32 %v654_v46, %v634_v8  ;;  %v8294_v11 = vld [vmem:[#allocation50_spill] sm:$0xff]  ;;  %v6489_v46 = vmul.f32 %v8076_v4, %v6421_v29 }
  0xc9   : > { %v6455_v24 = vmul.f32 %v8292_v7, %v6423_v63  ;;  %v1361_v31 = vadd.f32 %v8294_v11, %v1333_v32  ;;  %v8295_v10 = vld [vmem:[#allocation61_spill] sm:$0xff]  ;;  %v8297_v7 = vld [vmem:[#allocation90_spill] sm:$0xff]  ;;  %v942_v61 = vadd.f32 %v934_v41, %v914_v17  ;;  %v6513_v17 = vmul.f32 %v5732_v51, %v6411_v58 }
  0xca   : > { %v6469_v56 = vadd.f32 %v8295_v10, %v1501_v35  ;;  %v690_v8 = vadd.f32 %v682_v28, %v662_v22  ;;  %v8298_v9 = vld [vmem:[#allocation49_spill] sm:$0xff]  ;;  %v6485_v35 = vmul.f32 %v8074_v21, %v6413_v49  ;;  %v8300_v28 = vld [vmem:[#allocation40_spill] sm:$0xff]  ;;  %v6505_v10 = vmul.f32 %v5580_v2, %v6430_v50 }
  0xcb   : > { %8293 = vst [vmem:[#allocation57_spill] sm:$0xff] %v6455_v24  ;;  %v1138_v24 = vadd.f32 %v8297_v7, %v1110_v14  ;;  %v6497_v14 = vmul.f32 %v8082_v0, %v6425_v62  ;;  %v1389_v22 = vadd.f32 %v8299_v53, %v1361_v31  ;;  %v6509_v7 = vmul.f32 %v5603_v57, %v6444_v59  ;;  %v8302_v31 = vld [vmem:[#allocation15_spill] sm:$0xff]  ;;  %v8321_v58 = vld [vmem:[#allocation101_spill] sm:$0xff] }
  0xcc   : > { %8296 = vst [vmem:[#allocation17_spill] sm:$0xff] %v6469_v56  ;;  %v718_v40 = vadd.f32 %v710_v1, %v690_v8  ;;  %v970_v41 = vadd.f32 %v962_v42, %v942_v61  ;;  %v6528_v42 = vmul.f32 %v5748_v44, %v6423_v63  ;;  %v6539_v53 = vld [vmem:[%s7947_s21 + $0x28] sm:$0x7f] }
  0xcd   : > { %v1166_v32 = vadd.f32 %v8298_v9, %v1138_v24  ;;  %v738_v24 = vmul.f32 %v8273_v19, %v5452_v47  ;;  %8301 = vst [vmem:[#allocation97_spill] sm:$0xff] %v6509_v7  ;;  %v766_v47 = vmul.f32 %v8277_v20, %v5455_v48  ;;  %v6520_v9 = vmul.f32 %v5736_v45, %v6413_v49  ;;  %v8308_v59 = vld [vmem:[#allocation43_spill] sm:$0xff]  ;;  %v8331_v19 = vld [vmem:[#allocation21_spill] sm:$0xff] }
  0xce   : > { %8304 = vst [vmem:[#allocation50_spill] sm:$0xff] %v6528_v42  ;;  %v998_v61 = vadd.f32 %v990_v30, %v970_v41  ;;  %v6545_v30 = vmul.f32 %v8261_v12, %v6430_v50  ;;  %v822_v41 = vmul.f32 %v8280_v6, %v8263_v13  ;;  %v8314_v49 = vld [vmem:[#allocation79_spill] sm:$0xff]  ;;  %v8320_v42 = vld [vmem:[#allocation84_spill] sm:$0xff] }
  0xcf   : > { %v1194_v11 = vadd.f32 %v8300_v28, %v1166_v32  ;;  %v746_v8 = vadd.f32 %v738_v24, %v718_v40  ;;  %v6524_v32 = vmul.f32 %v5744_v3, %v6421_v29  ;;  %v6532_v40 = vmul.f32 %v5752_v18, %v6425_v62  ;;  %v8306_v28 = vld [vmem:[#allocation54_spill] sm:$0xff]  ;;  %v8324_v6 = vld [vmem:[#allocation19_spill] sm:$0xff] }
  0xd0   : > { %v794_v24 = vmul.f32 %v8279_v39, %v5466_v52  ;;  %8307 = vst [vmem:[#allocation90_spill] sm:$0xff] %v6545_v30  ;;  %v851_v52 = vmul.f32 %v6269_v55, %v8265_v15  ;;  %v8309_v62 = vld [vmem:[#allocation70_spill] sm:$0xff]  ;;  %v8317_v15 = vld [vmem:[#allocation44_spill] sm:$0xff]  ;;  %v8330_v7 = vld [vmem:[#allocation51_spill] sm:$0xff]  ;;  %v6590_v18 = vrot.slane %v6539_v53, %v8331_v19 }
  0xd1   : > { %v1222_v1 = vadd.f32 %v8302_v31, %v1194_v11  ;;  %8303 = vst [vmem:[#allocation29_spill] sm:$0xff] %v6524_v32  ;;  %8305 = vst [vmem:[#allocation61_spill] sm:$0xff] %v6532_v40  ;;  %v774_v48 = vadd.f32 %v766_v47, %v746_v8  ;;  %v1417_v11 = vadd.f32 %v8306_v28, %v1389_v22  ;;  %v8310_v40 = vld [vmem:[#allocation89_spill] sm:$0xff]  ;;  %v8311_v22 = vld [vmem:[#allocation38_spill] sm:$0xff] }
  0xd2   : > { %v1026_v8 = vadd.f32 %v1018_v5, %v998_v61  ;;  %v879_v63 = vmul.f32 %v8309_v62, %v8308_v59  ;;  %v8312_v28 = vld [vmem:[#allocation91_spill] sm:$0xff]  ;;  %v8315_v30 = vld [vmem:[#allocation18_spill] sm:$0xff]  ;;  %v8319_v59 = vld [vmem:[#allocation45_spill] sm:$0xff] }
  0xd3   : > { %v1250_v31 = vadd.f32 %v6333_v34, %v1222_v1  ;;  %v802_v47 = vadd.f32 %v794_v24, %v774_v48  ;;  %v1554_v34 = vadd.f32 %v8312_v28, %v8311_v22  ;;  %v8313_v1 = vld [vmem:[#allocation20_spill] sm:$0xff]  ;;  %v6562_v13 = vrot.slane %v6539_v53, %v8315_v30  ;;  %v8316_v5 = vld [vmem:[#allocation71_spill] sm:$0xff]  ;;  %v8318_v24 = vld [vmem:[#allocation86_spill] sm:$0xff] }
  0xd4   : > { %v6558_v50 = vrot.slane %v8314_v49, %v8313_v1  ;;  %v1055_v61 = vadd.f32 %v8316_v5, %v1026_v8  ;;  %v907_v12 = vmul.f32 %v8318_v24, %v8317_v15  ;;  %v1446_v22 = vadd.f32 %v8321_v58, %v1417_v11  ;;  %v6570_v28 = vld [vmem:[#allocation3 + $0xa0] sm:$0xff]  ;;  %v8322_v49 = vld [vmem:[#allocation92_spill] sm:$0xff]  ;;  %v8329_v11 = vld [vmem:[#allocation47_spill] sm:$0xff] }
  0xd5   : > { %v1278_v29 = vadd.f32 %v8310_v40, %v1250_v31  ;;  %v830_v48 = vadd.f32 %v822_v41, %v802_v47  ;;  %v935_v40 = vmul.f32 %v8320_v42, %v8319_v59  ;;  %v1619_v31 = vld [vmem:[#allocation3 + $0x50] sm:$0xff]  ;;  %v1582_v62 = vadd.f32 %v8322_v49, %v1554_v34  ;;  %v8325_v41 = vld [vmem:[#allocation85_spill] sm:$0xff]  ;;  %v8327_v59 = vld [vmem:[#allocation46_spill] sm:$0xff] }
  0xd6   : > { %v8323_v55 = vld [vmem:[#allocation72_spill] sm:$0xff]  ;;  %v6577_v8 = vrot.slane %v6539_v53, %v8324_v6  ;;  %v991_v56 = vmul.f32 %v8330_v7, %v8329_v11  ;;  %v6585_v34 = vld [vmem:[#allocation3 + $0xa1] sm:$0xff] }
  0xd7   : > { %v1602_v39 = vmul.f32 %v6558_v50, %v8323_v55  ;;  %v1306_v47 = vadd.f32 %v8325_v41, %v1278_v29  ;;  %v8326_v5 = vld [vmem:[#allocation16_spill] sm:$0xff]  ;;  %v859_v24 = vadd.f32 %v851_v52, %v830_v48  ;;  %v1631_v55 = vmul.f32 %v6562_v13, %v1619_v31  ;;  %v8332_v29 = vld [vmem:[#allocation26_spill] sm:$0xff] }
  0xd8   : > { %v1083_v15 = vadd.f32 %v8326_v5, %v1055_v61  ;;  %v8328_v42 = vld [vmem:[#allocation88_spill] sm:$0xff]  ;;  %v8333_v52 = vld [vmem:[#allocation78_spill] sm:$0xff]  ;;  %v6615_v44 = vmul.f32 %v8074_v21, %v6585_v34 }
  0xd9   : > { %v963_v20 = vmul.f32 %v8328_v42, %v8327_v59  ;;  %v1647_v58 = vld [vmem:[#allocation3 + $0x51] sm:$0xff]  ;;  %v1610_v49 = vadd.f32 %v1602_v39, %v1582_v62  ;;  %v887_v61 = vadd.f32 %v879_v63, %v859_v24  ;;  %v8334_v48 = vld [vmem:[#allocation42_spill] sm:$0xff]  ;;  %v6597_v59 = vmul.f32 %v8070_v43, %v6570_v28 }
  0xda   : > { %v1111_v41 = vadd.f32 %v8332_v29, %v1083_v15  ;;  %v1019_v5 = vmul.f32 %v8334_v48, %v8333_v52  ;;  %v6599_v11 = vld [vmem:[#allocation3 + $0xa2] sm:$0xff]  ;;  %v1675_v7 = vld [vmem:[#allocation3 + $0x52] sm:$0xff]  ;;  %v1659_v15 = vmul.f32 %v6577_v8, %v1647_v58  ;;  %8340 = vst [vmem:[#allocation59_spill] sm:$0xff] %v6615_v44 }
  0xdb   : > { %8335 = vst [vmem:[#allocation49_spill] sm:$0xff] %v6597_v59  ;;  %v8336_v62 = vld [vmem:[#allocation102_spill] sm:$0xff]  ;;  %v1639_v32 = vadd.f32 %v1631_v55, %v1610_v49  ;;  %v8338_v29 = vld [vmem:[#allocation77_spill] sm:$0xff]  ;;  %v8339_v43 = vld [vmem:[#allocation28_spill] sm:$0xff]  ;;  %v915_v27 = vadd.f32 %v907_v12, %v887_v61  ;;  %v1687_v55 = vmul.f32 %v6590_v18, %v1675_v7 }
  0xdc   : > { %v1474_v39 = vadd.f32 %v8336_v62, %v1446_v22  ;;  %v6602_v31 = vld [vmem:[#allocation3 + $0xa3] sm:$0xff]  ;;  %v1334_v48 = vadd.f32 %v8338_v29, %v1306_v47  ;;  %v1139_v52 = vadd.f32 %v8339_v43, %v1111_v41  ;;  %v1703_v22 = vld [vmem:[#allocation3 + $0x53] sm:$0xff]  ;;  %v6619_v62 = vmul.f32 %v8076_v4, %v6599_v11 }
  0xdd   : > { %v6604_v42 = vld [vmem:[#allocation3 + $0xa4] sm:$0xff]  ;;  %v1667_v58 = vadd.f32 %v1659_v15, %v1639_v32  ;;  %v8343_v59 = vld [vmem:[#allocation24_spill] sm:$0xff]  ;;  %v943_v61 = vadd.f32 %v935_v40, %v915_v27  ;;  %v6631_v21 = vmul.f32 %v8078_v16, %v6602_v31  ;;  %v8348_v44 = vld [vmem:[#allocation25_spill] sm:$0xff] }
  0xde   : > { %v8337_v63 = vld [vmem:[#allocation22_spill] sm:$0xff]  ;;  %8341 = vst [vmem:[#allocation40_spill] sm:$0xff] %v6619_v62  ;;  %v6626_v47 = vrot.slane %v6539_v53, %v8343_v59  ;;  %v8344_v41 = vld [vmem:[#allocation27_spill] sm:$0xff]  ;;  %v6635_v4 = vmul.f32 %v8082_v0, %v6604_v42  ;;  %v1731_v32 = vld [vmem:[#allocation3 + $0x54] sm:$0xff] }
  0xdf   : > { %v6609_v24 = vrot.slane %v6539_v53, %v8337_v63  ;;  %v6621_v49 = vld [vmem:[#allocation3 + $0xa5] sm:$0xff]  ;;  %v1167_v12 = vadd.f32 %v8344_v41, %v1139_v52  ;;  %8345 = vst [vmem:[#allocation54_spill] sm:$0xff] %v6631_v21  ;;  %v1695_v43 = vadd.f32 %v1687_v55, %v1667_v58  ;;  %v6643_v52 = vrot.slane %v6539_v53, %v8348_v44  ;;  %v8350_v16 = vld [vmem:[#allocation76_spill] sm:$0xff] }
  0xe0   : > { %8342 = vst [vmem:[#allocation15_spill] sm:$0xff] %v6621_v49  ;;  %v6637_v29 = vld [vmem:[#allocation3 + $0xa6] sm:$0xff]  ;;  %v971_v21 = vadd.f32 %v963_v20, %v943_v61  ;;  %v6649_v0 = vmul.f32 %v5580_v2, %v6621_v49  ;;  %v1759_v58 = vld [vmem:[#allocation3 + $0x55] sm:$0xff]  ;;  %v6663_v20 = vrot.slane %v6539_v53, %v8313_v1 }
  0xe1   : > { %8346 = vst [vmem:[#allocation43_spill] sm:$0xff] %v6637_v29  ;;  %v8347_v15 = vld [vmem:[#allocation103_spill] sm:$0xff]  ;;  %v1715_v62 = vmul.f32 %v6609_v24, %v1703_v22  ;;  %v8349_v27 = vld [vmem:[#allocation98_spill] sm:$0xff]  ;;  %v1195_v41 = vadd.f32 %v8350_v16, %v1167_v12  ;;  %v6658_v22 = vmul.f32 %v5603_v57, %v6637_v29  ;;  %v8352_v12 = vld [vmem:[#allocation80_spill] sm:$0xff]  ;;  %v6674_v57 = vmul.f32 %v5736_v45, %v6585_v34 }
  0xe2   : > { %v1502_v7 = vadd.f32 %v8347_v15, %v1474_v39  ;;  %v1362_v40 = vadd.f32 %v8349_v27, %v1334_v48  ;;  %8351 = vst [vmem:[#allocation89_spill] sm:$0xff] %v6649_v0  ;;  %v6654_v39 = vld [vmem:[%s7947_s21 + $0x30] sm:$0x7f]  ;;  %v1743_v48 = vmul.f32 %v6626_v47, %v1731_v32  ;;  %v999_v61 = vadd.f32 %v991_v56, %v971_v21  ;;  %v8353_v16 = vld [vmem:[#allocation35_spill] sm:$0xff]  ;;  %v1620_v29 = vld [vmem:[#allocation3 + $0x60] sm:$0xff] }
  0xe3   : > { %v1723_v55 = vadd.f32 %v1715_v62, %v1695_v43  ;;  %v1223_v2 = vadd.f32 %v8352_v12, %v1195_v41  ;;  %v6668_v15 = vmul.f32 %v5732_v51, %v6570_v28  ;;  %v1787_v27 = vld [vmem:[#allocation3 + $0x56] sm:$0xff]  ;;  %v1771_v32 = vmul.f32 %v6643_v52, %v1759_v58  ;;  %v8355_v56 = vld [vmem:[#allocation99_spill] sm:$0xff]  ;;  %v8356_v41 = vld [vmem:[#allocation58_spill] sm:$0xff] }
  0xe4   : > { %v8354_v49 = vld [vmem:[#allocation68_spill] sm:$0xff]  ;;  %v6679_v53 = vrot.slane %v6654_v39, %v8315_v30  ;;  %v1390_v21 = vadd.f32 %v8355_v56, %v1362_v40  ;;  %v1027_v43 = vadd.f32 %v1019_v5, %v999_v61  ;;  %v6687_v45 = vrot.slane %v6654_v39, %v8324_v6 }
  0xe5   : > { %v1555_v0 = vadd.f32 %v8354_v49, %v8353_v16  ;;  %v1751_v62 = vadd.f32 %v1743_v48, %v1723_v55  ;;  %v1251_v51 = vadd.f32 %v6478_v37, %v1223_v2  ;;  %v1799_v16 = vmul.f32 %v6663_v20, %v1787_v27  ;;  %v8357_v58 = vld [vmem:[#allocation56_spill] sm:$0xff]  ;;  %v8358_v2 = vld [vmem:[#allocation69_spill] sm:$0xff] }
  0xe6   : > { %v1603_v55 = vmul.f32 %v6558_v50, %v8357_v58  ;;  %v1056_v40 = vadd.f32 %v6438_v33, %v1027_v43  ;;  %v6695_v37 = vrot.slane %v6654_v39, %v8331_v19  ;;  %v6699_v5 = vrot.slane %v6654_v39, %v8337_v63  ;;  %v8361_v43 = vld [vmem:[#allocation82_spill] sm:$0xff] }
  0xe7   : > { %v1583_v12 = vadd.f32 %v8356_v41, %v1555_v0  ;;  %v1779_v49 = vadd.f32 %v1771_v32, %v1751_v62  ;;  %v1279_v30 = vadd.f32 %v6485_v35, %v1251_v51  ;;  %v1648_v0 = vld [vmem:[#allocation3 + $0x61] sm:$0xff]  ;;  %v1828_v6 = vmul.f32 %v6679_v53, %v8358_v2  ;;  %v8359_v62 = vld [vmem:[#allocation100_spill] sm:$0xff]  ;;  %v8364_v2 = vld [vmem:[#allocation57_spill] sm:$0xff] }
  0xe8   : > { %v1632_v27 = vmul.f32 %v6562_v13, %v1620_v29  ;;  %v1418_v35 = vadd.f32 %v8359_v62, %v1390_v21  ;;  %v8360_v32 = vld [vmem:[#allocation104_spill] sm:$0xff]  ;;  %v1084_v56 = vadd.f32 %v6442_v23, %v1056_v40  ;;  %v1676_v51 = vld [vmem:[#allocation3 + $0x62] sm:$0xff]  ;;  %v1856_v41 = vmul.f32 %v6687_v45, %v8361_v43 }
  0xe9   : > { %v1807_v48 = vadd.f32 %v1799_v16, %v1779_v49  ;;  %v1611_v61 = vadd.f32 %v1603_v55, %v1583_v12  ;;  %v6706_v33 = vadd.f32 %v8360_v32, %v1502_v7  ;;  %v1307_v19 = vadd.f32 %v6489_v46, %v1279_v30  ;;  %v8362_v7 = vld [vmem:[#allocation74_spill] sm:$0xff]  ;;  %v8363_v55 = vld [vmem:[#allocation83_spill] sm:$0xff] }
  0xea   : > { %v1660_v16 = vmul.f32 %v6577_v8, %v1648_v0  ;;  %v1112_v12 = vadd.f32 %v6451_v54, %v1084_v56  ;;  %v6716_v29 = vmul.f32 %v5744_v3, %v6599_v11  ;;  %v1884_v21 = vmul.f32 %v6695_v37, %v8362_v7  ;;  %v1704_v46 = vld [vmem:[#allocation3 + $0x63] sm:$0xff]  ;;  %v8365_v56 = vld [vmem:[#allocation81_spill] sm:$0xff] }
  0xeb   : > { %v1836_v63 = vadd.f32 %v1828_v6, %v1807_v48  ;;  %v1640_v49 = vadd.f32 %v1632_v27, %v1611_v61  ;;  %v6722_v23 = vrot.slane %v6654_v39, %v8343_v59  ;;  %v1912_v30 = vmul.f32 %v6699_v5, %v8363_v55  ;;  %v1732_v54 = vld [vmem:[#allocation3 + $0x64] sm:$0xff]  ;;  %v8369_v7 = vld [vmem:[#allocation73_spill] sm:$0xff] }
  0xec   : > { %v1688_v0 = vmul.f32 %v6590_v18, %v1676_v51  ;;  %v1335_v48 = vadd.f32 %v6493_v25, %v1307_v19  ;;  %v1447_v3 = vadd.f32 %v6513_v17, %v1418_v35  ;;  %v1140_v6 = vadd.f32 %v8364_v2, %v1112_v12  ;;  %v1760_v32 = vld [vmem:[#allocation3 + $0x65] sm:$0xff] }
  0xed   : > { %v1864_v58 = vadd.f32 %v1856_v41, %v1836_v63  ;;  %v1668_v40 = vadd.f32 %v1660_v16, %v1640_v49  ;;  %v6732_v61 = vrot.slane %v6654_v39, %v8348_v44  ;;  %v1716_v62 = vmul.f32 %v6609_v24, %v1704_v46  ;;  %v8366_v63 = vld [vmem:[#allocation48_spill] sm:$0xff]  ;;  %v8367_v41 = vld [vmem:[#allocation14_spill] sm:$0xff] }
  0xee   : > { %v1556_v43 = vadd.f32 %v8366_v63, %v8365_v56  ;;  %v1168_v51 = vadd.f32 %v6459_v60, %v1140_v6  ;;  %v1940_v25 = vmul.f32 %v6722_v23, %v8367_v41  ;;  %v6742_v17 = vrot.slane %v6654_v39, %v8313_v1  ;;  %v1984_v19 = vld [vmem:[#allocation3 + $0x66] sm:$0xff]  ;;  %v8368_v16 = vld [vmem:[#allocation60_spill] sm:$0xff]  ;;  %v8372_v56 = vld [vmem:[#allocation49_spill] sm:$0xff] }
  0xef   : > { %v1892_v59 = vadd.f32 %v1884_v21, %v1864_v58  ;;  %v1696_v27 = vadd.f32 %v1688_v0, %v1668_v40  ;;  %v1744_v44 = vmul.f32 %v6626_v47, %v1732_v54  ;;  %v1604_v21 = vmul.f32 %v6558_v50, %v8369_v7  ;;  %v8370_v58 = vld [vmem:[#allocation75_spill] sm:$0xff] }
  0xf0   : > { %v1584_v12 = vadd.f32 %v8368_v16, %v1556_v43  ;;  %v1363_v46 = vadd.f32 %v6497_v14, %v1335_v48  ;;  %v1196_v60 = vadd.f32 %v6463_v38, %v1168_v51  ;;  %v1968_v55 = vmul.f32 %v6732_v61, %v8370_v58  ;;  %v8373_v43 = vld [vmem:[#allocation31_spill] sm:$0xff] }
  0xf1   : > { %v1920_v35 = vadd.f32 %v1912_v30, %v1892_v59  ;;  %v1724_v49 = vadd.f32 %v1716_v62, %v1696_v27  ;;  %v1772_v1 = vmul.f32 %v6643_v52, %v1760_v32  ;;  %v8371_v30 = vld [vmem:[#allocation87_spill] sm:$0xff]  ;;  %v1475_v2 = vadd.f32 %v6520_v9, %v1447_v3 }
  0xf2   : > { %v1612_v0 = vadd.f32 %v1604_v21, %v1584_v12  ;;  %v1633_v54 = vmul.f32 %v6562_v13, %v8371_v30  ;;  %v1224_v6 = vadd.f32 %v6474_v36, %v1196_v60  ;;  %v1996_v59 = vmul.f32 %v6742_v17, %v1984_v19  ;;  %v8378_v60 = vld [vmem:[#allocation53_spill] sm:$0xff] }
  0xf3   : > { %v1948_v39 = vadd.f32 %v1940_v25, %v1920_v35  ;;  %v1752_v40 = vadd.f32 %v1744_v44, %v1724_v49  ;;  %v1800_v14 = vmul.f32 %v1984_v19, %v6663_v20  ;;  %v1661_v62 = vmul.f32 %v6577_v8, %v8269_v26  ;;  %v8374_v25 = vld [vmem:[#allocation63_spill] sm:$0xff]  ;;  %v8375_v35 = vld [vmem:[#allocation29_spill] sm:$0xff] }
  0xf4   : > { %v1641_v27 = vadd.f32 %v1633_v54, %v1612_v0  ;;  %v1391_v32 = vadd.f32 %v6505_v10, %v1363_v46  ;;  %v1252_v63 = vadd.f32 %v8372_v56, %v1224_v6  ;;  %v6765_v51 = vmul.f32 %v8373_v43, %v6602_v31  ;;  %v8376_v49 = vld [vmem:[#allocation59_spill] sm:$0xff]  ;;  %v8377_v10 = vld [vmem:[#allocation30_spill] sm:$0xff] }
  0xf5   : > { %v1976_v38 = vadd.f32 %v1968_v55, %v1948_v39  ;;  %v1780_v48 = vadd.f32 %v1772_v1, %v1752_v40  ;;  %v1829_v36 = vmul.f32 %v6679_v53, %v8371_v30  ;;  %v1689_v44 = vmul.f32 %v6590_v18, %v8374_v25  ;;  %v8379_v55 = vld [vmem:[#allocation17_spill] sm:$0xff]  ;;  %v8380_v1 = vld [vmem:[#allocation67_spill] sm:$0xff]  ;;  %v8382_v30 = vld [vmem:[#allocation40_spill] sm:$0xff] }
  0xf6   : > { %v1669_v41 = vadd.f32 %v1661_v62, %v1641_v27  ;;  %v1503_v19 = vadd.f32 %v8375_v35, %v1475_v2  ;;  %v1280_v16 = vadd.f32 %v8376_v49, %v1252_v63  ;;  %v6775_v12 = vmul.f32 %v8377_v10, %v6604_v42  ;;  %v8381_v40 = vld [vmem:[#allocation97_spill] sm:$0xff]  ;;  %v8383_v6 = vld [vmem:[#allocation39_spill] sm:$0xff]  ;;  %v8385_v27 = vld [vmem:[#allocation32_spill] sm:$0xff] }
  0xf7   : > { %v2004_v9 = vadd.f32 %v1996_v59, %v1976_v38  ;;  %v1808_v3 = vadd.f32 %v1800_v14, %v1780_v48  ;;  %v1857_v7 = vmul.f32 %v6687_v45, %v8269_v26  ;;  %v1717_v58 = vmul.f32 %v6609_v24, %v8378_v60  ;;  %v8384_v38 = vld [vmem:[#allocation66_spill] sm:$0xff] }
  0xf8   : > { %v1697_v46 = vadd.f32 %v1689_v44, %v1669_v41  ;;  %v1557_v39 = vadd.f32 %v8380_v1, %v8379_v55  ;;  %v1419_v0 = vadd.f32 %v8381_v40, %v1391_v32  ;;  %v1308_v54 = vadd.f32 %v8382_v30, %v1280_v16  ;;  %v8386_v56 = vld [vmem:[#allocation54_spill] sm:$0xff]  ;;  %v8388_v44 = vld [vmem:[#allocation65_spill] sm:$0xff] }
  0xf9   : > { %2012 = vst.msk [vmem:[#allocation2] sm:$0xff] %vm572_vm0, %v2004_v9  ;;  %v1837_v21 = vadd.f32 %v1829_v36, %v1808_v3  ;;  %v1885_v2 = vmul.f32 %v6695_v37, %v8374_v25  ;;  %v1745_v26 = vmul.f32 %v6626_v47, %v8383_v6  ;;  %v1605_v62 = vmul.f32 %v6558_v50, %v8385_v27  ;;  %v8387_v36 = vld [vmem:[#allocation64_spill] sm:$0xff]  ;;  %v8390_v1 = vld [vmem:[#allocation89_spill] sm:$0xff] }
  0xfa   : > { %v1725_v14 = vadd.f32 %v1717_v58, %v1697_v46  ;;  %v1585_v48 = vadd.f32 %v8384_v38, %v1557_v39  ;;  %v1336_v63 = vadd.f32 %v8386_v56, %v1308_v54  ;;  %v1913_v32 = vmul.f32 %v6699_v5, %v8378_v60  ;;  %v8389_v58 = vld [vmem:[#allocation70_spill] sm:$0xff]  ;;  %v8393_v38 = vld [vmem:[#allocation84_spill] sm:$0xff] }
  0xfb   : > { %v1865_v59 = vadd.f32 %v1857_v7, %v1837_v21  ;;  %v1941_v43 = vmul.f32 %v6722_v23, %v8383_v6  ;;  %v1773_v9 = vmul.f32 %v6643_v52, %v8387_v36  ;;  %v1634_v35 = vmul.f32 %v6562_v13, %v8388_v44  ;;  %v8392_v6 = vld [vmem:[#allocation105_spill] sm:$0xff] }
  0xfc   : > { %v1753_v41 = vadd.f32 %v1745_v26, %v1725_v14  ;;  %v1613_v25 = vadd.f32 %v1605_v62, %v1585_v48  ;;  %v1364_v49 = vadd.f32 %v6635_v4, %v1336_v63  ;;  %v1448_v16 = vadd.f32 %v6668_v15, %v1419_v0  ;;  %v8391_v15 = vld [vmem:[#allocation86_spill] sm:$0xff] }
  0xfd   : > { %v1893_v3 = vadd.f32 %v1885_v2, %v1865_v59  ;;  %v1969_v10 = vmul.f32 %v6732_v61, %v8387_v36  ;;  %v1801_v7 = vmul.f32 %v6663_v20, %v8385_v27  ;;  %v1662_v55 = vmul.f32 %v6577_v8, %v8389_v58 }
  0xfe   : > { %v1781_v46 = vadd.f32 %v1773_v9, %v1753_v41  ;;  %v1642_v60 = vadd.f32 %v1634_v35, %v1613_v25  ;;  %v1392_v39 = vadd.f32 %v8390_v1, %v1364_v49  ;;  %v1997_v40 = vmul.f32 %v6742_v17, %v8385_v27  ;;  %v8394_v27 = vld [vmem:[#allocation78_spill] sm:$0xff]  ;;  %v8397_v41 = vld [vmem:[#allocation36_spill] sm:$0xff] }
  0xff   : > { %v1921_v21 = vadd.f32 %v1913_v32, %v1893_v3  ;;  %v1830_v4 = vmul.f32 %v6679_v53, %v8388_v44  ;;  %v1690_v0 = vmul.f32 %v6590_v18, %v8391_v15  ;;  %v1558_v26 = vadd.f32 %v8392_v6, %v6706_v33 }
 0x100   : > { %v1809_v54 = vadd.f32 %v1801_v7, %v1781_v46  ;;  %v1670_v2 = vadd.f32 %v1662_v55, %v1642_v60  ;;  %v1476_v59 = vadd.f32 %v6674_v57, %v1448_v16  ;;  %v1858_v14 = vmul.f32 %v6687_v45, %v8389_v58  ;;  %v8396_v57 = vld [vmem:[#allocation88_spill] sm:$0xff]  ;;  %v8400_v46 = vld [vmem:[#allocation55_spill] sm:$0xff] }
 0x101   : > { %v1949_v30 = vadd.f32 %v1941_v43, %v1921_v21  ;;  %v1718_v48 = vmul.f32 %v6609_v24, %v8393_v38  ;;  %v1606_v62 = vmul.f32 %v6558_v50, %v8394_v27  ;;  %v8395_v43 = vld [vmem:[#allocation106_spill] sm:$0xff]  ;;  %v1420_v9 = vadd.f32 %v6658_v22, %v1392_v39  ;;  %v8399_v21 = vld [vmem:[#allocation15_spill] sm:$0xff] }
 0x102   : > { %v1838_v63 = vadd.f32 %v1830_v4, %v1809_v54  ;;  %v1698_v32 = vadd.f32 %v1690_v0, %v1670_v2  ;;  %v1586_v36 = vadd.f32 %v8395_v43, %v1558_v26  ;;  %v1886_v33 = vmul.f32 %v6695_v37, %v8391_v15  ;;  %v8401_v58 = vld [vmem:[#allocation51_spill] sm:$0xff] }
 0x103   : > { %v1977_v56 = vadd.f32 %v1969_v10, %v1949_v30  ;;  %v1746_v3 = vmul.f32 %v6626_v47, %v8396_v57  ;;  %v1635_v25 = vmul.f32 %v6562_v13, %v8397_v41  ;;  %v8398_v10 = vld [vmem:[#allocation50_spill] sm:$0xff]  ;;  %v1580_v60 = vmul.f32 %v8400_v46, %v8399_v21 }
 0x104   : > { %v1866_v35 = vadd.f32 %v1858_v14, %v1838_v63  ;;  %v1726_v49 = vadd.f32 %v1718_v48, %v1698_v32  ;;  %v1614_v16 = vadd.f32 %v1606_v62, %v1586_v36  ;;  %v1531_v7 = vadd.f32 %v8398_v10, %v1503_v19  ;;  %v8403_v19 = vld [vmem:[#allocation34_spill] sm:$0xff] }
 0x105   : > { %v2005_v44 = vadd.f32 %v1997_v40, %v1977_v56  ;;  %v1914_v22 = vmul.f32 %v6699_v5, %v8393_v38  ;;  %v1774_v55 = vmul.f32 %v6643_v52, %v8401_v58  ;;  %v8402_v40 = vld [vmem:[#allocation41_spill] sm:$0xff]  ;;  %v1504_v0 = vadd.f32 %v6716_v29, %v1476_v59  ;;  %v8404_v38 = vld [vmem:[#allocation62_spill] sm:$0xff] }
 0x106   : > { %v1894_v1 = vadd.f32 %v1886_v33, %v1866_v35  ;;  %v1754_v39 = vadd.f32 %v1746_v3, %v1726_v49  ;;  %v1643_v4 = vadd.f32 %v1635_v25, %v1614_v16  ;;  %v1663_v15 = vmul.f32 %v6577_v8, %v8402_v40  ;;  %v8405_v56 = vld [vmem:[#allocation61_spill] sm:$0xff]  ;;  %v8407_v3 = vld [vmem:[#allocation107_spill] sm:$0xff] }
 0x107   : > { %2013 = vst.msk [vmem:[#allocation2 + $0x8] sm:$0xff] %vm572_vm0, %v2005_v44  ;;  %v1449_v30 = vadd.f32 %v8403_v19, %v1420_v9  ;;  %v1942_v54 = vmul.f32 %v6722_v23, %v8396_v57  ;;  %v1802_v2 = vmul.f32 %v6663_v20, %v8394_v27  ;;  %v1691_v48 = vmul.f32 %v6590_v18, %v8404_v38  ;;  %v8406_v9 = vld [vmem:[#allocation33_spill] sm:$0xff]  ;;  %v8408_v44 = vld [vmem:[#allocation90_spill] sm:$0xff] }
 0x108   : > { %v1922_v6 = vadd.f32 %v1914_v22, %v1894_v1  ;;  %v1782_v26 = vadd.f32 %v1774_v55, %v1754_v39  ;;  %v1671_v14 = vadd.f32 %v1663_v15, %v1643_v4  ;;  %v1970_v62 = vmul.f32 %v6732_v61, %v8401_v58  ;;  %v8411_v15 = vld [vmem:[#allocation23_spill] sm:$0xff] }
 0x109   : > { %v1998_v29 = vmul.f32 %v6742_v17, %v8394_v27  ;;  %v1831_v59 = vmul.f32 %v6679_v53, %v8397_v41  ;;  %v1559_v63 = vadd.f32 %v8405_v56, %v1531_v7  ;;  %v1719_v33 = vmul.f32 %v6609_v24, %v8406_v9  ;;  %v8409_v27 = vld [vmem:[#allocation52_spill] sm:$0xff]  ;;  %v8410_v41 = vld [vmem:[#allocation93_spill] sm:$0xff] }
 0x10a   : > { %v1950_v32 = vadd.f32 %v1942_v54, %v1922_v6  ;;  %v1810_v43 = vadd.f32 %v1802_v2, %v1782_v26  ;;  %v1699_v36 = vadd.f32 %v1691_v48, %v1671_v14  ;;  %v1859_v57 = vmul.f32 %v6687_v45, %v8402_v40  ;;  %v8412_v2 = vld [vmem:[#allocation94_spill] sm:$0xff] }
 0x10b   : > { %v1747_v25 = vmul.f32 %v6626_v47, %v8407_v3  ;;  %v1587_v35 = vadd.f32 %v8408_v44, %v1559_v63  ;;  %v1607_v49 = vmul.f32 %v6558_v50, %v8409_v27  ;;  %v1477_v16 = vadd.f32 %v8410_v41, %v1449_v30  ;;  %v8414_v44 = vld [vmem:[#allocation95_spill] sm:$0xff]  ;;  %v1849_v41 = vld [vmem:[#allocation3 + $0xb1] sm:$0xff] }
 0x10c   : > { %v1978_v10 = vadd.f32 %v1970_v62, %v1950_v32  ;;  %v1839_v7 = vadd.f32 %v1831_v59, %v1810_v43  ;;  %v1727_v46 = vadd.f32 %v1719_v33, %v1699_v36  ;;  %v1532_v22 = vadd.f32 %v6765_v51, %v1504_v0  ;;  %v1821_v36 = vld [vmem:[#allocation3 + $0xb0] sm:$0xff] }
 0x10d   : > { %v1887_v58 = vmul.f32 %v6695_v37, %v8404_v38  ;;  %v1615_v55 = vadd.f32 %v1607_v49, %v1587_v35  ;;  %v1636_v1 = vmul.f32 %v6562_v13, %v6570_v28  ;;  %v1775_v19 = vmul.f32 %v6643_v52, %v8411_v15 }
 0x10e   : > { %v2006_v39 = vadd.f32 %v1998_v29, %v1978_v10  ;;  %v1867_v4 = vadd.f32 %v1859_v57, %v1839_v7  ;;  %v1755_v40 = vadd.f32 %v1747_v25, %v1727_v46  ;;  %v1915_v30 = vmul.f32 %v6699_v5, %v8406_v9 }
 0x10f   : > { %v1943_v54 = vmul.f32 %v6722_v23, %v8407_v3  ;;  %v1644_v51 = vadd.f32 %v1636_v1, %v1615_v55  ;;  %v1664_v0 = vmul.f32 %v6577_v8, %v6585_v34  ;;  %v1505_v6 = vadd.f32 %v8412_v2, %v1477_v16  ;;  %v8413_v3 = vld [vmem:[#allocation43_spill] sm:$0xff]  ;;  %v1877_v55 = vld [vmem:[#allocation3 + $0xb2] sm:$0xff] }
 0x110   : > { %2014 = vst.msk [vmem:[#allocation2 + $0x10] sm:$0xff] %vm572_vm0, %v2006_v39  ;;  %v1895_v26 = vadd.f32 %v1887_v58, %v1867_v4  ;;  %v1783_v14 = vadd.f32 %v1775_v19, %v1755_v40  ;;  %v1803_v38 = vmul.f32 %v6663_v20, %v8409_v27  ;;  %v1971_v48 = vmul.f32 %v6732_v61, %v8411_v15  ;;  %v1597_v1 = vld [vmem:[#allocation3 + $0xb6] sm:$0xff]  ;;  %v1822_v15 = vld [vmem:[#allocation3 + $0xc0] sm:$0xff] }
 0x111   : > { %v1672_v62 = vadd.f32 %v1664_v0, %v1644_v51  ;;  %v1692_v29 = vmul.f32 %v6590_v18, %v6599_v11  ;;  %v1560_v59 = vadd.f32 %v6775_v12, %v1532_v22  ;;  %v1999_v63 = vmul.f32 %v6742_v17, %v8409_v27  ;;  %v1905_v51 = vld [vmem:[#allocation3 + $0xb3] sm:$0xff] }
 0x112   : > { %v1923_v56 = vadd.f32 %v1915_v30, %v1895_v26  ;;  %v1811_v32 = vadd.f32 %v1803_v38, %v1783_v14  ;;  %v1832_v43 = vmul.f32 %v6679_v53, %v6570_v28  ;;  %v1720_v33 = vmul.f32 %v6609_v24, %v6602_v31  ;;  %v1933_v38 = vld [vmem:[#allocation3 + $0xb4] sm:$0xff] }
 0x113   : > { %v1700_v9 = vadd.f32 %v1692_v29, %v1672_v62  ;;  %v1588_v57 = vadd.f32 %v1580_v60, %v1560_v59  ;;  %v1608_v25 = vmul.f32 %v6558_v50, %v8413_v3  ;;  %v1533_v35 = vadd.f32 %v8414_v44, %v1505_v6 }
 0x114   : > { %v1951_v12 = vadd.f32 %v1943_v54, %v1923_v56  ;;  %v1840_v49 = vadd.f32 %v1832_v43, %v1811_v32  ;;  %v1860_v27 = vmul.f32 %v6687_v45, %v6585_v34  ;;  %v1748_v28 = vmul.f32 %v6626_v47, %v6604_v42  ;;  %v1850_v43 = vld [vmem:[#allocation3 + $0xc1] sm:$0xff] }
 0x115   : > { %v1728_v16 = vadd.f32 %v1720_v33, %v1700_v9  ;;  %v1616_v10 = vadd.f32 %v1608_v25, %v1588_v57  ;;  %v1637_v7 = vmul.f32 %v1821_v36, %v6562_v13  ;;  %v1888_v22 = vmul.f32 %v6695_v37, %v6599_v11  ;;  %v8415_v11 = vld [vmem:[#allocation37_spill] sm:$0xff] }
 0x116   : > { %v1979_v46 = vadd.f32 %v1971_v48, %v1951_v12  ;;  %v1868_v60 = vadd.f32 %v1860_v27, %v1840_v49  ;;  %v1916_v58 = vmul.f32 %v6699_v5, %v6602_v31  ;;  %v1776_v34 = vmul.f32 %v6643_v52, %v8399_v21  ;;  %v8416_v48 = vld [vmem:[#allocation96_spill] sm:$0xff] }
 0x117   : > { %v1756_v39 = vadd.f32 %v1748_v28, %v1728_v16  ;;  %v1645_v4 = vadd.f32 %v1637_v7, %v1616_v10  ;;  %v1665_v40 = vmul.f32 %v1849_v41, %v6577_v8  ;;  %v1944_v54 = vmul.f32 %v6722_v23, %v6604_v42  ;;  %v1961_v57 = vld [vmem:[#allocation3 + $0xb5] sm:$0xff] }
 0x118   : > { %v2007_v19 = vadd.f32 %v1999_v63, %v1979_v46  ;;  %v1896_v30 = vadd.f32 %v1888_v22, %v1868_v60  ;;  %v1561_v0 = vadd.f32 %v8415_v11, %v1533_v35  ;;  %v1804_v31 = vmul.f32 %v6663_v20, %v8413_v3  ;;  %v1989_v27 = vld [vmem:[#allocation3 + $0xb6] sm:$0xff]  ;;  %v1906_v60 = vld [vmem:[#allocation3 + $0xc3] sm:$0xff] }
 0x119   : > { %v1784_v2 = vadd.f32 %v1776_v34, %v1756_v39  ;;  %v1673_v6 = vadd.f32 %v1665_v40, %v1645_v4  ;;  %v1693_v26 = vmul.f32 %v1877_v55, %v6590_v18  ;;  %v1609_v29 = vmul.f32 %v6558_v50, %v1597_v1  ;;  %v1934_v4 = vld [vmem:[#allocation3 + $0xc4] sm:$0xff] }
 0x11a   : > { %2015 = vst.msk [vmem:[#allocation2 + $0x18] sm:$0xff] %vm572_vm0, %v2007_v19  ;;  %v1924_v14 = vadd.f32 %v1916_v58, %v1896_v30  ;;  %v1589_v62 = vadd.f32 %v8416_v48, %v1561_v0  ;;  %v1638_v42 = vmul.f32 %v1822_v15, %v6562_v13  ;;  %v1833_v56 = vmul.f32 %v6679_v53, %v1821_v36  ;;  %v1878_v13 = vld [vmem:[#allocation3 + $0xc2] sm:$0xff] }
 0x11b   : > { %v1812_v59 = vadd.f32 %v1804_v31, %v1784_v2  ;;  %v1701_v63 = vadd.f32 %v1693_v26, %v1673_v6  ;;  %v1721_v32 = vmul.f32 %v1905_v51, %v6609_v24  ;;  %v1972_v33 = vmul.f32 %v6732_v61, %v8399_v21  ;;  %v1962_v11 = vld [vmem:[#allocation3 + $0xc5] sm:$0xff] }
 0x11c   : > { %v1952_v9 = vadd.f32 %v1944_v54, %v1924_v14  ;;  %v1617_v25 = vadd.f32 %v1609_v29, %v1589_v62  ;;  %v1861_v35 = vmul.f32 %v6687_v45, %v1849_v41  ;;  %v1749_v50 = vmul.f32 %v1933_v38, %v6626_v47  ;;  %v1990_v26 = vld [vmem:[#allocation3 + $0xc6] sm:$0xff]  ;;  %v1823_v14 = vld [vmem:[#allocation3 + $0xd0] sm:$0xff] }
 0x11d   : > { %v1841_v44 = vadd.f32 %v1833_v56, %v1812_v59  ;;  %v1729_v12 = vadd.f32 %v1721_v32, %v1701_v63  ;;  %v2000_v36 = vmul.f32 %v6742_v17, %v8413_v3  ;;  %v1666_v28 = vmul.f32 %v1850_v43, %v6577_v8 }
 0x11e   : > { %v1980_v49 = vadd.f32 %v1972_v33, %v1952_v9  ;;  %v1646_v16 = vadd.f32 %v1638_v42, %v1617_v25  ;;  %v1889_v21 = vmul.f32 %v6695_v37, %v1877_v55  ;;  %v1777_v46 = vmul.f32 %v1961_v57, %v6643_v52 }
 0x11f   : > { %v1869_v10 = vadd.f32 %v1861_v35, %v1841_v44  ;;  %v1757_v7 = vadd.f32 %v1749_v50, %v1729_v12  ;;  %v1694_v58 = vmul.f32 %v1878_v13, %v6590_v18  ;;  %v1917_v39 = vmul.f32 %v6699_v5, %v1905_v51  ;;  %v1907_v12 = vld [vmem:[#allocation3 + $0xd3] sm:$0xff] }
 0x120   : > { %v2008_v41 = vadd.f32 %v2000_v36, %v1980_v49  ;;  %v1674_v22 = vadd.f32 %v1666_v28, %v1646_v16  ;;  %v1805_v3 = vmul.f32 %v1989_v27, %v6663_v20  ;;  %v1722_v55 = vmul.f32 %v1906_v60, %v6609_v24  ;;  %v1935_v36 = vld [vmem:[#allocation3 + $0xd4] sm:$0xff] }
 0x121   : > { %v1897_v1 = vadd.f32 %v1889_v21, %v1869_v10  ;;  %v1785_v34 = vadd.f32 %v1777_v46, %v1757_v7  ;;  %v1945_v19 = vmul.f32 %v6722_v23, %v1933_v38  ;;  %v1834_v54 = vmul.f32 %v6679_v53, %v1822_v15  ;;  %v1963_v10 = vld [vmem:[#allocation3 + $0xd5] sm:$0xff] }
 0x122   : > { %2016 = vst.msk [vmem:[#allocation2 + $0x20] sm:$0xff] %vm572_vm0, %v2008_v41  ;;  %v1702_v8 = vadd.f32 %v1694_v58, %v1674_v22  ;;  %v1750_v0 = vmul.f32 %v1934_v4, %v6626_v47  ;;  %v1973_v2 = vmul.f32 %v6732_v61, %v1961_v57  ;;  %v1862_v6 = vmul.f32 %v6687_v45, %v1850_v43  ;;  %v1851_v43 = vld [vmem:[#allocation3 + $0xd1] sm:$0xff] }
 0x123   : > { %v1925_v40 = vadd.f32 %v1917_v39, %v1897_v1  ;;  %v1813_v30 = vadd.f32 %v1805_v3, %v1785_v34  ;;  %v1778_v24 = vmul.f32 %v1962_v11, %v6643_v52  ;;  %v2001_v38 = vmul.f32 %v6742_v17, %v1989_v27  ;;  %v1879_v57 = vld [vmem:[#allocation3 + $0xd2] sm:$0xff] }
 0x124   : > { %v1730_v18 = vadd.f32 %v1722_v55, %v1702_v8  ;;  %v1890_v15 = vmul.f32 %v6695_v37, %v1878_v13  ;;  %v1806_v47 = vmul.f32 %v1990_v26, %v6663_v20  ;;  %v1835_v59 = vmul.f32 %v6679_v53, %v1823_v14 }
 0x125   : > { %v1953_v51 = vadd.f32 %v1945_v19, %v1925_v40  ;;  %v1842_v31 = vadd.f32 %v1834_v54, %v1813_v30  ;;  %v1918_v32 = vmul.f32 %v6699_v5, %v1906_v60  ;;  %v1946_v33 = vmul.f32 %v6722_v23, %v1934_v4 }
 0x126   : > { %v1758_v48 = vadd.f32 %v1750_v0, %v1730_v18  ;;  %v1863_v44 = vmul.f32 %v6687_v45, %v1851_v43  ;;  %v1974_v20 = vmul.f32 %v6732_v61, %v1962_v11  ;;  %v1891_v50 = vmul.f32 %v6695_v37, %v1879_v57  ;;  %v1991_v45 = vld [vmem:[#allocation3 + $0xd6] sm:$0xff] }
 0x127   : > { %v1981_v62 = vadd.f32 %v1973_v2, %v1953_v51  ;;  %v1870_v29 = vadd.f32 %v1862_v6, %v1842_v31  ;;  %v2002_v49 = vmul.f32 %v6742_v17, %v1990_v26  ;;  %v1919_v16 = vmul.f32 %v6699_v5, %v1907_v12 }
 0x128   : > { %v1786_v42 = vadd.f32 %v1778_v24, %v1758_v48  ;;  %v1947_v7 = vmul.f32 %v6722_v23, %v1935_v36  ;;  %v1975_v60 = vmul.f32 %v6732_v61, %v1963_v10  ;;  %v2003_v37 = vmul.f32 %v6742_v17, %v1991_v45 }
 0x129   : > { %v2009_v56 = vadd.f32 %v2001_v38, %v1981_v62  ;;  %v1898_v63 = vadd.f32 %v1890_v15, %v1870_v29 }
 0x12a   : > { %v1814_v9 = vadd.f32 %v1806_v47, %v1786_v42 }
 0x12b   : > { %2017 = vst.msk [vmem:[#allocation2 + $0x28] sm:$0xff] %vm572_vm0, %v2009_v56  ;;  %v1926_v52 = vadd.f32 %v1918_v32, %v1898_v63 }
 0x12c   : > { %v1843_v25 = vadd.f32 %v1835_v59, %v1814_v9 }
 0x12d   : > { %v1954_v35 = vadd.f32 %v1946_v33, %v1926_v52 }
 0x12e   : > { %v1871_v53 = vadd.f32 %v1863_v44, %v1843_v25 }
 0x12f   : > { %v1982_v13 = vadd.f32 %v1974_v20, %v1954_v35 }
 0x130   : > { %v1899_v27 = vadd.f32 %v1891_v50, %v1871_v53 }
 0x131   : > { %v2010_v28 = vadd.f32 %v2002_v49, %v1982_v13 }
 0x132   : > { %v1927_v21 = vadd.f32 %v1919_v16, %v1899_v27 }
 0x133   : > { %2018 = vst.msk [vmem:[#allocation2 + $0x30] sm:$0xff] %vm572_vm0, %v2010_v28 }
 0x134   : > { %v1955_v46 = vadd.f32 %v1947_v7, %v1927_v21 }
 0x136   : > { %v1983_v41 = vadd.f32 %v1975_v60, %v1955_v46 }
 0x138   : > { %v2011_v22 = vadd.f32 %v2003_v37, %v1983_v41 }
 0x13a   : > { %2019 = vst.msk [vmem:[#allocation2 + $0x38] sm:$0xff] %vm572_vm0, %v2011_v22 }
 0x13b PF: > { %s6962_s30 = sshll.u32 %s5107_s27, 4  ;;  %v2020_v5 = vld [vmem:[#allocation2] sm:$0xff]  ;;  %v2021_v58 = vld [vmem:[#allocation2 + $0x8] sm:$0xff]  ;;  %vm2059_vm3 = vcmask 261120   ;;  %s8417_s3 = sld [smem:[#allocation111_spill]]  ;;  %v2022_v17 = vld [vmem:[#allocation2 + $0x10] sm:$0xff] }
 0x13c   : > { %v2028_v23 = vpack.c.bf16 %v2021_v58, %v2020_v5  ;;  %v2023_v39 = vld [vmem:[#allocation2 + $0x18] sm:$0xff]  ;;  %v2024_v34 = vld [vmem:[#allocation2 + $0x20] sm:$0xff]  ;;  %v2025_v3 = vld [vmem:[#allocation2 + $0x28] sm:$0xff]  ;;  %s2039_s24 = scalar_lea.vmem %s7745_s4, %s5107_s27  ;;  %vm2153_vm4 = vcmask 64512   ;;  %s5126_s29 = smov 96   ;;  %vm2243_vm5 = vcmask 523264  }
 0x13d   : > { %v2029_v4 = vpack.c.bf16 %v2023_v39, %v2022_v17  ;;  %v2030_v8 = vpack.c.bf16 %v2025_v3, %v2024_v34  ;;  %v2026_v55 = vld [vmem:[#allocation2 + $0x30] sm:$0xff]  ;;  %v4317_v54 = vld [vmem:[%s2039_s24] ss:$0 sm:$0xff]  ;;  %s5127_s22 = smov 64   ;;  %s5128_s16 = smov 88   ;;  %vm3387_vm6 = vcmask 130048  }
 0x13e   : > { %4495 = vmatprep.mubr.msk.bf16.mxu0 %vm2059_vm3, %v2028_v23  ;;  %s5130_s18 = smov 56   ;;  %s5131_s17 = smov 80   ;;  %vm3396_vm7 = vcmask 195584  }
 0x13f   : > { %s5132_s24 = smov 112   ;;  %p4387_p0 = scmp.ne.s32.totalorder %s5107_s27, 1 }
 0x141   : > { %s2034_s23 = scalar_lea.vmem %s8417_s3, %s6962_s30  ;;  %v2027_v40 = vld [vmem:[#allocation2 + $0x38] sm:$0xff] }
 0x142   : > { %v4835_v61 = vld [vmem:[%s2034_s23] sm:$0xff]   ;;  %v4836_v1 = vld [vmem:[%s2034_s23 + $0x8] sm:$0xff]   ;;  %v2031_v19 = vpack.c.bf16 %v2027_v40, %v2026_v55  ;;  %s5129_s23 = smov 120  }
 0x143   : > { %4491 = vmatprep.subr.bf16.mxu0 %v4835_v61 }
 0x144   : > { %4492 = vmatpush3.bf16.msra.mxu0 %v4835_v61 }
 0x145   : > { %4493 = vmatprep.subr.bf16.mxu0 %v4836_v1 }
 0x148   : > { %4494 = vmatpush3.bf16.msra.mxu0 %v4836_v1 }
 0x14b   : > { %4496 = vmatmul.mubr.msk.bf16.vlgmr.msra.gmra.mrb[0].mxu0 %vm2059_vm3, %v2029_v4 }
 0x14c   : > { %4499 = vmatprep.mubr.msk.bf16.mxu0 %vm2059_vm3, %v2030_v8 }
 0x153   : > { %4500 = vmatmul.mubr.msk.bf16.gmra.mrb[4].mxu0 %vm2059_vm3, %v2031_v19 }
 0x21e   : > { %v4497_v30 = vpop.f32.mrb[0].mxu0 }
 0x21f   : > { %v2106_v11 = vpop.f32.mrb[1].mxu0  ;;  %v2115_v0 = vadd.f32 %v4497_v30, %v4317_v54 }
 0x220   : > { %v4498_v18 = vpop.f32.mrb[2].mxu0  ;;  %v2107_v31 = vadd.f32 %v4317_v54, %v2106_v11 }
 0x221   : > { %v2118_v51 = vadd.f32 %v4498_v18, %v4317_v54  ;;  %v2109_v2 = vpop.f32.mrb[3].mxu0 }
 0x222   : > { %v2110_v6 = vadd.f32 %v4317_v54, %v2109_v2 }
 0x223   : > { %v6976_v26 = vpack.c.bf16 %v2118_v51, %v2115_v0 }
 0x224   : > { %v6978_v14 = vpack.c.bf16 %v2110_v6, %v2107_v31 }
 0x226   : > { %2145 = vrot.lane.b32.xlu0 %v6978_v14, %s5126_s29  ;;  %4511 = vmatprep.mubr.msk.bf16.mxu1 %vm2153_vm4, %v6978_v14  ;;  %v4501_v48 = vpop.f32.mrb[4].mxu0 }
 0x227   : > { %v2131_v24 = vadd.f32 %v4501_v48, %v4317_v54  ;;  %v2122_v62 = vpop.f32.mrb[5].mxu0 }
 0x228   : > { %v2123_v38 = vadd.f32 %v4317_v54, %v2122_v62  ;;  %v4502_v29 = vpop.f32.mrb[6].mxu0 }
 0x229   : > { %v2134_v15 = vadd.f32 %v4502_v29, %v4317_v54  ;;  %v2125_v42 = vpop.f32.mrb[7].mxu0 }
 0x22a   : > { %v2126_v47 = vadd.f32 %v4317_v54, %v2125_v42  ;;  %2147 = vrot.lane.b32.xlu0 %v6976_v26, %s5126_s29 }
 0x22b   : > { %v6984_v59 = vpack.c.bf16 %v2134_v15, %v2131_v24 }
 0x22c   : > { %v6986_v56 = vpack.c.bf16 %v2126_v47, %v2123_v38 }
 0x22e   : > { %2149 = vrot.lane.b32.xlu1 %v6986_v56, %s5126_s29 }
 0x232   : > { %2151 = vrot.lane.b32.xlu1 %v6984_v59, %s5126_s29  ;;  %s5133_s29 = smov 48  }
 0x298   : > { %v2146_v63 = vpop.permute.xlu0 %2145 }
 0x299   : > { %4671 = vmatprep.subr.msk.bf16.mxu1 %vm2153_vm4, %v2146_v63  ;;  %v2167_v32 = vsel %vm2153_vm4, %v2146_v63, 0 }
 0x29a   : > { %4504 = vmatpush3.bf16.xpose.msra.mxu1 %v2167_v32 }
 0x29c   : > { %v2148_v43 = vpop.permute.xlu0 %2147 }
 0x29d   : > { %4672 = vmatprep.subr.msk.bf16.mxu1 %vm2153_vm4, %v2148_v43  ;;  %v2170_v9 = vsel %vm2153_vm4, %v2148_v43, 0 }
 0x2a0   : > { %v2150_v52 = vpop.permute.xlu1 %2149 }
 0x2a1   : > { %v2173_v33 = vsel %vm2153_vm4, %v2150_v52, 0 }
 0x2a2   : > { %4506 = vmatpush3.bf16.xpose.msra.mxu1 %v2170_v9 }
 0x2a3   : > { %4673 = vmatprep.subr.msk.bf16.mxu1 %vm2153_vm4, %v2150_v52 }
 0x2a4   : > { %v2152_v57 = vpop.permute.xlu1 %2151 }
 0x2a5   : > { %v2176_v25 = vsel %vm2153_vm4, %v2152_v57, 0 }
 0x2aa   : > { %4508 = vmatpush3.bf16.xpose.msra.mxu1 %v2173_v33 }
 0x2ab   : > { %4674 = vmatprep.subr.msk.bf16.mxu1 %vm2153_vm4, %v2152_v57 }
 0x2b2   : > { %4510 = vmatpush3.bf16.xpose.msra.mxu1 %v2176_v25 }
 0x2b9   : > { %4512 = vmatmul.mubr.msk.bf16.vlgmr.msra.gmra.mrb[0].mxu1 %vm2153_vm4, %v6976_v26 }
 0x2ba   : > { %4515 = vmatprep.mubr.msk.bf16.mxu1 %vm2153_vm4, %v6986_v56 }
 0x2c1   : > { %4516 = vmatmul.mubr.msk.bf16.gmra.mrb[4].mxu1 %vm2153_vm4, %v6984_v59 }
 0x38c   : > { %v4513_v44 = vpop.f32.mrb[0].mxu1 }
 0x38d   : > { %v2212_v35 = vpop.f32.mrb[1].mxu1  ;;  %v2250_v20 = vsel %vm2243_vm5, %v4513_v44, -inf }
 0x38e   : > { %2251 = vmax.xlane.f32.xlu0 %v2250_v20  ;;  %v4514_v12 = vpop.f32.mrb[2].mxu1  ;;  %v2244_v13 = vsel %vm2243_vm5, %v2212_v35, -inf }
 0x38f   : > { %v2215_v53 = vpop.f32.mrb[3].mxu1  ;;  %v2253_v27 = vsel %vm2243_vm5, %v4514_v12, -inf }
 0x390   : > { %v2247_v50 = vsel %vm2243_vm5, %v2215_v53, -inf }
 0x391   : > { %2248 = vmax.xlane.f32.xlu1 %v2247_v50 }
 0x392   : > { %2245 = vmax.xlane.f32.xlu0 %v2244_v13 }
 0x394   : > { %v4517_v49 = vpop.f32.mrb[4].mxu1 }
 0x395   : > { %v2228_v36 = vpop.f32.mrb[5].mxu1  ;;  %v2262_v16 = vsel %vm2243_vm5, %v4517_v49, -inf }
 0x396   : > { %2254 = vmax.xlane.f32.xlu0 %v2253_v27  ;;  %2263 = vmax.xlane.f32.xlu1 %v2262_v16  ;;  %v4518_v28 = vpop.f32.mrb[6].mxu1  ;;  %v2256_v7 = vsel %vm2243_vm5, %v2228_v36, -inf }
 0x397   : > { %v7009_v10 = vpop.f32.mrb[7].mxu1  ;;  %v2265_v45 = vsel %vm2243_vm5, %v4518_v28, -inf }
 0x398   : > { %v2259_v21 = vsel %vm2243_vm5, %v7009_v10, -inf }
 0x39a   : > { %2257 = vmax.xlane.f32.xlu1 %v2256_v7  ;;  %2260 = vmax.xlane.f32.xlu0 %v2259_v21 }
 0x39e   : > { %2266 = vmax.xlane.f32.xlu0 %v2265_v45 }
 0x3ab   : > { %2336 = vrot.lane.b32.xlu1 %v6978_v14, %s5127_s22 }
 0x3af   : > { %2340 = vrot.lane.b32.xlu1 %v6986_v56, %s5127_s22 }
 0x3b3   : > { %2342 = vrot.lane.b32.xlu1 %v6984_v59, %s5127_s22 }
 0x3b4   : > { %2338 = vrot.lane.b32.xlu0 %v6976_v26, %s5127_s22  ;;  %s5134_s22 = smov 72  }
 0x3b7   : > { %2433 = vrot.lane.b32.xlu1 %v6978_v14, %s5128_s16 }
 0x41b   : > { %v2252_v46 = vpop.xlane.xlu0 %2251 }
 0x41c   : > { %v2270_v60 = vsub.f32 %v4513_v44, %v2252_v46 }
 0x41e   : > { %v2280_v41 = vmul.f32 1.442695, %v2270_v60  ;;  %v2249_v37 = vpop.xlane.xlu1 %2248 }
 0x41f   : > { %v2246_v22 = vpop.xlane.xlu0 %2245  ;;  %v2269_v58 = vsub.f32 %v2215_v53, %v2249_v37 }
 0x420   : > { %4845 = vpow2.f32 %v2280_v41  ;;  %v2268_v5 = vsub.f32 %v2212_v35, %v2246_v22 }
 0x421   : > { %v2278_v39 = vmul.f32 1.442695, %v2269_v58 }
 0x422   : > { %v2276_v23 = vmul.f32 1.442695, %v2268_v5 }
 0x423   : > { %v2255_v61 = vpop.xlane.xlu0 %2254  ;;  %v2264_v1 = vpop.xlane.xlu1 %2263 }
 0x424   : > { %4847 = vpow2.f32 %v2276_v23  ;;  %v2271_v17 = vsub.f32 %v4514_v12, %v2255_v61  ;;  %v2274_v3 = vsub.f32 %v4517_v49, %v2264_v1 }
 0x426   : > { %v2282_v34 = vmul.f32 1.442695, %v2271_v17  ;;  %v2288_v40 = vmul.f32 1.442695, %v2274_v3 }
 0x427   : > { %v2258_v4 = vpop.xlane.xlu1 %2257  ;;  %v2261_v8 = vpop.xlane.xlu0 %2260 }
 0x428   : > { %4849 = vpow2.f32 %v2282_v34  ;;  %v2272_v19 = vsub.f32 %v2228_v36, %v2258_v4  ;;  %v2273_v33 = vsub.f32 %v7009_v10, %v2261_v8 }
 0x429   : > { %4851 = vpow2.f32 %v2278_v39 }
 0x42a   : > { %v7021_v55 = vpop.eup %4845  ;;  %4853 = vpow2.f32 %v2288_v40  ;;  %v2284_v0 = vmul.f32 1.442695, %v2272_v19  ;;  %v2286_v57 = vmul.f32 1.442695, %v2273_v33 }
 0x42b   : > { %v2337_v30 = vpop.permute.xlu1 %2336  ;;  %v2267_v54 = vpop.xlane.xlu0 %2266  ;;  %v2298_v11 = vsel %vm2243_vm5, %v7021_v55, 0.0 }
 0x42c   : > { %2299 = vadd.xlane.f32.xlu1 %v2298_v11  ;;  %4519 = vmatprep.subr.bf16.mxu0 %v2337_v30  ;;  %v2275_v51 = vsub.f32 %v4518_v28, %v2267_v54  ;;  %4855 = vpow2.f32 %v2284_v0 }
 0x42d   : > { %4520 = vmatpush3.bf16.msra.mxu0 %v2337_v30 }
 0x42e   : > { %v7025_v18 = vpop.eup %4847  ;;  %v2290_v24 = vmul.f32 1.442695, %v2275_v51 }
 0x42f   : > { %v2341_v2 = vpop.permute.xlu1 %2340  ;;  %v2339_v31 = vpop.permute.xlu0 %2338  ;;  %v2292_v6 = vsel %vm2243_vm5, %v7025_v18, 0.0 }
 0x430   : > { %2293 = vadd.xlane.f32.xlu1 %v2292_v6  ;;  %4521 = vmatprep.subr.bf16.mxu0 %v2339_v31  ;;  %4857 = vpow2.f32 %v2290_v24 }
 0x431   : > { %4522 = vmatpush3.bf16.msra.mxu0 %v2339_v31  ;;  %4859 = vpow2.f32 %v2286_v57 }
 0x432   : > { %v4850_v48 = vpop.eup %4849  ;;  %4523 = vmatprep.subr.bf16.mxu0 %v2341_v2 }
 0x433   : > { %v2343_v62 = vpop.permute.xlu1 %2342  ;;  %v2301_v38 = vsel %vm2243_vm5, %v4850_v48, 0.0  ;;  %v4852_v29 = vpop.eup %4851 }
 0x434   : > { %2302 = vadd.xlane.f32.xlu0 %v2301_v38  ;;  %v2295_v15 = vsel %vm2243_vm5, %v4852_v29, 0.0  ;;  %v7031_v42 = vpop.eup %4853 }
 0x435   : > { %4524 = vmatpush3.bf16.msra.mxu0 %v2341_v2  ;;  %v2310_v63 = vsel %vm2243_vm5, %v7031_v42, 0.0 }
 0x436   : > { %4525 = vmatprep.subr.bf16.mxu0 %v2343_v62  ;;  %v7036_v32 = vpop.eup %4855 }
 0x437   : > { %v2434_v47 = vpop.permute.xlu1 %2433  ;;  %v2304_v43 = vsel %vm2243_vm5, %v7036_v32, 0.0 }
 0x438   : > { %2296 = vadd.xlane.f32.xlu0 %v2295_v15  ;;  %v2454_v37 = vsel %vm2153_vm4, %v2434_v47, 0 }
 0x439   : > { %4526 = vmatpush3.bf16.msra.mxu0 %v2343_v62 }
 0x43a   : > { %4675 = vmatprep.subr.msk.bf16.mxu0 %vm2153_vm4, %v2434_v47  ;;  %v7040_v9 = vpop.eup %4857 }
 0x43b   : > { %v2313_v52 = vsel %vm2243_vm5, %v7040_v9, 0.0  ;;  %v4860_v25 = vpop.eup %4859 }
 0x43c   : > { %2311 = vadd.xlane.f32.xlu0 %v2310_v63  ;;  %v2307_v44 = vsel %vm2243_vm5, %v4860_v25, 0.0 }
 0x440   : > { %2305 = vadd.xlane.f32.xlu0 %v2304_v43 }
 0x441   : > { %2437 = vrot.lane.b32.xlu1 %v6986_v56, %s5128_s16 }
 0x444   : > { %2314 = vadd.xlane.f32.xlu0 %v2313_v52 }
 0x45a   : > { %2435 = vrot.lane.b32.xlu0 %v6976_v26, %s5128_s16 }
 0x45e   : > { %2425 = vrot.lane.b32.xlu0 %v6978_v14, %s5129_s23 }
 0x462   : > { %2429 = vrot.lane.b32.xlu0 %v6986_v56, %s5129_s23 }
 0x465   : > { %2308 = vadd.xlane.f32.xlu1 %v2307_v44 }
 0x476   : > { %2439 = vrot.lane.b32.xlu1 %v6984_v59, %s5128_s16  ;;  %s5135_s16 = smov 104  }
 0x47a   : > { %2427 = vrot.lane.b32.xlu1 %v6976_v26, %s5129_s23 }
 0x47e   : > { %2431 = vrot.lane.b32.xlu1 %v6984_v59, %s5129_s23  ;;  %s5136_s23 = smov 40  }
 0x4b9   : > { %v2300_v35 = vpop.xlane.xlu1 %2299 }
 0x4bd   : > { %v2294_v20 = vpop.xlane.xlu1 %2293 }
 0x4c1   : > { %v2303_v12 = vpop.xlane.xlu0 %2302  ;;  %v2438_v5 = vpop.permute.xlu1 %2437 }
 0x4c2   : > { %4861 = vrcp.f32 %v2303_v12  ;;  %v2460_v58 = vsel %vm2153_vm4, %v2438_v5, 0 }
 0x4c3   : > { %4863 = vrcp.f32 %v2294_v20 }
 0x4c4   : > { %4865 = vrcp.f32 %v2300_v35 }
 0x4c5   : > { %v2297_v53 = vpop.xlane.xlu0 %2296 }
 0x4c6   : > { %4867 = vrcp.f32 %v2297_v53 }
 0x4c9   : > { %v2312_v50 = vpop.xlane.xlu0 %2311 }
 0x4cc   : > { %v4862_v13 = vpop.eup %4861 }
 0x4cd   : > { %v2306_v49 = vpop.xlane.xlu0 %2305  ;;  %v4864_v36 = vpop.eup %4863  ;;  %v2323_v28 = vmul.f32 %v4862_v13, %v4850_v48 }
 0x4ce   : > { %v4866_v27 = vpop.eup %4865  ;;  %v2317_v21 = vmul.f32 %v4864_v36, %v7025_v18 }
 0x4cf   : > { %v2321_v45 = vmul.f32 %v4866_v27, %v7021_v55 }
 0x4d0   : > { %v4868_v16 = vpop.eup %4867 }
 0x4d1   : > { %v2315_v10 = vpop.xlane.xlu0 %2314  ;;  %v2319_v7 = vmul.f32 %v4868_v16, %v4852_v29  ;;  %v2333_v60 = vpack.c.bf16 %v2323_v28, %v2321_v45 }
 0x4d2   : > { %4869 = vrcp.f32 %v2315_v10 }
 0x4d3   : > { %v2332_v46 = vpack.c.bf16 %v2319_v7, %v2317_v21  ;;  %4871 = vrcp.f32 %v2306_v49 }
 0x4d4   : > { %4873 = vrcp.f32 %v2312_v50 }
 0x4d5   : > { %4527 = vmatprep.mubr.msk.bf16.mxu0 %vm2243_vm5, %v2332_v46  ;;  %v2436_v41 = vpop.permute.xlu0 %2435 }
 0x4d6   : > { %4528 = vmatmul.mubr.msk.bf16.vlgmr.msra.gmra.mrb[8].mxu0 %vm2243_vm5, %v2333_v60  ;;  %v2457_v22 = vsel %vm2153_vm4, %v2436_v41, 0 }
 0x4d7   : > { %4536 = vmatpush3.bf16.xpose.msra.mxu0 %v2454_v37 }
 0x4d8   : > { %4676 = vmatprep.subr.msk.bf16.mxu0 %vm2153_vm4, %v2436_v41 }
 0x4d9   : > { %v2426_v54 = vpop.permute.xlu0 %2425 }
 0x4dc   : > { %v4870_v17 = vpop.eup %4869 }
 0x4dd   : > { %v4872_v39 = vpop.eup %4871  ;;  %v2331_v4 = vmul.f32 %v4870_v17, %v7040_v9  ;;  %v2430_v18 = vpop.permute.xlu0 %2429 }
 0x4de   : > { %v4874_v34 = vpop.eup %4873  ;;  %v2325_v8 = vmul.f32 %v4872_v39, %v7036_v32 }
 0x4df   : > { %4538 = vmatpush3.bf16.xpose.msra.mxu0 %v2457_v22  ;;  %v2329_v40 = vmul.f32 %v4874_v34, %v7031_v42 }
 0x4e0   : > { %4677 = vmatprep.subr.msk.bf16.mxu0 %vm2153_vm4, %v2438_v5 }
 0x4e1   : > { %v2335_v30 = vpack.c.bf16 %v2331_v4, %v2329_v40 }
 0x4e7   : > { %4540 = vmatpush3.bf16.xpose.msra.mxu0 %v2460_v58 }
 0x4f2   : > { %v2309_v23 = vpop.xlane.xlu1 %2308 }
 0x4f3   : > { %4875 = vrcp.f32 %v2309_v23 }
 0x4f6   : > { %v2440_v61 = vpop.permute.xlu1 %2439 }
 0x4f7   : > { %4678 = vmatprep.subr.msk.bf16.mxu0 %vm2153_vm4, %v2440_v61  ;;  %v2463_v1 = vsel %vm2153_vm4, %v2440_v61, 0 }
 0x4f8   : > { %4542 = vmatpush3.bf16.xpose.msra.mxu0 %v2463_v1 }
 0x4fa   : > { %v2428_v11 = vpop.permute.xlu1 %2427 }
 0x4fd   : > { %v4876_v3 = vpop.eup %4875 }
 0x4fe   : > { %v2327_v55 = vmul.f32 %v4876_v3, %v4860_v25  ;;  %v2432_v0 = vpop.permute.xlu1 %2431 }
 0x500   : > { %v2334_v19 = vpack.c.bf16 %v2327_v55, %v2325_v8 }
 0x502   : > { %4531 = vmatprep.mubr.msk.bf16.mxu0 %vm2243_vm5, %v2334_v19 }
 0x503   : > { %4532 = vmatmul.mubr.msk.bf16.gmra.mrb[12].mxu0 %vm2243_vm5, %v2335_v30 }
 0x504   : > { %4543 = vmatprep.mubr.msk.bf16.mxu0 %vm2153_vm4, %v2426_v54 }
 0x50b   : > { %4544 = vmatmul.mubr.msk.bf16.vlgmr.msra.gmra.mrb[16].mxu0 %vm2153_vm4, %v2428_v11 }
 0x50c   : > { %4547 = vmatprep.mubr.msk.bf16.mxu0 %vm2153_vm4, %v2430_v18 }
 0x513   : > { %4548 = vmatmul.mubr.msk.bf16.gmra.mrb[20].mxu0 %vm2153_vm4, %v2432_v0 }
 0x5a9   : > { %v7076_v51 = vpop.f32.mrb[8].mxu0 }
 0x5aa   : > { %v7078_v2 = vpop.f32.mrb[9].mxu0 }
 0x5ab   : > { %v7080_v31 = vpop.f32.mrb[10].mxu0 }
 0x5ac   : > { %v7082_v6 = vpop.f32.mrb[11].mxu0 }
 0x5d6   : > { %v7084_v48 = vpop.f32.mrb[12].mxu0 }
 0x5d7   : > { %v7086_v24 = vpop.f32.mrb[13].mxu0 }
 0x5d8   : > { %v7088_v62 = vpop.f32.mrb[14].mxu0 }
 0x5d9   : > { %v7090_v38 = vpop.f32.mrb[15].mxu0 }
 0x5de   : > { %v4545_v29 = vpop.f32.mrb[16].mxu0 }
 0x5df   : > { %v2499_v15 = vpop.f32.mrb[17].mxu0  ;;  %v2536_v42 = vsel %vm2243_vm5, %v4545_v29, -inf }
 0x5e0   : > { %2537 = vmax.xlane.f32.xlu0 %v2536_v42  ;;  %v4546_v47 = vpop.f32.mrb[18].mxu0  ;;  %v2530_v43 = vsel %vm2243_vm5, %v2499_v15, -inf }
 0x5e1   : > { %v2502_v63 = vpop.f32.mrb[19].mxu0  ;;  %v2539_v33 = vsel %vm2243_vm5, %v4546_v47, -inf }
 0x5e2   : > { %v2533_v32 = vsel %vm2243_vm5, %v2502_v63, -inf }
 0x5e3   : > { %2534 = vmax.xlane.f32.xlu1 %v2533_v32 }
 0x5e4   : > { %2531 = vmax.xlane.f32.xlu0 %v2530_v43 }
 0x5e6   : > { %v4549_v9 = vpop.f32.mrb[20].mxu0 }
 0x5e7   : > { %v2515_v52 = vpop.f32.mrb[21].mxu0  ;;  %v2548_v57 = vsel %vm2243_vm5, %v4549_v9, -inf }
 0x5e8   : > { %2540 = vmax.xlane.f32.xlu0 %v2539_v33  ;;  %2549 = vmax.xlane.f32.xlu1 %v2548_v57  ;;  %v4550_v25 = vpop.f32.mrb[22].mxu0  ;;  %v2542_v20 = vsel %vm2243_vm5, %v2515_v52, -inf }
 0x5e9   : > { %v7097_v44 = vpop.f32.mrb[23].mxu0  ;;  %v2551_v12 = vsel %vm2243_vm5, %v4550_v25, -inf }
 0x5ea   : > { %v2545_v35 = vsel %vm2243_vm5, %v7097_v44, -inf }
 0x5ec   : > { %2543 = vmax.xlane.f32.xlu1 %v2542_v20  ;;  %2546 = vmax.xlane.f32.xlu0 %v2545_v35 }
 0x5f0   : > { %2552 = vmax.xlane.f32.xlu0 %v2551_v12 }
 0x5fd   : > { %2622 = vrot.lane.b32.xlu1 %v6978_v14, %s5130_s18 }
 0x601   : > { %2626 = vrot.lane.b32.xlu1 %v6986_v56, %s5130_s18 }
 0x605   : > { %2628 = vrot.lane.b32.xlu1 %v6984_v59, %s5130_s18 }
 0x606   : > { %2624 = vrot.lane.b32.xlu0 %v6976_v26, %s5130_s18  ;;  %s7924_s18 = smov 8  }
 0x609   : > { %2719 = vrot.lane.b32.xlu1 %v6978_v14, %s5131_s17 }
 0x66d   : > { %v2538_v53 = vpop.xlane.xlu0 %2537 }
 0x66e   : > { %v2556_v50 = vsub.f32 %v4545_v29, %v2538_v53 }
 0x670   : > { %v2566_v13 = vmul.f32 1.442695, %v2556_v50  ;;  %v2535_v49 = vpop.xlane.xlu1 %2534 }
 0x671   : > { %v2532_v36 = vpop.xlane.xlu0 %2531  ;;  %v2555_v28 = vsub.f32 %v2502_v63, %v2535_v49 }
 0x672   : > { %4877 = vpow2.f32 %v2566_v13  ;;  %v2554_v27 = vsub.f32 %v2499_v15, %v2532_v36 }
 0x673   : > { %v2564_v46 = vmul.f32 1.442695, %v2555_v28 }
 0x674   : > { %v2562_v16 = vmul.f32 1.442695, %v2554_v27 }
 0x675   : > { %v2550_v10 = vpop.xlane.xlu1 %2549  ;;  %v2541_v21 = vpop.xlane.xlu0 %2540 }
 0x676   : > { %4879 = vpow2.f32 %v2562_v16  ;;  %v2557_v7 = vsub.f32 %v4546_v47, %v2541_v21  ;;  %v2560_v60 = vsub.f32 %v4549_v9, %v2550_v10 }
 0x678   : > { %v2568_v45 = vmul.f32 1.442695, %v2557_v7  ;;  %v2574_v5 = vmul.f32 1.442695, %v2560_v60 }
 0x679   : > { %v2544_v41 = vpop.xlane.xlu1 %2543  ;;  %v2547_v37 = vpop.xlane.xlu0 %2546 }
 0x67a   : > { %4881 = vpow2.f32 %v2568_v45  ;;  %v2558_v58 = vsub.f32 %v2515_v52, %v2544_v41  ;;  %v2559_v32 = vsub.f32 %v7097_v44, %v2547_v37 }
 0x67b   : > { %4883 = vpow2.f32 %v2564_v46 }
 0x67c   : > { %v7109_v22 = vpop.eup %4877  ;;  %4885 = vpow2.f32 %v2574_v5  ;;  %v2570_v39 = vmul.f32 1.442695, %v2558_v58  ;;  %v2572_v43 = vmul.f32 1.442695, %v2559_v32 }
 0x67d   : > { %v2623_v23 = vpop.permute.xlu1 %2622  ;;  %v2553_v61 = vpop.xlane.xlu0 %2552  ;;  %v2584_v1 = vsel %vm2243_vm5, %v7109_v22, 0.0 }
 0x67e   : > { %4551 = vmatprep.subr.bf16.mxu1 %v2623_v23  ;;  %2585 = vadd.xlane.f32.xlu1 %v2584_v1  ;;  %v2561_v34 = vsub.f32 %v4550_v25, %v2553_v61  ;;  %4887 = vpow2.f32 %v2570_v39 }
 0x67f   : > { %4552 = vmatpush3.bf16.msra.mxu1 %v2623_v23 }
 0x680   : > { %v7113_v17 = vpop.eup %4879  ;;  %v2576_v40 = vmul.f32 1.442695, %v2561_v34 }
 0x681   : > { %v2627_v3 = vpop.permute.xlu1 %2626  ;;  %v2625_v4 = vpop.permute.xlu0 %2624  ;;  %v2578_v8 = vsel %vm2243_vm5, %v7113_v17, 0.0 }
 0x682   : > { %2579 = vadd.xlane.f32.xlu1 %v2578_v8  ;;  %4553 = vmatprep.subr.bf16.mxu1 %v2625_v4  ;;  %4889 = vpow2.f32 %v2576_v40 }
 0x683   : > { %4554 = vmatpush3.bf16.msra.mxu1 %v2625_v4  ;;  %4891 = vpow2.f32 %v2572_v43 }
 0x684   : > { %4555 = vmatprep.subr.bf16.mxu1 %v2627_v3  ;;  %v4882_v55 = vpop.eup %4881 }
 0x685   : > { %v2629_v19 = vpop.permute.xlu1 %2628  ;;  %v2587_v30 = vsel %vm2243_vm5, %v4882_v55, 0.0  ;;  %v4884_v54 = vpop.eup %4883 }
 0x686   : > { %2588 = vadd.xlane.f32.xlu0 %v2587_v30  ;;  %v2581_v11 = vsel %vm2243_vm5, %v4884_v54, 0.0  ;;  %v7119_v18 = vpop.eup %4885 }
 0x687   : > { %4556 = vmatpush3.bf16.msra.mxu1 %v2627_v3  ;;  %v2596_v29 = vsel %vm2243_vm5, %v7119_v18, 0.0 }
 0x688   : > { %4557 = vmatprep.subr.bf16.mxu1 %v2629_v19  ;;  %v7124_v15 = vpop.eup %4887 }
 0x689   : > { %v2720_v0 = vpop.permute.xlu1 %2719  ;;  %v2590_v42 = vsel %vm2243_vm5, %v7124_v15, 0.0 }
 0x68a   : > { %2582 = vadd.xlane.f32.xlu0 %v2581_v11  ;;  %v2740_v45 = vsel %vm2153_vm4, %v2720_v0, 0 }
 0x68b   : > { %4558 = vmatpush3.bf16.msra.mxu1 %v2629_v19 }
 0x68c   : > { %4679 = vmatprep.subr.msk.bf16.mxu1 %vm2153_vm4, %v2720_v0  ;;  %v7128_v47 = vpop.eup %4889 }
 0x68d   : > { %v2599_v63 = vsel %vm2243_vm5, %v7128_v47, 0.0  ;;  %v4892_v9 = vpop.eup %4891 }
 0x68e   : > { %2597 = vadd.xlane.f32.xlu0 %v2596_v29  ;;  %v2593_v52 = vsel %vm2243_vm5, %v4892_v9, 0.0 }
 0x692   : > { %2591 = vadd.xlane.f32.xlu0 %v2590_v42 }
 0x693   : > { %2723 = vrot.lane.b32.xlu1 %v6986_v56, %s5131_s17 }
 0x696   : > { %2600 = vadd.xlane.f32.xlu0 %v2599_v63 }
 0x6ac   : > { %2721 = vrot.lane.b32.xlu0 %v6976_v26, %s5131_s17 }
 0x6b0   : > { %2711 = vrot.lane.b32.xlu0 %v6978_v14, %s5132_s24 }
 0x6b4   : > { %2715 = vrot.lane.b32.xlu0 %v6986_v56, %s5132_s24 }
 0x6b7   : > { %2594 = vadd.xlane.f32.xlu1 %v2593_v52 }
 0x6c8   : > { %2725 = vrot.lane.b32.xlu1 %v6984_v59, %s5131_s17  ;;  %s5138_s17 = smov 16  }
 0x6cc   : > { %2713 = vrot.lane.b32.xlu1 %v6976_v26, %s5132_s24 }
 0x6d0   : > { %2717 = vrot.lane.b32.xlu1 %v6984_v59, %s5132_s24  ;;  %s3415_s24 = scalar_lea.vmem %s7747_s6, %s5107_s27 }
 0x70b   : > { %v2586_v33 = vpop.xlane.xlu1 %2585 }
 0x70f   : > { %v2580_v57 = vpop.xlane.xlu1 %2579 }
 0x713   : > { %v2589_v25 = vpop.xlane.xlu0 %2588  ;;  %v2724_v60 = vpop.permute.xlu1 %2723 }
 0x714   : > { %4893 = vrcp.f32 %v2589_v25  ;;  %v2746_v41 = vsel %vm2153_vm4, %v2724_v60, 0 }
 0x715   : > { %4895 = vrcp.f32 %v2580_v57 }
 0x716   : > { %4897 = vrcp.f32 %v2586_v33 }
 0x717   : > { %v2583_v44 = vpop.xlane.xlu0 %2582 }
 0x718   : > { %4899 = vrcp.f32 %v2583_v44 }
 0x71b   : > { %v2598_v35 = vpop.xlane.xlu0 %2597 }
 0x71e   : > { %v4894_v20 = vpop.eup %4893 }
 0x71f   : > { %v2592_v12 = vpop.xlane.xlu0 %2591  ;;  %v4896_v53 = vpop.eup %4895  ;;  %v2609_v49 = vmul.f32 %v4894_v20, %v4882_v55 }
 0x720   : > { %v4898_v50 = vpop.eup %4897  ;;  %v2603_v27 = vmul.f32 %v4896_v53, %v7113_v17 }
 0x721   : > { %v2607_v28 = vmul.f32 %v4898_v50, %v7109_v22 }
 0x722   : > { %v4900_v13 = vpop.eup %4899 }
 0x723   : > { %v2601_v36 = vpop.xlane.xlu0 %2600  ;;  %v2605_v16 = vmul.f32 %v4900_v13, %v4884_v54  ;;  %v2619_v21 = vpack.c.bf16 %v2609_v49, %v2607_v28 }
 0x724   : > { %4901 = vrcp.f32 %v2601_v36 }
 0x725   : > { %v2618_v10 = vpack.c.bf16 %v2605_v16, %v2603_v27  ;;  %4903 = vrcp.f32 %v2592_v12 }
 0x726   : > { %4905 = vrcp.f32 %v2598_v35 }
 0x727   : > { %4559 = vmatprep.mubr.msk.bf16.mxu1 %vm2243_vm5, %v2618_v10  ;;  %v2722_v7 = vpop.permute.xlu0 %2721 }
 0x728   : > { %4560 = vmatmul.mubr.msk.bf16.vlgmr.msra.gmra.mrb[8].mxu1 %vm2243_vm5, %v2619_v21  ;;  %v2743_v46 = vsel %vm2153_vm4, %v2722_v7, 0 }
 0x729   : > { %4568 = vmatpush3.bf16.xpose.msra.mxu1 %v2740_v45 }
 0x72a   : > { %4680 = vmatprep.subr.msk.bf16.mxu1 %vm2153_vm4, %v2722_v7 }
 0x72b   : > { %v2712_v55 = vpop.permute.xlu0 %2711 }
 0x72e   : > { %v4902_v58 = vpop.eup %4901 }
 0x72f   : > { %v4904_v23 = vpop.eup %4903  ;;  %v2617_v17 = vmul.f32 %v4902_v58, %v7128_v47  ;;  %v2716_v19 = vpop.permute.xlu0 %2715 }
 0x730   : > { %v4906_v61 = vpop.eup %4905  ;;  %v2611_v39 = vmul.f32 %v4904_v23, %v7124_v15 }
 0x731   : > { %4570 = vmatpush3.bf16.xpose.msra.mxu1 %v2743_v46  ;;  %v2615_v3 = vmul.f32 %v4906_v61, %v7119_v18 }
 0x732   : > { %4681 = vmatprep.subr.msk.bf16.mxu1 %vm2153_vm4, %v2724_v60 }
 0x733   : > { %v2621_v8 = vpack.c.bf16 %v2617_v17, %v2615_v3 }
 0x739   : > { %4572 = vmatpush3.bf16.xpose.msra.mxu1 %v2746_v41 }
 0x744   : > { %v2595_v37 = vpop.xlane.xlu1 %2594 }
 0x745   : > { %4907 = vrcp.f32 %v2595_v37 }
 0x748   : > { %v2726_v22 = vpop.permute.xlu1 %2725 }
 0x749   : > { %v2749_v5 = vsel %vm2153_vm4, %v2726_v22, 0  ;;  %4682 = vmatprep.subr.msk.bf16.mxu1 %vm2153_vm4, %v2726_v22 }
 0x74a   : > { %4574 = vmatpush3.bf16.xpose.msra.mxu1 %v2749_v5 }
 0x74c   : > { %v2714_v40 = vpop.permute.xlu1 %2713 }
 0x74f   : > { %v4908_v1 = vpop.eup %4907 }
 0x750   : > { %v2613_v34 = vmul.f32 %v4908_v1, %v4892_v9  ;;  %v2718_v30 = vpop.permute.xlu1 %2717 }
 0x752   : > { %v2620_v4 = vpack.c.bf16 %v2613_v34, %v2611_v39 }
 0x754   : > { %4563 = vmatprep.mubr.msk.bf16.mxu1 %vm2243_vm5, %v2620_v4 }
 0x755   : > { %4564 = vmatmul.mubr.msk.bf16.gmra.mrb[12].mxu1 %vm2243_vm5, %v2621_v8 }
 0x756   : > { %4575 = vmatprep.mubr.msk.bf16.mxu1 %vm2153_vm4, %v2712_v55 }
 0x75d   : > { %4576 = vmatmul.mubr.msk.bf16.vlgmr.msra.gmra.mrb[16].mxu1 %vm2153_vm4, %v2714_v40 }
 0x75e   : > { %4579 = vmatprep.mubr.msk.bf16.mxu1 %vm2153_vm4, %v2716_v19 }
 0x765   : > { %4580 = vmatmul.mubr.msk.bf16.gmra.mrb[20].mxu1 %vm2153_vm4, %v2718_v30 }
 0x7fb   : > { %v7164_v54 = vpop.f32.mrb[8].mxu1 }
 0x7fc   : > { %v7166_v11 = vpop.f32.mrb[9].mxu1 }
 0x7fd   : > { %v7168_v18 = vpop.f32.mrb[10].mxu1 }
 0x7fe   : > { %v4780_v0 = vpack.i.bf16 %v7168_v18, %v7164_v54  ;;  %v7172_v29 = vpop.f32.mrb[11].mxu1 }
 0x7ff   : > { %v4775_v15 = vpack.i.bf16 %v7172_v29, %v7166_v11 }
 0x828   : > { %v7176_v42 = vpop.f32.mrb[12].mxu1 }
 0x829   : > { %v7178_v47 = vpop.f32.mrb[13].mxu1 }
 0x82a   : > { %v7180_v63 = vpop.f32.mrb[14].mxu1 }
 0x82b   : > { %v4800_v32 = vpack.i.bf16 %v7180_v63, %v7176_v42  ;;  %v7184_v43 = vpop.f32.mrb[15].mxu1 }
 0x82c   : > { %v4795_v9 = vpack.i.bf16 %v7184_v43, %v7178_v47 }
 0x830   : > { %v4577_v52 = vpop.f32.mrb[16].mxu1 }
 0x831   : > { %v2785_v33 = vpop.f32.mrb[17].mxu1  ;;  %v2822_v57 = vsel %vm2243_vm5, %v4577_v52, -inf }
 0x832   : > { %2823 = vmax.xlane.f32.xlu0 %v2822_v57  ;;  %v4578_v25 = vpop.f32.mrb[18].mxu1  ;;  %v2816_v20 = vsel %vm2243_vm5, %v2785_v33, -inf }
 0x833   : > { %v2788_v44 = vpop.f32.mrb[19].mxu1  ;;  %v2825_v50 = vsel %vm2243_vm5, %v4578_v25, -inf }
 0x834   : > { %v2819_v35 = vsel %vm2243_vm5, %v2788_v44, -inf }
 0x835   : > { %2820 = vmax.xlane.f32.xlu1 %v2819_v35 }
 0x836   : > { %2817 = vmax.xlane.f32.xlu0 %v2816_v20 }
 0x838   : > { %v4581_v12 = vpop.f32.mrb[20].mxu1 }
 0x839   : > { %v2801_v53 = vpop.f32.mrb[21].mxu1  ;;  %v2834_v13 = vsel %vm2243_vm5, %v4581_v12, -inf }
 0x83a   : > { %2826 = vmax.xlane.f32.xlu0 %v2825_v50  ;;  %2835 = vmax.xlane.f32.xlu1 %v2834_v13  ;;  %v4582_v49 = vpop.f32.mrb[22].mxu1  ;;  %v2828_v16 = vsel %vm2243_vm5, %v2801_v53, -inf }
 0x83b   : > { %v7193_v36 = vpop.f32.mrb[23].mxu1  ;;  %v2837_v28 = vsel %vm2243_vm5, %v4582_v49, -inf }
 0x83c   : > { %v2831_v27 = vsel %vm2243_vm5, %v7193_v36, -inf }
 0x83e   : > { %2829 = vmax.xlane.f32.xlu1 %v2828_v16  ;;  %2832 = vmax.xlane.f32.xlu0 %v2831_v27 }
 0x842   : > { %2838 = vmax.xlane.f32.xlu0 %v2837_v28 }
 0x84f   : > { %2908 = vrot.lane.b32.xlu1 %v6978_v14, %s5133_s29 }
 0x853   : > { %2912 = vrot.lane.b32.xlu1 %v6986_v56, %s5133_s29 }
 0x857   : > { %2914 = vrot.lane.b32.xlu1 %v6984_v59, %s5133_s29 }
 0x858   : > { %2910 = vrot.lane.b32.xlu0 %v6976_v26, %s5133_s29  ;;  %s3667_s29 = scalar_lea.vmem %s7751_s10, %s5107_s27 }
 0x85b   : > { %3005 = vrot.lane.b32.xlu1 %v6978_v14, %s5134_s22 }
 0x8bf   : > { %v2824_v10 = vpop.xlane.xlu0 %2823 }
 0x8c0   : > { %v2842_v21 = vsub.f32 %v4577_v52, %v2824_v10 }
 0x8c2   : > { %v2852_v7 = vmul.f32 1.442695, %v2842_v21  ;;  %v2821_v45 = vpop.xlane.xlu1 %2820 }
 0x8c3   : > { %v2818_v46 = vpop.xlane.xlu0 %2817  ;;  %v2841_v37 = vsub.f32 %v2788_v44, %v2821_v45 }
 0x8c4   : > { %4909 = vpow2.f32 %v2852_v7  ;;  %v2840_v60 = vsub.f32 %v2785_v33, %v2818_v46 }
 0x8c5   : > { %v2850_v61 = vmul.f32 1.442695, %v2841_v37 }
 0x8c6   : > { %v2848_v41 = vmul.f32 1.442695, %v2840_v60 }
 0x8c7   : > { %v2836_v22 = vpop.xlane.xlu1 %2835  ;;  %v2827_v5 = vpop.xlane.xlu0 %2826 }
 0x8c8   : > { %4911 = vpow2.f32 %v2848_v41  ;;  %v2843_v58 = vsub.f32 %v4578_v25, %v2827_v5  ;;  %v2846_v1 = vsub.f32 %v4581_v12, %v2836_v22 }
 0x8ca   : > { %v2854_v23 = vmul.f32 1.442695, %v2843_v58  ;;  %v2860_v3 = vmul.f32 1.442695, %v2846_v1 }
 0x8cb   : > { %v2830_v17 = vpop.xlane.xlu1 %2829  ;;  %v2833_v39 = vpop.xlane.xlu0 %2832 }
 0x8cc   : > { %4913 = vpow2.f32 %v2854_v23  ;;  %v2844_v4 = vsub.f32 %v2801_v53, %v2830_v17  ;;  %v2845_v7 = vsub.f32 %v7193_v36, %v2833_v39 }
 0x8cd   : > { %4915 = vpow2.f32 %v2850_v61 }
 0x8ce   : > { %v7205_v34 = vpop.eup %4909  ;;  %4917 = vpow2.f32 %v2860_v3  ;;  %v2856_v30 = vmul.f32 1.442695, %v2844_v4  ;;  %v2858_v45 = vmul.f32 1.442695, %v2845_v7 }
 0x8cf   : > { %v2909_v8 = vpop.permute.xlu1 %2908  ;;  %v2839_v55 = vpop.xlane.xlu0 %2838  ;;  %v2870_v40 = vsel %vm2243_vm5, %v7205_v34, 0.0 }
 0x8d0   : > { %4583 = vmatprep.subr.bf16.mxu0 %v2909_v8  ;;  %2871 = vadd.xlane.f32.xlu1 %v2870_v40  ;;  %v2847_v52 = vsub.f32 %v4582_v49, %v2839_v55  ;;  %4919 = vpow2.f32 %v2856_v30 }
 0x8d1   : > { %4584 = vmatpush3.bf16.msra.mxu0 %v2909_v8 }
 0x8d2   : > { %v7209_v19 = vpop.eup %4911  ;;  %v2862_v35 = vmul.f32 1.442695, %v2847_v52 }
 0x8d3   : > { %v2913_v33 = vpop.permute.xlu1 %2912  ;;  %v2911_v57 = vpop.permute.xlu0 %2910  ;;  %v2864_v25 = vsel %vm2243_vm5, %v7209_v19, 0.0 }
 0x8d4   : > { %2865 = vadd.xlane.f32.xlu1 %v2864_v25  ;;  %4585 = vmatprep.subr.bf16.mxu0 %v2911_v57  ;;  %4921 = vpow2.f32 %v2862_v35 }
 0x8d5   : > { %4586 = vmatpush3.bf16.msra.mxu0 %v2911_v57  ;;  %4923 = vpow2.f32 %v2858_v45 }
 0x8d6   : > { %4587 = vmatprep.subr.bf16.mxu0 %v2913_v33  ;;  %v4914_v44 = vpop.eup %4913 }
 0x8d7   : > { %v2915_v20 = vpop.permute.xlu1 %2914  ;;  %v2873_v12 = vsel %vm2243_vm5, %v4914_v44, 0.0  ;;  %v4916_v53 = vpop.eup %4915 }
 0x8d8   : > { %2874 = vadd.xlane.f32.xlu0 %v2873_v12  ;;  %v2867_v50 = vsel %vm2243_vm5, %v4916_v53, 0.0  ;;  %v7215_v13 = vpop.eup %4917 }
 0x8d9   : > { %4588 = vmatpush3.bf16.msra.mxu0 %v2913_v33  ;;  %v2882_v27 = vsel %vm2243_vm5, %v7215_v13, 0.0 }
 0x8da   : > { %4589 = vmatprep.subr.bf16.mxu0 %v2915_v20  ;;  %v7220_v16 = vpop.eup %4919 }
 0x8db   : > { %v3006_v49 = vpop.permute.xlu1 %3005  ;;  %v2876_v28 = vsel %vm2243_vm5, %v7220_v16, 0.0 }
 0x8dc   : > { %2868 = vadd.xlane.f32.xlu0 %v2867_v50  ;;  %v3026_v33 = vsel %vm2153_vm4, %v3006_v49, 0 }
 0x8dd   : > { %4590 = vmatpush3.bf16.msra.mxu0 %v2915_v20 }
 0x8de   : > { %4683 = vmatprep.subr.msk.bf16.mxu0 %vm2153_vm4, %v3006_v49  ;;  %v7224_v10 = vpop.eup %4921 }
 0x8df   : > { %v2885_v21 = vsel %vm2243_vm5, %v7224_v10, 0.0  ;;  %v4924_v46 = vpop.eup %4923 }
 0x8e0   : > { %2883 = vadd.xlane.f32.xlu0 %v2882_v27  ;;  %v2879_v60 = vsel %vm2243_vm5, %v4924_v46, 0.0 }
 0x8e4   : > { %2877 = vadd.xlane.f32.xlu0 %v2876_v28 }
 0x8e5   : > { %3009 = vrot.lane.b32.xlu1 %v6986_v56, %s5134_s22 }
 0x8e8   : > { %2886 = vadd.xlane.f32.xlu0 %v2885_v21 }
 0x8fe   : > { %3007 = vrot.lane.b32.xlu0 %v6976_v26, %s5134_s22 }
 0x902   : > { %2997 = vrot.lane.b32.xlu0 %v6978_v14, %s5135_s16 }
 0x906   : > { %3001 = vrot.lane.b32.xlu0 %v6986_v56, %s5135_s16 }
 0x909   : > { %2880 = vadd.xlane.f32.xlu1 %v2879_v60 }
 0x91a   : > { %3011 = vrot.lane.b32.xlu1 %v6984_v59, %s5134_s22  ;;  %s3410_s22 = scalar_lea.vmem %s7746_s5, %s6962_s30 }
 0x91e   : > { %2999 = vrot.lane.b32.xlu1 %v6976_v26, %s5135_s16 }
 0x922   : > { %3003 = vrot.lane.b32.xlu1 %v6984_v59, %s5135_s16  ;;  %s5139_s16 = smov 24  }
 0x95d   : > { %v2872_v36 = vpop.xlane.xlu1 %2871 }
 0x961   : > { %v2866_v41 = vpop.xlane.xlu1 %2865 }
 0x965   : > { %v2875_v37 = vpop.xlane.xlu0 %2874  ;;  %v3010_v25 = vpop.permute.xlu1 %3009 }
 0x966   : > { %4925 = vrcp.f32 %v2875_v37 }
 0x967   : > { %4927 = vrcp.f32 %v2866_v41 }
 0x968   : > { %4929 = vrcp.f32 %v2872_v36 }
 0x969   : > { %v2869_v22 = vpop.xlane.xlu0 %2868 }
 0x96a   : > { %4931 = vrcp.f32 %v2869_v22 }
 0x96d   : > { %v2884_v5 = vpop.xlane.xlu0 %2883 }
 0x970   : > { %v4926_v58 = vpop.eup %4925 }
 0x971   : > { %v2878_v23 = vpop.xlane.xlu0 %2877  ;;  %v4928_v61 = vpop.eup %4927  ;;  %v2895_v39 = vmul.f32 %v4926_v58, %v4914_v44 }
 0x972   : > { %v4930_v1 = vpop.eup %4929  ;;  %v2889_v4 = vmul.f32 %v4928_v61, %v7209_v19 }
 0x973   : > { %v2893_v55 = vmul.f32 %v4930_v1, %v7205_v34  ;;  %v3032_v34 = vsel %vm2153_vm4, %v3010_v25, 0 }
 0x974   : > { %v4932_v17 = vpop.eup %4931 }
 0x975   : > { %v2887_v3 = vpop.xlane.xlu0 %2886  ;;  %v2891_v8 = vmul.f32 %v4932_v17, %v4916_v53  ;;  %v2905_v30 = vpack.c.bf16 %v2895_v39, %v2893_v55 }
 0x976   : > { %4933 = vrcp.f32 %v2887_v3 }
 0x977   : > { %v2904_v40 = vpack.c.bf16 %v2891_v8, %v2889_v4  ;;  %4935 = vrcp.f32 %v2878_v23 }
 0x978   : > { %4937 = vrcp.f32 %v2884_v5 }
 0x979   : > { %4591 = vmatprep.mubr.msk.bf16.mxu0 %vm2243_vm5, %v2904_v40  ;;  %v3008_v52 = vpop.permute.xlu0 %3007 }
 0x97a   : > { %4592 = vmatmul.mubr.msk.bf16.vlgmr.msra.gmra.mrb[24].mxu0 %vm2243_vm5, %v2905_v30  ;;  %v3029_v57 = vsel %vm2153_vm4, %v3008_v52, 0 }
 0x97b   : > { %4600 = vmatpush3.bf16.xpose.msra.mxu0 %v3026_v33 }
 0x97c   : > { %4684 = vmatprep.subr.msk.bf16.mxu0 %vm2153_vm4, %v3008_v52 }
 0x97d   : > { %v2998_v60 = vpop.permute.xlu0 %2997 }
 0x980   : > { %v4934_v20 = vpop.eup %4933 }
 0x981   : > { %v4936_v12 = vpop.eup %4935  ;;  %v2903_v49 = vmul.f32 %v4934_v20, %v7224_v10  ;;  %v3002_v41 = vpop.permute.xlu0 %3001 }
 0x982   : > { %v4938_v53 = vpop.eup %4937  ;;  %v2897_v27 = vmul.f32 %v4936_v12, %v7220_v16 }
 0x983   : > { %4602 = vmatpush3.bf16.xpose.msra.mxu0 %v3029_v57  ;;  %v2901_v21 = vmul.f32 %v4938_v53, %v7215_v13 }
 0x984   : > { %4685 = vmatprep.subr.msk.bf16.mxu0 %vm2153_vm4, %v3010_v25 }
 0x985   : > { %v2907_v45 = vpack.c.bf16 %v2903_v49, %v2901_v21 }
 0x98b   : > { %4604 = vmatpush3.bf16.xpose.msra.mxu0 %v3032_v34 }
 0x996   : > { %v2881_v19 = vpop.xlane.xlu1 %2880 }
 0x997   : > { %4939 = vrcp.f32 %v2881_v19 }
 0x99a   : > { %v3012_v44 = vpop.permute.xlu1 %3011 }
 0x99b   : > { %v3035_v35 = vsel %vm2153_vm4, %v3012_v44, 0  ;;  %4686 = vmatprep.subr.msk.bf16.mxu0 %vm2153_vm4, %v3012_v44 }
 0x99c   : > { %4606 = vmatpush3.bf16.xpose.msra.mxu0 %v3035_v35 }
 0x99e   : > { %v3000_v36 = vpop.permute.xlu1 %2999 }
 0x9a1   : > { %v4940_v50 = vpop.eup %4939 }
 0x9a2   : > { %v2899_v28 = vmul.f32 %v4940_v50, %v4924_v46  ;;  %v3004_v10 = vpop.permute.xlu1 %3003 }
 0x9a4   : > { %v2906_v7 = vpack.c.bf16 %v2899_v28, %v2897_v27 }
 0x9a6   : > { %4595 = vmatprep.mubr.msk.bf16.mxu0 %vm2243_vm5, %v2906_v7 }
 0x9a7   : > { %4596 = vmatmul.mubr.msk.bf16.gmra.mrb[28].mxu0 %vm2243_vm5, %v2907_v45 }
 0x9a8   : > { %4607 = vmatprep.mubr.msk.bf16.mxu0 %vm2153_vm4, %v2998_v60 }
 0x9af   : > { %4608 = vmatmul.mubr.msk.bf16.vlgmr.msra.gmra.mrb[32].mxu0 %vm2153_vm4, %v3000_v36 }
 0x9b0   : > { %4611 = vmatprep.mubr.msk.bf16.mxu0 %vm2153_vm4, %v3002_v41 }
 0x9b7   : > { %4612 = vmatmul.mubr.msk.bf16.gmra.mrb[36].mxu0 %vm2153_vm4, %v3004_v10 }
 0xa4d   : > { %v7260_v16 = vpop.f32.mrb[24].mxu0 }
 0xa4e   : > { %v7262_v13 = vpop.f32.mrb[25].mxu0 }
 0xa4f   : > { %v7264_v46 = vpop.f32.mrb[26].mxu0 }
 0xa50   : > { %v4790_v37 = vpack.i.bf16 %v7264_v46, %v7260_v16  ;;  %v7268_v22 = vpop.f32.mrb[27].mxu0 }
 0xa51   : > { %v4785_v5 = vpack.i.bf16 %v7268_v22, %v7262_v13 }
 0xa7a   : > { %v7272_v58 = vpop.f32.mrb[28].mxu0 }
 0xa7b   : > { %v7274_v23 = vpop.f32.mrb[29].mxu0 }
 0xa7c   : > { %v7276_v61 = vpop.f32.mrb[30].mxu0 }
 0xa7d   : > { %v4820_v1 = vpack.i.bf16 %v7276_v61, %v7272_v58  ;;  %v7280_v17 = vpop.f32.mrb[31].mxu0 }
 0xa7e   : > { %v4815_v39 = vpack.i.bf16 %v7280_v17, %v7274_v23 }
 0xa82   : > { %v4609_v3 = vpop.f32.mrb[32].mxu0 }
 0xa83   : > { %v3071_v4 = vpop.f32.mrb[33].mxu0  ;;  %v3108_v52 = vsel %vm2243_vm5, %v4609_v3, -inf }
 0xa84   : > { %v4610_v8 = vpop.f32.mrb[34].mxu0  ;;  %v3102_v55 = vsel %vm2243_vm5, %v3071_v4, -inf }
 0xa85   : > { %3103 = vmax.xlane.f32.xlu0 %v3102_v55  ;;  %v3074_v40 = vpop.f32.mrb[35].mxu0  ;;  %v3111_v34 = vsel %vm2243_vm5, %v4610_v8, -inf }
 0xa86   : > { %v3105_v30 = vsel %vm2243_vm5, %v3074_v40, -inf }
 0xa87   : > { %3106 = vmax.xlane.f32.xlu1 %v3105_v30 }
 0xa89   : > { %3109 = vmax.xlane.f32.xlu0 %v3108_v52 }
 0xa8a   : > { %v4613_v33 = vpop.f32.mrb[36].mxu0 }
 0xa8b   : > { %v3087_v57 = vpop.f32.mrb[37].mxu0  ;;  %v3120_v35 = vsel %vm2243_vm5, %v4613_v33, -inf }
 0xa8c   : > { %v4614_v25 = vpop.f32.mrb[38].mxu0  ;;  %v3114_v19 = vsel %vm2243_vm5, %v3087_v57, -inf }
 0xa8d   : > { %3112 = vmax.xlane.f32.xlu0 %v3111_v34  ;;  %3115 = vmax.xlane.f32.xlu1 %v3114_v19  ;;  %v3090_v44 = vpop.f32.mrb[39].mxu0  ;;  %v3123_v12 = vsel %vm2243_vm5, %v4614_v25, -inf }
 0xa8e   : > { %v3117_v20 = vsel %vm2243_vm5, %v3090_v44, -inf }
 0xa91   : > { %3121 = vmax.xlane.f32.xlu1 %v3120_v35  ;;  %3118 = vmax.xlane.f32.xlu0 %v3117_v20 }
 0xa95   : > { %3124 = vmax.xlane.f32.xlu0 %v3123_v12 }
 0xaa2   : > { %3194 = vrot.lane.b32.xlu1 %v6978_v14, %s5136_s23 }
 0xb12   : > { %v3104_v53 = vpop.xlane.xlu0 %3103 }
 0xb13   : > { %v3126_v50 = vsub.f32 %v3071_v4, %v3104_v53 }
 0xb14   : > { %v3107_v49 = vpop.xlane.xlu1 %3106 }
 0xb15   : > { %v3134_v21 = vmul.f32 1.442695, %v3126_v50  ;;  %v3127_v45 = vsub.f32 %v3074_v40, %v3107_v49 }
 0xb16   : > { %v3110_v27 = vpop.xlane.xlu0 %3109 }
 0xb17   : > { %v3128_v28 = vsub.f32 %v4609_v3, %v3110_v27  ;;  %v3136_v30 = vmul.f32 1.442695, %v3127_v45 }
 0xb19   : > { %v3138_v7 = vmul.f32 1.442695, %v3128_v28 }
 0xb1a   : > { %v3116_v60 = vpop.xlane.xlu1 %3115  ;;  %v3113_v36 = vpop.xlane.xlu0 %3112 }
 0xb1b   : > { %4941 = vpow2.f32 %v3138_v7  ;;  %v3129_v41 = vsub.f32 %v4610_v8, %v3113_v36  ;;  %v3130_v10 = vsub.f32 %v3087_v57, %v3116_v60 }
 0xb1c   : > { %4943 = vpow2.f32 %v3134_v21 }
 0xb1d   : > { %v3140_v55 = vmul.f32 1.442695, %v3129_v41  ;;  %v3142_v14 = vmul.f32 1.442695, %v3130_v10 }
 0xb1e   : > { %v3122_v52 = vpop.xlane.xlu1 %3121  ;;  %v3119_v34 = vpop.xlane.xlu0 %3118 }
 0xb1f   : > { %v3132_v19 = vsub.f32 %v4613_v33, %v3122_v52  ;;  %4945 = vpow2.f32 %v3140_v55  ;;  %v3131_v35 = vsub.f32 %v3090_v44, %v3119_v34 }
 0xb20   : > { %4947 = vpow2.f32 %v3136_v30 }
 0xb21   : > { %v3146_v4 = vmul.f32 1.442695, %v3132_v19  ;;  %v3144_v57 = vmul.f32 1.442695, %v3131_v35 }
 0xb22   : > { %v3195_v3 = vpop.permute.xlu1 %3194  ;;  %v3125_v20 = vpop.xlane.xlu0 %3124 }
 0xb23   : > { %4949 = vpow2.f32 %v3146_v4  ;;  %v3133_v40 = vsub.f32 %v4614_v25, %v3125_v20  ;;  %4615 = vmatprep.subr.bf16.mxu1 %v3195_v3 }
 0xb24   : > { %4616 = vmatpush3.bf16.msra.mxu1 %v3195_v3  ;;  %4951 = vpow2.f32 %v3142_v14 }
 0xb25   : > { %v7294_v12 = vpop.eup %4941  ;;  %v3148_v8 = vmul.f32 1.442695, %v3133_v40  ;;  %v4837_v40 = vld [vmem:[%s3410_s22] sm:$0xff]  }
 0xb26   : > { %v3156_v53 = vsel %vm2243_vm5, %v7294_v12, 0.0  ;;  %v4944_v33 = vpop.eup %4943 }
 0xb27   : > { %4953 = vpow2.f32 %v3148_v8  ;;  %3157 = vadd.xlane.f32.xlu1 %v3156_v53  ;;  %v3150_v44 = vsel %vm2243_vm5, %v4944_v33, 0.0 }
 0xb28   : > { %4955 = vpow2.f32 %v3144_v57 }
 0xb29   : > { %v7298_v50 = vpop.eup %4945 }
 0xb2a   : > { %v3159_v25 = vsel %vm2243_vm5, %v7298_v50, 0.0  ;;  %v4948_v49 = vpop.eup %4947 }
 0xb2b   : > { %3151 = vadd.xlane.f32.xlu1 %v3150_v44  ;;  %3160 = vadd.xlane.f32.xlu0 %v3159_v25  ;;  %v3153_v7 = vsel %vm2243_vm5, %v4948_v49, 0.0 }
 0xb2d   : > { %v7303_v27 = vpop.eup %4949 }
 0xb2e   : > { %v3168_v28 = vsel %vm2243_vm5, %v7303_v27, 0.0  ;;  %v4952_v21 = vpop.eup %4951 }
 0xb2f   : > { %3169 = vadd.xlane.f32.xlu1 %v3168_v28  ;;  %3154 = vadd.xlane.f32.xlu0 %v3153_v7  ;;  %v3162_v60 = vsel %vm2243_vm5, %v4952_v21, 0.0 }
 0xb31   : > { %v7308_v45 = vpop.eup %4953 }
 0xb32   : > { %v3171_v36 = vsel %vm2243_vm5, %v7308_v45, 0.0  ;;  %v4956_v41 = vpop.eup %4955 }
 0xb33   : > { %3163 = vadd.xlane.f32.xlu1 %v3162_v60  ;;  %3172 = vadd.xlane.f32.xlu0 %v3171_v36  ;;  %v3165_v10 = vsel %vm2243_vm5, %v4956_v41, 0.0 }
 0xb37   : > { %3166 = vadd.xlane.f32.xlu0 %v3165_v10 }
 0xb44   : > { %3198 = vrot.lane.b32.xlu1 %v6986_v56, %s5136_s23 }
 0xb48   : > { %3200 = vrot.lane.b32.xlu1 %v6984_v59, %s5136_s23 }
 0xb4c   : > { %4781 = vrot.lane.b32.xlu1 %v4780_v0, %s7924_s18 }
 0xb4d   : > { %3196 = vrot.lane.b32.xlu0 %v6976_v26, %s5136_s23  ;;  %s4399_s23 = sshll.u32 %s5107_s27, 5 }
 0xb50   : > { %4791 = vrot.lane.b32.xlu1 %v4790_v37, %s5138_s17 }
 0xb51   : > { %4776 = vrot.lane.b32.xlu0 %v4775_v15, %s7924_s18 }
 0xb54   : > { %4801 = vrot.lane.b32.xlu1 %v4800_v32, %s7924_s18 }
 0xb55   : > { %4786 = vrot.lane.b32.xlu0 %v4785_v5, %s5138_s17 }
 0xb59   : > { %4796 = vrot.lane.b32.xlu0 %v4795_v9, %s7924_s18  ;;  %s7460_s18 = scalar_lea.vmem %s7752_s11, %s4399_s23 }
 0xbb4   : > { %v3158_v26 = vpop.xlane.xlu1 %3157 }
 0xbb8   : > { %v3152_v59 = vpop.xlane.xlu1 %3151  ;;  %v3161_v56 = vpop.xlane.xlu0 %3160 }
 0xbb9   : > { %4957 = vrcp.f32 %v3152_v59 }
 0xbbc   : > { %v3170_v54 = vpop.xlane.xlu1 %3169  ;;  %v3155_v11 = vpop.xlane.xlu0 %3154 }
 0xbbd   : > { %4959 = vrcp.f32 %v3155_v11 }
 0xbbe   : > { %4961 = vrcp.f32 %v3161_v56 }
 0xbbf   : > { %4963 = vrcp.f32 %v3158_v26 }
 0xbc0   : > { %v3173_v18 = vpop.xlane.xlu0 %3172  ;;  %v3164_v0 = vpop.xlane.xlu1 %3163 }
 0xbc1   : > { %4965 = vrcp.f32 %v3164_v0 }
 0xbc3   : > { %v4958_v15 = vpop.eup %4957 }
 0xbc4   : > { %v3167_v29 = vpop.xlane.xlu0 %3166  ;;  %v3199_v63 = vpop.permute.xlu1 %3198  ;;  %v3175_v47 = vmul.f32 %v4958_v15, %v4944_v33 }
 0xbc5   : > { %4967 = vrcp.f32 %v3167_v29 }
 0xbc6   : > { %4969 = vrcp.f32 %v3173_v18 }
 0xbc7   : > { %v4960_v42 = vpop.eup %4959  ;;  %4971 = vrcp.f32 %v3170_v54 }
 0xbc8   : > { %v3197_v32 = vpop.permute.xlu0 %3196  ;;  %v3177_v43 = vmul.f32 %v4960_v42, %v4948_v49  ;;  %v4962_v16 = vpop.eup %4961 }
 0xbc9   : > { %4617 = vmatprep.subr.bf16.mxu1 %v3197_v32  ;;  %v4964_v13 = vpop.eup %4963  ;;  %v3201_v37 = vpop.permute.xlu1 %3200  ;;  %v3181_v5 = vmul.f32 %v4962_v16, %v7298_v50 }
 0xbca   : > { %4618 = vmatpush3.bf16.msra.mxu1 %v3197_v32  ;;  %v3190_v9 = vpack.c.bf16 %v3177_v43, %v3175_v47  ;;  %v3179_v30 = vmul.f32 %v4964_v13, %v7294_v12  ;;  %v4838_v12 = vld [vmem:[%s3410_s22 + $0x8] sm:$0xff]   ;;  %s3520_s22 = scalar_lea.vmem %s7748_s7, %s5107_s27 }
 0xbcb   : > { %4619 = vmatprep.subr.bf16.mxu1 %v3199_v63  ;;  %v4966_v46 = vpop.eup %4965 }
 0xbcc   : > { %4623 = vmatprep.mubr.msk.bf16.mxu1 %vm2243_vm5, %v3190_v9  ;;  %v3183_v52 = vmul.f32 %v4966_v46, %v4952_v21  ;;  %v3191_v34 = vpack.c.bf16 %v3181_v5, %v3179_v30  ;;  %v4777_v60 = vpop.permute.xlu0 %4776 }
 0xbcd   : > { %v4779_v58 = vunpack.i.h.bf16 %v4777_v60 }
 0xbce   : > { %4620 = vmatpush3.bf16.msra.mxu1 %v3199_v63 }
 0xbcf   : > { %v4968_v22 = vpop.eup %4967  ;;  %4621 = vmatprep.subr.bf16.mxu1 %v3201_v37  ;;  %v3380_v18 = vsel %vm2153_vm4, %v7082_v6, %v4779_v58 }
 0xbd0   : > { %v3185_v55 = vmul.f32 %v4968_v22, %v4956_v41  ;;  %v4970_v19 = vpop.eup %4969  ;;  %v4787_v41 = vpop.permute.xlu0 %4786 }
 0xbd1   : > { %v4972_v4 = vpop.eup %4971  ;;  %v3189_v35 = vmul.f32 %v4970_v19, %v7308_v45  ;;  %v4782_v45 = vpop.permute.xlu1 %4781  ;;  %v4788_v17 = vunpack.i.l.bf16 %v4787_v41 }
 0xbd2   : > { %4622 = vmatpush3.bf16.msra.mxu1 %v3201_v37  ;;  %v3192_v14 = vpack.c.bf16 %v3185_v55, %v3183_v52  ;;  %v3187_v3 = vmul.f32 %v4972_v4, %v7303_v27  ;;  %v4784_v10 = vunpack.i.h.bf16 %v4782_v45  ;;  %v4783_v26 = vunpack.i.l.bf16 %v4782_v45  ;;  %v4357_v45 = vld [vmem:[%s3415_s24] ss:$0 sm:$0xff]  ;;  %s3912_s24 = scalar_lea.vmem %s7754_s13, %s5107_s27 }
 0xbd3   : > { %4631 = vmatprep.subr.bf16.mxu1 %v4837_v40 }
 0xbd4   : > { %v3193_v20 = vpack.c.bf16 %v3189_v35, %v3187_v3  ;;  %v4797_v56 = vpop.permute.xlu0 %4796  ;;  %v3382_v54 = vsel %vm2153_vm4, %v7080_v31, %v4784_v10  ;;  %v3381_v11 = vsel %vm2153_vm4, %v7076_v51, %v4783_v26 }
 0xbd5   : > { %4624 = vmatmul.mubr.msk.bf16.vlgmr.msra.gmra.mrb[24].mxu1 %vm2243_vm5, %v3191_v34  ;;  %v4792_v36 = vpop.permute.xlu1 %4791  ;;  %v4799_v55 = vunpack.i.h.bf16 %v4797_v56  ;;  %v4798_v30 = vunpack.i.l.bf16 %v4797_v56 }
 0xbd6   : > { %4627 = vmatprep.mubr.msk.bf16.mxu1 %vm2243_vm5, %v3192_v14  ;;  %4632 = vmatpush3.bf16.msra.mxu1 %v4837_v40  ;;  %v4793_v59 = vunpack.i.l.bf16 %v4792_v36  ;;  %v4794_v23 = vunpack.i.h.bf16 %v4792_v36 }
 0xbd7   : > { %4633 = vmatprep.subr.bf16.mxu1 %v4838_v12 }
 0xbd8   : > { %v3390_v15 = vsel %vm3387_vm6, %v3381_v11, %v4793_v59  ;;  %v3391_v47 = vsel %vm3387_vm6, %v3382_v54, %v4794_v23  ;;  %v5006_v23 = vld [vmem:[#allocation2 + $0x10] sm:$0xff] }
 0xbd9   : > { %v4802_v61 = vpop.permute.xlu1 %4801 }
 0xbda   : > { %4634 = vmatpush3.bf16.msra.mxu1 %v4838_v12  ;;  %v4804_v16 = vunpack.i.h.bf16 %v4802_v61  ;;  %v4803_v46 = vunpack.i.l.bf16 %v4802_v61  ;;  %v3384_v12 = vsel %vm2153_vm4, %v7090_v38, %v4799_v55  ;;  %v5005_v61 = vld [vmem:[#allocation2] sm:$0xff]  ;;  %v5012_v55 = vld [vmem:[#allocation2 + $0x38] sm:$0xff] }
 0xbdc   : > { %v3386_v3 = vsel %vm2153_vm4, %v7088_v62, %v4804_v16 }
 0xbdd   : > { %4628 = vmatmul.mubr.msk.bf16.gmra.mrb[28].mxu1 %vm2243_vm5, %v3193_v20  ;;  %v3385_v20 = vsel %vm2153_vm4, %v7084_v48, %v4803_v46 }
 0xca8   : > { %v4625_v8 = vpop.f32.mrb[24].mxu1 }
 0xca9   : > { %v3252_v57 = vpop.f32.mrb[25].mxu1 }
 0xcaa   : > { %v4626_v53 = vpop.f32.mrb[26].mxu1 }
 0xcab   : > { %v4805_v33 = vpack.i.bf16 %v4626_v53, %v4625_v8  ;;  %v3255_v50 = vpop.f32.mrb[27].mxu1  ;;  %v3383_v8 = vsel %vm2153_vm4, %v7086_v24, %v4798_v30 }
 0xcac   : > { %v4810_v44 = vpack.i.bf16 %v3255_v50, %v3252_v57 }
 0xcad   : > { %4806 = vrot.lane.b32.xlu1 %v4805_v33, %s5139_s16 }
 0xcae   : > { %4811 = vrot.lane.b32.xlu0 %v4810_v44, %s5139_s16 }
 0xcb0   : > { %v4629_v25 = vpop.f32.mrb[28].mxu1 }
 0xcb1   : > { %4821 = vrot.lane.b32.xlu1 %v4820_v1, %s5138_s17  ;;  %v3268_v49 = vpop.f32.mrb[29].mxu1  ;;  %v4778_v1 = vunpack.i.l.bf16 %v4777_v60 }
 0xcb2   : > { %4816 = vrot.lane.b32.xlu0 %v4815_v39, %s5138_s17  ;;  %v4630_v27 = vpop.f32.mrb[30].mxu1  ;;  %v4789_v39 = vunpack.i.h.bf16 %v4787_v41  ;;  %s3522_s17 = scalar_lea.vmem %s7749_s8, %s5107_s27 }
 0xcb3   : > { %v4830_v28 = vpack.i.bf16 %v4630_v27, %v4629_v25  ;;  %v3271_v21 = vpop.f32.mrb[31].mxu1  ;;  %v3379_v29 = vsel %vm2153_vm4, %v7078_v2, %v4778_v1 }
 0xcb4   : > { %v4825_v7 = vpack.i.bf16 %v3271_v21, %v3268_v49  ;;  %v3388_v31 = vsel %vm3387_vm6, %v3379_v29, %v4788_v17  ;;  %v3389_v51 = vsel %vm3387_vm6, %v3380_v18, %v4789_v39  ;;  %v5007_v39 = vld [vmem:[#allocation2 + $0x8] sm:$0xff]  ;;  %v5008_v29 = vld [vmem:[#allocation2 + $0x18] sm:$0xff] }
 0xcb5   : > { %4831 = vrot.lane.b32.xlu1 %v4830_v28, %s5139_s16 }
 0xcb6   : > { %4826 = vrot.lane.b32.xlu0 %v4825_v7, %s5139_s16  ;;  %s3662_s16 = scalar_lea.vmem %s7750_s9, %s6962_s30 }
 0xd1f   : > { %v4807_v0 = vpop.permute.xlu1 %4806 }
 0xd20   : > { %v4809_v42 = vunpack.i.h.bf16 %v4807_v0  ;;  %v4808_v63 = vunpack.i.l.bf16 %v4807_v0  ;;  %v4812_v32 = vpop.permute.xlu0 %4811 }
 0xd21   : > { %v4814_v43 = vunpack.i.h.bf16 %v4812_v32  ;;  %v4813_v9 = vunpack.i.l.bf16 %v4812_v32 }
 0xd22   : > { %v3400_v6 = vsel %vm3396_vm7, %v3391_v47, %v4809_v42  ;;  %v3399_v13 = vsel %vm3396_vm7, %v3390_v15, %v4808_v63 }
 0xd23   : > { %v3406_v2 = vpack.c.bf16 %v3400_v6, %v3399_v13  ;;  %v3397_v37 = vsel %vm3396_vm7, %v3388_v31, %v4813_v9  ;;  %v3398_v22 = vsel %vm3396_vm7, %v3389_v51, %v4814_v43  ;;  %v4822_v5 = vpop.permute.xlu1 %4821  ;;  %v5009_v9 = vld [vmem:[#allocation2 + $0x20] sm:$0xff]  ;;  %v5010_v13 = vld [vmem:[#allocation2 + $0x30] sm:$0xff] }
 0xd24   : > { %v3405_v52 = vpack.c.bf16 %v3398_v22, %v3397_v37  ;;  %v4817_v34 = vpop.permute.xlu0 %4816  ;;  %v4824_v19 = vunpack.i.h.bf16 %v4822_v5  ;;  %v4823_v14 = vunpack.i.l.bf16 %v4822_v5  ;;  %v5011_v37 = vld [vmem:[#allocation2 + $0x28] sm:$0xff] }
 0xd25   : > { %v4819_v4 = vunpack.i.h.bf16 %v4817_v34  ;;  %v4818_v35 = vunpack.i.l.bf16 %v4817_v34 }
 0xd26   : > { %4635 = vmatprep.mubr.msk.bf16.mxu1 %vm2059_vm3, %v3405_v52  ;;  %v3395_v50 = vsel %vm3387_vm6, %v3386_v3, %v4824_v19  ;;  %v3394_v62 = vsel %vm3387_vm6, %v3385_v20, %v4823_v14 }
 0xd27   : > { %v4832_v40 = vpop.permute.xlu1 %4831  ;;  %4636 = vmatmul.mubr.msk.bf16.vlgmr.msra.gmra.mrb[32].mxu1 %vm2059_vm3, %v3406_v2  ;;  %v3392_v48 = vsel %vm3387_vm6, %v3383_v8, %v4818_v35  ;;  %v3393_v49 = vsel %vm3387_vm6, %v3384_v12, %v4819_v4 }
 0xd28   : > { %v4834_v57 = vunpack.i.h.bf16 %v4832_v40  ;;  %v4833_v53 = vunpack.i.l.bf16 %v4832_v40  ;;  %v4827_v33 = vpop.permute.xlu0 %4826 }
 0xd29   : > { %v4829_v44 = vunpack.i.h.bf16 %v4827_v33  ;;  %v4828_v25 = vunpack.i.l.bf16 %v4827_v33 }
 0xd2a   : > { %v3404_v27 = vsel %vm3396_vm7, %v3395_v50, %v4834_v57  ;;  %v3403_v38 = vsel %vm3396_vm7, %v3394_v62, %v4833_v53 }
 0xd2b   : > { %v3408_v28 = vpack.c.bf16 %v3404_v27, %v3403_v38  ;;  %v3401_v24 = vsel %vm3396_vm7, %v3392_v48, %v4828_v25  ;;  %v3402_v21 = vsel %vm3396_vm7, %v3393_v49, %v4829_v44 }
 0xd2c   : > { %v3407_v7 = vpack.c.bf16 %v3402_v21, %v3401_v24 }
 0xd2e   : > { %4639 = vmatprep.mubr.msk.bf16.mxu1 %vm2059_vm3, %v3407_v7 }
 0xd2f   : > { %4640 = vmatmul.mubr.msk.bf16.gmra.mrb[36].mxu1 %vm2059_vm3, %v3408_v28 }
 0xdfa   : > { %v4637_v60 = vpop.f32.mrb[32].mxu1 }
 0xdfb   : > { %v3481_v36 = vpop.f32.mrb[33].mxu1  ;;  %v3490_v41 = vadd.f32 %v4637_v60, %v4357_v45 }
 0xdfc   : > { %v3482_v10 = vadd.f32 %v4357_v45, %v3481_v36  ;;  %v4638_v26 = vpop.f32.mrb[34].mxu1 }
 0xdfd   : > { %v3484_v58 = vpop.f32.mrb[35].mxu1  ;;  %v3493_v56 = vadd.f32 %v4638_v26, %v4357_v45  ;;  %v3514_v17 = vadd.f32 %v5006_v23, %v3490_v41 }
 0xdfe   : > { %v3512_v1 = vadd.f32 %v5005_v61, %v3482_v10  ;;  %v3485_v59 = vadd.f32 %v4357_v45, %v3484_v58 }
 0xdff   : > { %v3515_v15 = vadd.f32 %v5008_v29, %v3493_v56  ;;  %v3530_v31 = vsel %vm2059_vm3, %v3514_v17, 0.0  ;;  %v4840_v29 = vld [vmem:[%s3662_s16 + $0x8] sm:$0xff]  }
 0xe00   : > { %v3513_v54 = vadd.f32 %v5007_v39, %v3485_v59  ;;  %v3524_v11 = vsel %vm2059_vm3, %v3512_v1, 0.0 }
 0xe01   : > { %3525 = vadd.xlane.f32.xlu0 %v3524_v11  ;;  %v3533_v6 = vsel %vm2059_vm3, %v3515_v15, 0.0 }
 0xe02   : > { %v4641_v18 = vpop.f32.mrb[36].mxu1  ;;  %v3527_v0 = vsel %vm2059_vm3, %v3513_v54, 0.0 }
 0xe03   : > { %v3497_v42 = vpop.f32.mrb[37].mxu1  ;;  %3528 = vadd.xlane.f32.xlu1 %v3527_v0  ;;  %v3506_v63 = vadd.f32 %v4641_v18, %v4357_v45  ;;  %v4839_v0 = vld [vmem:[%s3662_s16] sm:$0xff]   ;;  %s3896_s16 = scalar_lea.vmem %s7753_s12, %s5107_s27 }
 0xe04   : > { %v3498_v32 = vadd.f32 %v4357_v45, %v3497_v42  ;;  %v4642_v47 = vpop.f32.mrb[38].mxu1  ;;  %4643 = vmatprep.subr.bf16.mxu0 %v4839_v0  ;;  %v4842_v42 = vld [vmem:[%s7460_s18 + $0x8] sm:$0xff]  }
 0xe05   : > { %v3500_v43 = vpop.f32.mrb[39].mxu1  ;;  %3531 = vadd.xlane.f32.xlu0 %v3530_v31  ;;  %v3518_v46 = vadd.f32 %v5010_v13, %v3506_v63  ;;  %v3509_v2 = vadd.f32 %v4642_v47, %v4357_v45  ;;  %4644 = vmatpush3.bf16.msra.mxu0 %v4839_v0 }
 0xe06   : > { %v3516_v51 = vadd.f32 %v5009_v9, %v3498_v32  ;;  %v3501_v16 = vadd.f32 %v4357_v45, %v3500_v43  ;;  %4645 = vmatprep.subr.bf16.mxu0 %v4840_v29 }
 0xe07   : > { %v3519_v30 = vadd.f32 %v5012_v55, %v3509_v2  ;;  %v3542_v52 = vsel %vm2059_vm3, %v3518_v46, 0.0 }
 0xe08   : > { %v3517_v22 = vadd.f32 %v5011_v37, %v3501_v16  ;;  %v3536_v5 = vsel %vm2059_vm3, %v3516_v51, 0.0 }
 0xe09   : > { %3537 = vadd.xlane.f32.xlu1 %v3536_v5  ;;  %3534 = vadd.xlane.f32.xlu0 %v3533_v6  ;;  %v3545_v19 = vsel %vm2059_vm3, %v3519_v30, 0.0 }
 0xe0a   : > { %v3539_v34 = vsel %vm2059_vm3, %v3517_v22, 0.0  ;;  %4646 = vmatpush3.bf16.msra.mxu0 %v4840_v29 }
 0xe0d   : > { %3543 = vadd.xlane.f32.xlu1 %v3542_v52  ;;  %3540 = vadd.xlane.f32.xlu0 %v3539_v34 }
 0xe11   : > { %3546 = vadd.xlane.f32.xlu0 %v3545_v19 }
 0xe8e   : > { %v3526_v14 = vpop.xlane.xlu0 %3525 }
 0xe8f   : > { %v3549_v4 = vmul.f32 0.03125, %v3526_v14  ;;  %v4364_v14 = vld [vmem:[%s3520_s22] ss:$0 sm:$0xff] }
 0xe90   : > { %v3529_v35 = vpop.xlane.xlu1 %3528 }
 0xe91   : > { %v7412_v3 = vsub.f32 %v3512_v1, %v3549_v4  ;;  %v3550_v20 = vmul.f32 0.03125, %v3529_v35 }
 0xe92   : > { %v3532_v40 = vpop.xlane.xlu0 %3531 }
 0xe93   : > { %v7414_v12 = vsub.f32 %v3513_v54, %v3550_v20  ;;  %v3551_v8 = vmul.f32 0.03125, %v3532_v40  ;;  %v3565_v57 = vmul.f32 %v7412_v3, %v7412_v3 }
 0xe95   : > { %v7418_v53 = vsub.f32 %v3514_v17, %v3551_v8  ;;  %v3573_v33 = vsel %vm2059_vm3, %v3565_v57, 0.0  ;;  %v3566_v50 = vmul.f32 %v7414_v12, %v7414_v12 }
 0xe96   : > { %v3538_v62 = vpop.xlane.xlu1 %3537  ;;  %3574 = vadd.xlane.f32.xlu1 %v3573_v33  ;;  %v3535_v44 = vpop.xlane.xlu0 %3534 }
 0xe97   : > { %v3553_v25 = vmul.f32 0.03125, %v3538_v62  ;;  %v3552_v48 = vmul.f32 0.03125, %v3535_v44  ;;  %v3576_v49 = vsel %vm2059_vm3, %v3566_v50, 0.0  ;;  %v3567_v27 = vmul.f32 %v7418_v53, %v7418_v53  ;;  %v4365_v44 = vld [vmem:[%s3522_s17] ss:$0 sm:$0xff]  ;;  %s8418_s17 = sld [smem:[#allocation112_spill]] (!%p4387_p0) }
 0xe98   : > { %3577 = vadd.xlane.f32.xlu0 %v3576_v49 }
 0xe99   : > { %v7426_v38 = vsub.f32 %v3516_v51, %v3553_v25  ;;  %v7428_v28 = vsub.f32 %v3515_v15, %v3552_v48  ;;  %v3579_v24 = vsel %vm2059_vm3, %v3567_v27, 0.0  ;;  %v4841_v15 = vld [vmem:[%s7460_s18] sm:$0xff]  }
 0xe9a   : > { %v3544_v21 = vpop.xlane.xlu1 %3543  ;;  %3580 = vadd.xlane.f32.xlu1 %v3579_v24  ;;  %v3541_v7 = vpop.xlane.xlu0 %3540  ;;  %4655 = vmatprep.subr.bf16.mxu1 %v4841_v15 }
 0xe9b   : > { %v3555_v45 = vmul.f32 0.03125, %v3544_v21  ;;  %v3554_v60 = vmul.f32 0.03125, %v3541_v7  ;;  %v3569_v36 = vmul.f32 %v7426_v38, %v7426_v38  ;;  %v3568_v41 = vmul.f32 %v7428_v28, %v7428_v28  ;;  %4656 = vmatpush3.bf16.msra.mxu1 %v4841_v15  ;;  %v4843_v15 = vld [vmem:[%s7460_s18 + $0x10] sm:$0xff]  }
 0xe9c   : > { %4657 = vmatprep.subr.bf16.mxu1 %v4842_v42 }
 0xe9d   : > { %v7435_v10 = vsub.f32 %v3518_v46, %v3555_v45  ;;  %v7437_v26 = vsub.f32 %v3517_v22, %v3554_v60  ;;  %v3585_v58 = vsel %vm2059_vm3, %v3569_v36, 0.0  ;;  %v3582_v61 = vsel %vm2059_vm3, %v3568_v41, 0.0 }
 0xe9e   : > { %3586 = vadd.xlane.f32.xlu1 %v3585_v58  ;;  %3583 = vadd.xlane.f32.xlu0 %v3582_v61  ;;  %v3547_v1 = vpop.xlane.xlu0 %3546 }
 0xe9f   : > { %v3556_v59 = vmul.f32 0.03125, %v3547_v1  ;;  %v3571_v56 = vmul.f32 %v7435_v10, %v7435_v10  ;;  %v3570_v23 = vmul.f32 %v7437_v26, %v7437_v26  ;;  %4658 = vmatpush3.bf16.msra.mxu1 %v4842_v42  ;;  %v4844_v42 = vld [vmem:[%s7460_s18 + $0x18] sm:$0xff]   ;;  %s3914_s18 = scalar_lea.vmem %s7755_s14, %s5107_s27 }
 0xea0   : > { %4659 = vmatprep.subr.bf16.mxu1 %v4843_v15 }
 0xea1   : > { %v7445_v17 = vsub.f32 %v3519_v30, %v3556_v59  ;;  %v3591_v39 = vsel %vm2059_vm3, %v3571_v56, 0.0  ;;  %v3588_v54 = vsel %vm2059_vm3, %v3570_v23, 0.0 }
 0xea2   : > { %3592 = vadd.xlane.f32.xlu1 %v3591_v39  ;;  %3589 = vadd.xlane.f32.xlu0 %v3588_v54 }
 0xea3   : > { %v3572_v11 = vmul.f32 %v7445_v17, %v7445_v17  ;;  %4660 = vmatpush3.bf16.msra.mxu1 %v4843_v15 }
 0xea4   : > { %4661 = vmatprep.subr.bf16.mxu1 %v4844_v42 }
 0xea5   : > { %v3594_v18 = vsel %vm2059_vm3, %v3572_v11, 0.0 }
 0xea6   : > { %3595 = vadd.xlane.f32.xlu0 %v3594_v18 }
 0xea7   : > { %4662 = vmatpush3.bf16.msra.mxu1 %v4844_v42 }
 0xf23   : > { %v3575_v63 = vpop.xlane.xlu1 %3574 }
 0xf24   : > { %v3597_v32 = vmul.f32 0.03125, %v3575_v63  ;;  %v4367_v63 = vld [vmem:[%s3667_s29] ss:$0 sm:$0xff] }
 0xf25   : > { %v3578_v47 = vpop.xlane.xlu0 %3577 }
 0xf26   : > { %v3605_v31 = vadd.f32 1e-05, %v3597_v32  ;;  %v3598_v43 = vmul.f32 0.03125, %v3578_v47 }
 0xf27   : > { %v3581_v9 = vpop.xlane.xlu1 %3580 }
 0xf28   : > { %4973 = vrsqrt.f32 %v3605_v31  ;;  %v3606_v51 = vadd.f32 1e-05, %v3598_v43  ;;  %v3599_v16 = vmul.f32 0.03125, %v3581_v9 }
 0xf2a   : > { %4975 = vrsqrt.f32 %v3606_v51  ;;  %v3607_v6 = vadd.f32 1e-05, %v3599_v16 }
 0xf2b   : > { %v3587_v13 = vpop.xlane.xlu1 %3586  ;;  %v3584_v46 = vpop.xlane.xlu0 %3583 }
 0xf2c   : > { %4977 = vrsqrt.f32 %v3607_v6  ;;  %v3601_v2 = vmul.f32 0.03125, %v3587_v13  ;;  %v3600_v37 = vmul.f32 0.03125, %v3584_v46 }
 0xf2e   : > { %v3609_v22 = vadd.f32 1e-05, %v3601_v2  ;;  %v3608_v5 = vadd.f32 1e-05, %v3600_v37 }
 0xf2f   : > { %v3593_v55 = vpop.xlane.xlu1 %3592  ;;  %v3590_v30 = vpop.xlane.xlu0 %3589 }
 0xf30   : > { %4979 = vrsqrt.f32 %v3609_v22  ;;  %v3603_v52 = vmul.f32 0.03125, %v3593_v55  ;;  %v3602_v34 = vmul.f32 0.03125, %v3590_v30 }
 0xf31   : > { %4981 = vrsqrt.f32 %v3608_v5 }
 0xf32   : > { %v4974_v19 = vpop.eup %4973  ;;  %v3611_v4 = vadd.f32 1e-05, %v3603_v52  ;;  %v3610_v35 = vadd.f32 1e-05, %v3602_v34 }
 0xf33   : > { %v3621_v20 = vmul.f32 %v4974_v19, %v7412_v3  ;;  %v3596_v40 = vpop.xlane.xlu0 %3595 }
 0xf34   : > { %v4976_v8 = vpop.eup %4975  ;;  %4983 = vrsqrt.f32 %v3611_v4  ;;  %v3604_v57 = vmul.f32 0.03125, %v3596_v40 }
 0xf35   : > { %v3622_v33 = vmul.f32 %v4976_v8, %v7414_v12  ;;  %4985 = vrsqrt.f32 %v3610_v35  ;;  %v3635_v50 = vmul.f32 %v4364_v14, %v3621_v20 }
 0xf36   : > { %v4978_v62 = vpop.eup %4977  ;;  %v3612_v25 = vadd.f32 1e-05, %v3604_v57 }
 0xf37   : > { %v3636_v48 = vmul.f32 %v4364_v14, %v3622_v33  ;;  %v3623_v49 = vmul.f32 %v4978_v62, %v7418_v53  ;;  %v7475_v3 = vadd.f32 %v4365_v44, %v3635_v50 }
 0xf38   : > { %4987 = vrsqrt.f32 %v3612_v25 }
 0xf39   : > { %v7477_v27 = vadd.f32 %v4365_v44, %v3636_v48  ;;  %v3637_v45 = vmul.f32 %v4364_v14, %v3623_v49 }
 0xf3a   : > { %v4980_v24 = vpop.eup %4979 }
 0xf3b   : > { %v4982_v21 = vpop.eup %4981  ;;  %v3657_v7 = vpack.c.bf16 %v7477_v27, %v7475_v3  ;;  %v3625_v12 = vmul.f32 %v4980_v24, %v7426_v38  ;;  %v3651_v61 = vadd.f32 %v4365_v44, %v3637_v45 }
 0xf3c   : > { %v3624_v60 = vmul.f32 %v4982_v21, %v7428_v28 }
 0xf3d   : > { %4647 = vmatprep.mubr.msk.bf16.mxu0 %vm2059_vm3, %v3657_v7  ;;  %v3639_v56 = vmul.f32 %v4364_v14, %v3625_v12 }
 0xf3e   : > { %v4984_v36 = vpop.eup %4983  ;;  %v3638_v41 = vmul.f32 %v4364_v14, %v3624_v60 }
 0xf3f   : > { %v4986_v53 = vpop.eup %4985  ;;  %v3627_v58 = vmul.f32 %v4984_v36, %v7435_v10  ;;  %v7491_v11 = vadd.f32 %v4365_v44, %v3639_v56 }
 0xf40   : > { %v7485_v1 = vadd.f32 %v4365_v44, %v3638_v41  ;;  %v3626_v59 = vmul.f32 %v4986_v53, %v7437_v26 }
 0xf41   : > { %v3641_v54 = vmul.f32 %v4364_v14, %v3627_v58 }
 0xf42   : > { %v4988_v23 = vpop.eup %4987  ;;  %v3658_v39 = vpack.c.bf16 %v7485_v1, %v3651_v61  ;;  %v3640_v38 = vmul.f32 %v4364_v14, %v3626_v59 }
 0xf43   : > { %v3628_v28 = vmul.f32 %v4988_v23, %v7445_v17  ;;  %v7497_v0 = vadd.f32 %v4365_v44, %v3641_v54 }
 0xf44   : > { %4648 = vmatmul.mubr.msk.bf16.vlgmr.msra.gmra.mrb[40].mxu0 %vm2059_vm3, %v3658_v39  ;;  %v7493_v10 = vadd.f32 %v4365_v44, %v3640_v38 }
 0xf45   : > { %v3642_v18 = vmul.f32 %v4364_v14, %v3628_v28 }
 0xf46   : > { %v3659_v26 = vpack.c.bf16 %v7493_v10, %v7491_v11 }
 0xf47   : > { %v7499_v29 = vadd.f32 %v4365_v44, %v3642_v18  ;;  %v4384_v44 = vld [vmem:[%s3896_s16] ss:$0 sm:$0xff] }
 0xf48   : > { %4651 = vmatprep.mubr.msk.bf16.mxu0 %vm2059_vm3, %v3659_v26 }
 0xf49   : > { %v3660_v17 = vpack.c.bf16 %v7499_v29, %v7497_v0 }
 0xf4c   : > { %4652 = vmatmul.mubr.msk.bf16.gmra.mrb[44].mxu0 %vm2059_vm3, %v3660_v17 }
0x1017   : > { %v4649_v32 = vpop.f32.mrb[40].mxu0 }
0x1018   : > { %v3742_v47 = vadd.f32 %v4649_v32, %v4367_v63  ;;  %v3733_v31 = vpop.f32.mrb[41].mxu0 }
0x1019   : > { %v3734_v43 = vadd.f32 %v4367_v63, %v3733_v31  ;;  %v4650_v9 = vpop.f32.mrb[42].mxu0 }
0x101a   : > { %v3745_v51 = vadd.f32 %v4650_v9, %v4367_v63  ;;  %v3736_v16 = vpop.f32.mrb[43].mxu0  ;;  %v3766_v13 = vmax.f32 %v3742_v47, 0.0 }
0x101b   : > { %v3737_v6 = vadd.f32 %v4367_v63, %v3736_v16  ;;  %v3764_v2 = vmax.f32 %v3734_v43, 0.0 }
0x101c   : > { %v3767_v46 = vmax.f32 %v3745_v51, 0.0 }
0x101d   : > { %v3765_v37 = vmax.f32 %v3737_v6, 0.0 }
0x101e   : > { %v3773_v22 = vpack.c.bf16 %v3767_v46, %v3766_v13 }
0x101f   : > { %v3772_v5 = vpack.c.bf16 %v3765_v37, %v3764_v2  ;;  %v4653_v55 = vpop.f32.mrb[44].mxu0 }
0x1020   : > { %v3758_v30 = vadd.f32 %v4653_v55, %v4367_v63  ;;  %v3749_v52 = vpop.f32.mrb[45].mxu0 }
0x1021   : > { %v3750_v34 = vadd.f32 %v4367_v63, %v3749_v52  ;;  %v4654_v19 = vpop.f32.mrb[46].mxu0  ;;  %4663 = vmatprep.mubr.msk.bf16.mxu1 %vm2243_vm5, %v3772_v5 }
0x1022   : > { %v3761_v14 = vadd.f32 %v4654_v19, %v4367_v63  ;;  %v3752_v4 = vpop.f32.mrb[47].mxu0  ;;  %4664 = vmatmul.mubr.msk.bf16.vlgmr.msra.gmra.mrb[40].mxu1 %vm2243_vm5, %v3773_v22  ;;  %v3770_v20 = vmax.f32 %v3758_v30, 0.0 }
0x1023   : > { %v3753_v35 = vadd.f32 %v4367_v63, %v3752_v4  ;;  %v3768_v8 = vmax.f32 %v3750_v34, 0.0 }
0x1024   : > { %v3771_v40 = vmax.f32 %v3761_v14, 0.0 }
0x1025   : > { %v3769_v57 = vmax.f32 %v3753_v35, 0.0 }
0x1026   : > { %v3775_v33 = vpack.c.bf16 %v3771_v40, %v3770_v20 }
0x1027   : > { %v3774_v50 = vpack.c.bf16 %v3769_v57, %v3768_v8 }
0x1029   : > { %4667 = vmatprep.mubr.msk.bf16.mxu1 %vm2243_vm5, %v3774_v50 }
0x102a   : > { %4668 = vmatmul.mubr.msk.bf16.gmra.mrb[44].mxu1 %vm2243_vm5, %v3775_v33 }
0x10f5   : > { %v4665_v62 = vpop.f32.mrb[40].mxu1 }
0x10f6   : > { %v3890_v25 = vadd.f32 %v4665_v62, %v3651_v61  ;;  %v3857_v48 = vpop.f32.mrb[41].mxu1 }
0x10f7   : > { %v3888_v49 = vadd.f32 %v3857_v48, %v7475_v3  ;;  %v4666_v24 = vpop.f32.mrb[42].mxu1 }
0x10f8   : > { %v3906_v21 = vadd.f32 %v4384_v44, %v3890_v25  ;;  %v3891_v7 = vadd.f32 %v4666_v24, %v7485_v1  ;;  %v3860_v45 = vpop.f32.mrb[43].mxu1 }
0x10f9   : > { %v3889_v12 = vadd.f32 %v3860_v45, %v7477_v27  ;;  %v3904_v60 = vadd.f32 %v4384_v44, %v3888_v49 }
0x10fa   : > { %v3907_v36 = vadd.f32 %v4384_v44, %v3891_v7  ;;  %v3922_v41 = vsel %vm2059_vm3, %v3906_v21, 0.0 }
0x10fb   : > { %3923 = vadd.xlane.f32.xlu1 %v3922_v41  ;;  %v3905_v53 = vadd.f32 %v4384_v44, %v3889_v12  ;;  %v3916_v3 = vsel %vm2059_vm3, %v3904_v60, 0.0 }
0x10fc   : > { %v3925_v58 = vsel %vm2059_vm3, %v3907_v36, 0.0 }
0x10fd   : > { %3926 = vadd.xlane.f32.xlu0 %v3925_v58  ;;  %v4669_v61 = vpop.f32.mrb[44].mxu1  ;;  %v3919_v39 = vsel %vm2059_vm3, %v3905_v53, 0.0 }
0x10fe   : > { %v3873_v59 = vpop.f32.mrb[45].mxu1  ;;  %v3894_v56 = vadd.f32 %v4669_v61, %v7497_v0 }
0x10ff   : > { %v3892_v1 = vadd.f32 %v3873_v59, %v7491_v11  ;;  %3917 = vadd.xlane.f32.xlu1 %v3916_v3  ;;  %v4670_v23 = vpop.f32.mrb[46].mxu1 }
0x1100   : > { %v3876_v27 = vpop.f32.mrb[47].mxu1  ;;  %v3895_v28 = vadd.f32 %v4670_v23, %v7499_v29  ;;  %v3910_v18 = vadd.f32 %v4384_v44, %v3894_v56 }
0x1101   : > { %v3908_v38 = vadd.f32 %v4384_v44, %v3892_v1  ;;  %v3893_v54 = vadd.f32 %v3876_v27, %v7493_v10  ;;  %3920 = vadd.xlane.f32.xlu0 %v3919_v39 }
0x1102   : > { %v3911_v15 = vadd.f32 %v4384_v44, %v3895_v28  ;;  %v3934_v11 = vsel %vm2059_vm3, %v3910_v18, 0.0 }
0x1103   : > { %v3909_v26 = vadd.f32 %v4384_v44, %v3893_v54  ;;  %v3928_v17 = vsel %vm2059_vm3, %v3908_v38, 0.0 }
0x1104   : > { %3929 = vadd.xlane.f32.xlu1 %v3928_v17  ;;  %v3937_v42 = vsel %vm2059_vm3, %v3911_v15, 0.0 }
0x1105   : > { %v3931_v0 = vsel %vm2059_vm3, %v3909_v26, 0.0 }
0x1106   : > { %3932 = vadd.xlane.f32.xlu0 %v3931_v0  ;;  %v4385_v0 = vld [vmem:[%s3912_s24] ss:$0 sm:$0xff] }
0x1108   : > { %3935 = vadd.xlane.f32.xlu1 %v3934_v11 }
0x110a   : > { %3938 = vadd.xlane.f32.xlu0 %v3937_v42 }
0x1188   : > { %v3924_v63 = vpop.xlane.xlu1 %3923 }
0x1189   : > { %v3942_v29 = vmul.f32 0.03125, %v3924_v63 }
0x118a   : > { %v3927_v32 = vpop.xlane.xlu0 %3926 }
0x118b   : > { %v7534_v10 = vsub.f32 %v3906_v21, %v3942_v29  ;;  %v3943_v47 = vmul.f32 0.03125, %v3927_v32 }
0x118c   : > { %v3918_v31 = vpop.xlane.xlu1 %3917 }
0x118d   : > { %v7536_v43 = vsub.f32 %v3907_v36, %v3943_v47  ;;  %v3940_v9 = vmul.f32 0.03125, %v3918_v31  ;;  %v3958_v51 = vmul.f32 %v7534_v10, %v7534_v10  ;;  %v4386_v47 = vld [vmem:[%s3914_s18] ss:$0 sm:$0xff] }
0x118e   : > { %v3921_v16 = vpop.xlane.xlu0 %3920 }
0x118f   : > { %v7540_v6 = vsub.f32 %v3904_v60, %v3940_v9  ;;  %v3941_v13 = vmul.f32 0.03125, %v3921_v16  ;;  %v3970_v46 = vsel %vm2059_vm3, %v3958_v51, 0.0  ;;  %v3959_v2 = vmul.f32 %v7536_v43, %v7536_v43 }
0x1190   : > { %3971 = vadd.xlane.f32.xlu1 %v3970_v46 }
0x1191   : > { %v7545_v37 = vsub.f32 %v3905_v53, %v3941_v13  ;;  %v3930_v22 = vpop.xlane.xlu1 %3929  ;;  %v3973_v5 = vsel %vm2059_vm3, %v3959_v2, 0.0  ;;  %v3956_v55 = vmul.f32 %v7540_v6, %v7540_v6 }
0x1192   : > { %v3944_v30 = vmul.f32 0.03125, %v3930_v22  ;;  %3974 = vadd.xlane.f32.xlu0 %v3973_v5 }
0x1193   : > { %v3933_v52 = vpop.xlane.xlu0 %3932  ;;  %v3964_v34 = vsel %vm2059_vm3, %v3956_v55, 0.0  ;;  %v3957_v19 = vmul.f32 %v7545_v37, %v7545_v37 }
0x1194   : > { %v7553_v14 = vsub.f32 %v3908_v38, %v3944_v30  ;;  %v3945_v4 = vmul.f32 0.03125, %v3933_v52  ;;  %3965 = vadd.xlane.f32.xlu1 %v3964_v34 }
0x1195   : > { %v3936_v35 = vpop.xlane.xlu1 %3935  ;;  %v3967_v20 = vsel %vm2059_vm3, %v3957_v19, 0.0 }
0x1196   : > { %v7556_v40 = vsub.f32 %v3909_v26, %v3945_v4  ;;  %v3946_v8 = vmul.f32 0.03125, %v3936_v35  ;;  %3968 = vadd.xlane.f32.xlu0 %v3967_v20  ;;  %v3960_v57 = vmul.f32 %v7553_v14, %v7553_v14 }
0x1197   : > { %v3939_v33 = vpop.xlane.xlu0 %3938 }
0x1198   : > { %v7560_v50 = vsub.f32 %v3910_v18, %v3946_v8  ;;  %v3947_v62 = vmul.f32 0.03125, %v3939_v33  ;;  %v3976_v44 = vsel %vm2059_vm3, %v3960_v57, 0.0  ;;  %v3961_v25 = vmul.f32 %v7556_v40, %v7556_v40 }
0x1199   : > { %3977 = vadd.xlane.f32.xlu1 %v3976_v44 }
0x119a   : > { %v7565_v48 = vsub.f32 %v3911_v15, %v3947_v62  ;;  %v3979_v49 = vsel %vm2059_vm3, %v3961_v25, 0.0  ;;  %v3962_v24 = vmul.f32 %v7560_v50, %v7560_v50 }
0x119b   : > { %3980 = vadd.xlane.f32.xlu0 %v3979_v49 }
0x119c   : > { %v3982_v21 = vsel %vm2059_vm3, %v3962_v24, 0.0  ;;  %v3963_v7 = vmul.f32 %v7565_v48, %v7565_v48 }
0x119d   : > { %3983 = vadd.xlane.f32.xlu1 %v3982_v21 }
0x119e   : > { %v3985_v45 = vsel %vm2059_vm3, %v3963_v7, 0.0 }
0x119f   : > { %3986 = vadd.xlane.f32.xlu0 %v3985_v45 }
0x121d   : > { %v3972_v12 = vpop.xlane.xlu1 %3971 }
0x121e   : > { %v3990_v60 = vmul.f32 0.03125, %v3972_v12 }
0x121f   : > { %v3975_v36 = vpop.xlane.xlu0 %3974 }
0x1220   : > { %v3998_v41 = vadd.f32 1e-05, %v3990_v60  ;;  %v3991_v53 = vmul.f32 0.03125, %v3975_v36 }
0x1221   : > { %v3966_v58 = vpop.xlane.xlu1 %3965 }
0x1222   : > { %4989 = vrsqrt.f32 %v3998_v41  ;;  %v3999_v61 = vadd.f32 1e-05, %v3991_v53  ;;  %v3988_v59 = vmul.f32 0.03125, %v3966_v58 }
0x1223   : > { %v3969_v3 = vpop.xlane.xlu0 %3968 }
0x1224   : > { %4991 = vrsqrt.f32 %v3999_v61  ;;  %v3996_v56 = vadd.f32 1e-05, %v3988_v59  ;;  %v3989_v1 = vmul.f32 0.03125, %v3969_v3 }
0x1226   : > { %4993 = vrsqrt.f32 %v3996_v56  ;;  %v3997_v23 = vadd.f32 1e-05, %v3989_v1  ;;  %v3978_v27 = vpop.xlane.xlu1 %3977 }
0x1227   : > { %v3992_v39 = vmul.f32 0.03125, %v3978_v27 }
0x1228   : > { %4995 = vrsqrt.f32 %v3997_v23  ;;  %v3981_v38 = vpop.xlane.xlu0 %3980 }
0x1229   : > { %v4000_v28 = vadd.f32 1e-05, %v3992_v39  ;;  %v3993_v54 = vmul.f32 0.03125, %v3981_v38 }
0x122a   : > { %v3984_v18 = vpop.xlane.xlu1 %3983 }
0x122b   : > { %4997 = vrsqrt.f32 %v4000_v28  ;;  %v4001_v26 = vadd.f32 1e-05, %v3993_v54  ;;  %v3994_v17 = vmul.f32 0.03125, %v3984_v18 }
0x122c   : > { %v4990_v15 = vpop.eup %4989  ;;  %v3987_v11 = vpop.xlane.xlu0 %3986 }
0x122d   : > { %v4014_v42 = vmul.f32 %v4990_v15, %v7534_v10  ;;  %4999 = vrsqrt.f32 %v4001_v26  ;;  %v4002_v63 = vadd.f32 1e-05, %v3994_v17  ;;  %v3995_v29 = vmul.f32 0.03125, %v3987_v11 }
0x122e   : > { %v4992_v32 = vpop.eup %4991 }
0x122f   : > { %v4028_v31 = vmul.f32 %v4385_v0, %v4014_v42  ;;  %v4015_v9 = vmul.f32 %v4992_v32, %v7536_v43  ;;  %5001 = vrsqrt.f32 %v4002_v63  ;;  %v4003_v51 = vadd.f32 1e-05, %v3995_v29 }
0x1230   : > { %v4994_v16 = vpop.eup %4993 }
0x1231   : > { %v4042_v13 = vadd.f32 %v4386_v47, %v4028_v31  ;;  %v4029_v46 = vmul.f32 %v4385_v0, %v4015_v9  ;;  %v4012_v2 = vmul.f32 %v4994_v16, %v7540_v6  ;;  %5003 = vrsqrt.f32 %v4003_v51 }
0x1232   : > { %v4996_v22 = vpop.eup %4995 }
0x1233   : > { %4050 = vst.msk [vmem:[#allocation2 + $0x10] sm:$0xff] %vm2059_vm3, %v4042_v13  ;;  %v4043_v10 = vadd.f32 %v4386_v47, %v4029_v46  ;;  %v4026_v5 = vmul.f32 %v4385_v0, %v4012_v2  ;;  %v4013_v55 = vmul.f32 %v4996_v22, %v7545_v37  ;;  %v4068_v24 = vsel (!%p4387_p0), %vm2059_vm3, %v4042_v13, 0.0 }
0x1234   : > { %4069 = vadd.xlane.f32.xlu1 (!%p4387_p0), %v4068_v24 }
0x1235   : > { %v4998_v30 = vpop.eup %4997  ;;  %4051 = vst.msk [vmem:[#allocation2 + $0x18] sm:$0xff] %vm2059_vm3, %v4043_v10  ;;  %v4040_v52 = vadd.f32 %v4386_v47, %v4026_v5  ;;  %v4027_v43 = vmul.f32 %v4385_v0, %v4013_v55  ;;  %v4071_v21 = vsel (!%p4387_p0), %vm2059_vm3, %v4043_v10, 0.0 }
0x1236   : > { %v4016_v34 = vmul.f32 %v4998_v30, %v7553_v14 }
0x1237   : > { %v5000_v19 = vpop.eup %4999  ;;  %4048 = vst.msk [vmem:[#allocation2] sm:$0xff] %vm2059_vm3, %v4040_v52  ;;  %v4041_v4 = vadd.f32 %v4386_v47, %v4027_v43 }
0x1238   : > { %v4030_v6 = vmul.f32 %v4385_v0, %v4016_v34  ;;  %v4017_v35 = vmul.f32 %v5000_v19, %v7556_v40  ;;  %4072 = vadd.xlane.f32.xlu1 (!%p4387_p0), %v4071_v21 }
0x1239   : > { %v5002_v20 = vpop.eup %5001  ;;  %4049 = vst.msk [vmem:[#allocation2 + $0x8] sm:$0xff] %vm2059_vm3, %v4041_v4 }
0x123a   : > { %v4044_v8 = vadd.f32 %v4386_v47, %v4030_v6  ;;  %v4031_v57 = vmul.f32 %v4385_v0, %v4017_v35  ;;  %v4018_v37 = vmul.f32 %v5002_v20, %v7560_v50  ;;  %v4062_v50 = vsel (!%p4387_p0), %vm2059_vm3, %v4040_v52, 0.0 }
0x123b   : > { %v5004_v33 = vpop.eup %5003  ;;  %4063 = vadd.xlane.f32.xlu0 (!%p4387_p0), %v4062_v50 }
0x123c   : > { %4052 = vst.msk [vmem:[#allocation2 + $0x20] sm:$0xff] %vm2059_vm3, %v4044_v8  ;;  %v4045_v62 = vadd.f32 %v4386_v47, %v4031_v57  ;;  %v4032_v44 = vmul.f32 %v4385_v0, %v4018_v37  ;;  %v4019_v14 = vmul.f32 %v5004_v33, %v7565_v48  ;;  %4059 = sbr.rel (%p4387_p0) target bundleno = 4996 (0x1384), region = 96  ;;  %v4065_v48 = vsel (!%p4387_p0), %vm2059_vm3, %v4041_v4, 0.0 }
0x123d   : > { %v4074_v7 = vsel (!%p4387_p0), %vm2059_vm3, %v4044_v8, 0.0 }
0x123e   : > { %4053 = vst.msk [vmem:[#allocation2 + $0x28] sm:$0xff] %vm2059_vm3, %v4045_v62  ;;  %v4046_v25 = vadd.f32 %v4386_v47, %v4032_v44  ;;  %v4033_v49 = vmul.f32 %v4385_v0, %v4019_v14  ;;  %v4077_v45 = vsel (!%p4387_p0), %vm2059_vm3, %v4045_v62, 0.0 }
0x123f   : > { %4066 = vadd.xlane.f32.xlu0 (!%p4387_p0), %v4065_v48  ;;  %4078 = vadd.xlane.f32.xlu1 (!%p4387_p0), %v4077_v45 }
0x1240   : > { %4054 = vst.msk [vmem:[#allocation2 + $0x30] sm:$0xff] %vm2059_vm3, %v4046_v25  ;;  %v4047_v40 = vadd.f32 %v4386_v47, %v4033_v49  ;;  %v4080_v12 = vsel (!%p4387_p0), %vm2059_vm3, %v4046_v25, 0.0 }
0x1242   : > { %4055 = vst.msk [vmem:[#allocation2 + $0x38] sm:$0xff] %vm2059_vm3, %v4047_v40  ;;  %v4083_v60 = vsel (!%p4387_p0), %vm2059_vm3, %v4047_v40, 0.0 }
0x1243   : > { %4075 = vadd.xlane.f32.xlu0 %v4074_v7  ;;  %4084 = vadd.xlane.f32.xlu1 %v4083_v60  ;;  %v4388_v7 = vld [vmem:[%s7756_s15] ss:$0 sm:$0xff] }
0x1247   : > { %4081 = vadd.xlane.f32.xlu0 %v4080_v12 }
0x12c1   : > { %v4070_v41 = vpop.xlane.xlu1 %4069 }
0x12c2   : > { %v4088_v58 = vmul.f32 0.03125, %v4070_v41  ;;  %v4389_v41 = vld [vmem:[%s8418_s17] ss:$0 sm:$0xff] }
0x12c4   : > { %v7609_v59 = vsub.f32 %v4042_v13, %v4088_v58 }
0x12c5   : > { %v4073_v56 = vpop.xlane.xlu1 %4072 }
0x12c6   : > { %v4089_v23 = vmul.f32 0.03125, %v4073_v56  ;;  %v4104_v39 = vmul.f32 %v7609_v59, %v7609_v59 }
0x12c8   : > { %v4064_v36 = vpop.xlane.xlu0 %4063  ;;  %v7617_v28 = vsub.f32 %v4043_v10, %v4089_v23  ;;  %v4116_v17 = vsel %vm2059_vm3, %v4104_v39, 0.0 }
0x12c9   : > { %v4086_v53 = vmul.f32 0.03125, %v4064_v36 }
0x12ca   : > { %v4105_v42 = vmul.f32 %v7617_v28, %v7617_v28 }
0x12cb   : > { %v7607_v61 = vsub.f32 %v4040_v52, %v4086_v53 }
0x12cc   : > { %v4067_v3 = vpop.xlane.xlu0 %4066  ;;  %v4079_v26 = vpop.xlane.xlu1 %4078  ;;  %v4119_v9 = vsel %vm2059_vm3, %v4105_v42, 0.0 }
0x12cd   : > { %v4087_v1 = vmul.f32 0.03125, %v4067_v3  ;;  %v4102_v27 = vmul.f32 %v7607_v61, %v7607_v61  ;;  %v4091_v0 = vmul.f32 0.03125, %v4079_v26 }
0x12cf   : > { %v7615_v38 = vsub.f32 %v4041_v4, %v4087_v1  ;;  %v4110_v54 = vsel %vm2059_vm3, %v4102_v27, 0.0  ;;  %v7627_v29 = vsub.f32 %v4045_v62, %v4091_v0 }
0x12d0   : > { %4111 = vadd.xlane.f32.xlu0 %v4110_v54  ;;  %v4076_v18 = vpop.xlane.xlu0 %4075  ;;  %v4085_v31 = vpop.xlane.xlu1 %4084 }
0x12d1   : > { %v4090_v15 = vmul.f32 0.03125, %v4076_v18  ;;  %v4103_v11 = vmul.f32 %v7615_v38, %v7615_v38  ;;  %v4093_v16 = vmul.f32 0.03125, %v4085_v31  ;;  %v4107_v46 = vmul.f32 %v7627_v29, %v7627_v29 }
0x12d3   : > { %v7625_v63 = vsub.f32 %v4044_v8, %v4090_v15  ;;  %v4113_v32 = vsel %vm2059_vm3, %v4103_v11, 0.0  ;;  %v7637_v22 = vsub.f32 %v4047_v40, %v4093_v16  ;;  %v4125_v5 = vsel %vm2059_vm3, %v4107_v46, 0.0 }
0x12d4   : > { %4117 = vadd.xlane.f32.xlu0 %v4116_v17  ;;  %4114 = vadd.xlane.f32.xlu1 %v4113_v32  ;;  %v4082_v47 = vpop.xlane.xlu0 %4081 }
0x12d5   : > { %v4092_v51 = vmul.f32 0.03125, %v4082_v47  ;;  %v4106_v13 = vmul.f32 %v7625_v63, %v7625_v63  ;;  %v4109_v30 = vmul.f32 %v7637_v22, %v7637_v22 }
0x12d7   : > { %v7635_v2 = vsub.f32 %v4046_v25, %v4092_v51  ;;  %v4122_v10 = vsel %vm2059_vm3, %v4106_v13, 0.0  ;;  %v4131_v43 = vsel %vm2059_vm3, %v4109_v30, 0.0 }
0x12d8   : > { %4120 = vadd.xlane.f32.xlu1 %v4119_v9  ;;  %4123 = vadd.xlane.f32.xlu0 %v4122_v10 }
0x12d9   : > { %v4108_v55 = vmul.f32 %v7635_v2, %v7635_v2 }
0x12db   : > { %v4128_v52 = vsel %vm2059_vm3, %v4108_v55, 0.0 }
0x12dc   : > { %4126 = vadd.xlane.f32.xlu1 %v4125_v5  ;;  %4129 = vadd.xlane.f32.xlu0 %v4128_v52 }
0x12e0   : > { %4132 = vadd.xlane.f32.xlu1 %v4131_v43 }
0x135d   : > { %v4112_v34 = vpop.xlane.xlu0 %4111 }
0x135e   : > { %v4134_v19 = vmul.f32 0.03125, %v4112_v34 }
0x1360   : > { %v4142_v4 = vadd.f32 1e-05, %v4134_v19 }
0x1361   : > { %v4115_v6 = vpop.xlane.xlu1 %4114  ;;  %v4118_v35 = vpop.xlane.xlu0 %4117 }
0x1362   : > { %5013 = vrsqrt.f32 %v4142_v4  ;;  %v4135_v20 = vmul.f32 0.03125, %v4115_v6  ;;  %v4136_v8 = vmul.f32 0.03125, %v4118_v35 }
0x1364   : > { %v4143_v57 = vadd.f32 1e-05, %v4135_v20  ;;  %v4144_v37 = vadd.f32 1e-05, %v4136_v8 }
0x1365   : > { %v4121_v33 = vpop.xlane.xlu1 %4120  ;;  %v4124_v62 = vpop.xlane.xlu0 %4123 }
0x1366   : > { %5015 = vrsqrt.f32 %v4143_v57  ;;  %v4137_v44 = vmul.f32 0.03125, %v4121_v33  ;;  %v4138_v14 = vmul.f32 0.03125, %v4124_v62 }
0x1367   : > { %5017 = vrsqrt.f32 %v4144_v37 }
0x1368   : > { %v4145_v25 = vadd.f32 1e-05, %v4137_v44  ;;  %v4146_v49 = vadd.f32 1e-05, %v4138_v14 }
0x1369   : > { %v4127_v40 = vpop.xlane.xlu1 %4126  ;;  %v4130_v50 = vpop.xlane.xlu0 %4129 }
0x136a   : > { %5019 = vrsqrt.f32 %v4145_v25  ;;  %v4139_v24 = vmul.f32 0.03125, %v4127_v40  ;;  %v4140_v48 = vmul.f32 0.03125, %v4130_v50 }
0x136b   : > { %5021 = vrsqrt.f32 %v4146_v49 }
0x136c   : > { %v5014_v21 = vpop.eup %5013  ;;  %v4147_v45 = vadd.f32 1e-05, %v4139_v24  ;;  %v4148_v12 = vadd.f32 1e-05, %v4140_v48 }
0x136d   : > { %v4158_v60 = vmul.f32 %v5014_v21, %v7607_v61  ;;  %v4133_v36 = vpop.xlane.xlu1 %4132 }
0x136e   : > { %5023 = vrsqrt.f32 %v4147_v45  ;;  %v4141_v53 = vmul.f32 0.03125, %v4133_v36 }
0x136f   : > { %v4172_v58 = vmul.f32 %v4388_v7, %v4158_v60  ;;  %5025 = vrsqrt.f32 %v4148_v12 }
0x1370   : > { %v5016_v3 = vpop.eup %5015  ;;  %v4149_v56 = vadd.f32 1e-05, %v4141_v53 }
0x1371   : > { %v5018_v1 = vpop.eup %5017  ;;  %v4186_v23 = vadd.f32 %v4389_v41, %v4172_v58  ;;  %v4159_v27 = vmul.f32 %v5016_v3, %v7615_v38 }
0x1372   : > { %v4160_v39 = vmul.f32 %v5018_v1, %v7609_v59  ;;  %5027 = vrsqrt.f32 %v4149_v56 }
0x1373   : > { %4194 = vst.msk [vmem:[%s5311_s20] sm:$0xff] %vm2059_vm3, %v4186_v23  ;;  %v4173_v61 = vmul.f32 %v4388_v7, %v4159_v27 }
0x1374   : > { %v5020_v54 = vpop.eup %5019  ;;  %v4174_v18 = vmul.f32 %v4388_v7, %v4160_v39 }
0x1375   : > { %v5022_v26 = vpop.eup %5021  ;;  %v4187_v17 = vadd.f32 %v4389_v41, %v4173_v61  ;;  %v4161_v15 = vmul.f32 %v5020_v54, %v7617_v28 }
0x1376   : > { %v4188_v0 = vadd.f32 %v4389_v41, %v4174_v18  ;;  %v4162_v11 = vmul.f32 %v5022_v26, %v7625_v63 }
0x1377   : > { %4195 = vst.msk [vmem:[%s5311_s20 + $0x8] sm:$0xff] %vm2059_vm3, %v4187_v17  ;;  %v4175_v38 = vmul.f32 %v4388_v7, %v4161_v15 }
0x1378   : > { %v5024_v42 = vpop.eup %5023  ;;  %4196 = vst.msk [vmem:[%s5311_s20 + $0x10] sm:$0xff] %vm2059_vm3, %v4188_v0  ;;  %v4176_v59 = vmul.f32 %v4388_v7, %v4162_v11 }
0x1379   : > { %v5026_v32 = vpop.eup %5025  ;;  %v4189_v47 = vadd.f32 %v4389_v41, %v4175_v38  ;;  %v4163_v31 = vmul.f32 %v5024_v42, %v7627_v29 }
0x137a   : > { %v4190_v9 = vadd.f32 %v4389_v41, %v4176_v59  ;;  %v4164_v28 = vmul.f32 %v5026_v32, %v7635_v2 }
0x137b   : > { %4197 = vst.msk [vmem:[%s5311_s20 + $0x18] sm:$0xff] %vm2059_vm3, %v4189_v47  ;;  %v4177_v63 = vmul.f32 %v4388_v7, %v4163_v31 }
0x137c   : > { %v5028_v51 = vpop.eup %5027  ;;  %4198 = vst.msk [vmem:[%s5311_s20 + $0x20] sm:$0xff] %vm2059_vm3, %v4190_v9  ;;  %v4178_v16 = vmul.f32 %v4388_v7, %v4164_v28 }
0x137d   : > { %v4191_v13 = vadd.f32 %v4389_v41, %v4177_v63  ;;  %v4165_v46 = vmul.f32 %v5028_v51, %v7637_v22 }
0x137e   : > { %v4192_v10 = vadd.f32 %v4389_v41, %v4178_v16 }
0x137f   : > { %4199 = vst.msk [vmem:[%s5311_s20 + $0x28] sm:$0xff] %vm2059_vm3, %v4191_v13  ;;  %v4179_v5 = vmul.f32 %v4388_v7, %v4165_v46 }
0x1380   : > { %4200 = vst.msk [vmem:[%s5311_s20 + $0x30] sm:$0xff] %vm2059_vm3, %v4192_v10 }
0x1381   : > { %v4193_v29 = vadd.f32 %v4389_v41, %v4179_v5 }
0x1383   : > { %4201 = vst.msk [vmem:[%s5311_s20 + $0x38] sm:$0xff] %vm2059_vm3, %v4193_v29 }
0x1384 PF: > { %s4400_s30 = sshll.u32 %s5111_s28, 10  ;;  %s8420_s27 = sld [smem:[#allocation113_spill]] }
0x1385   : > { %s4216_s23 = sshll.u32 %s5311_s20, 4  ;;  %s7688_s17 = scalar_lea.sflag [#allocation5], %s551_s19  ;;  %s7684_s23 = int_to_ptr.vmem [resolvable:$true] %s4216_s23 }
0x1386   : > { %s5029_s2 = scalar_lea.vmem %s7684_s23, 1024  ;;  %s5140_s28 = smov [#allocation4]  }
0x1387   : > { %p5030_p1 = scmp.ne.s32.totalorder %s7684_s23, %s5029_s2  ;;  %s5033_s3 = sshll.u32 %s5140_s28, 4  ;;  %s5034_s3 = int_to_ptr.vmem [resolvable:$false] %s5033_s3 }
0x1388   : > { %s5035_s29 = scalar_lea.vmem %s5034_s3, 2048  ;;  %p5036_p5 = scmp.lt.s32.totalorder %s7684_s23, %s5034_s3 }
0x1389   : > { %p5031_p2 = pnand %p5030_p1, %p5281_p3  ;;  %p5037_p6 = scmp.lt.s32.totalorder %s5035_s29, %s5029_s2 }
0x138a   : > { %s8421_s22 = smov %s8420_s27  ;;  %s7681_s16 = scalar_lea.hbm %s8420_s27, %s4400_s30 }
0x138b   : > { %p5032_p4 = pneg %p5031_p2  ;;  %p5038_p7 = por %p5037_p6, %p5036_p5 }
0x138d   : > { %p5039_p8 = pnand %p5038_p7, %p5032_p4 }
0x138f   : > { %5042 = shalt.err (!%p5039_p8)
}
0x1390   : > { %s5043_s20 = scalar_lea.hbm %s7681_s16, 1024  ;;  %s5047_s18 = scalar_lea.hbm %s8421_s22, 2048 }
0x1391   : > { %p5044_p10 = scmp.ne.s32.totalorder %s7681_s16, %s5043_s20  ;;  %p5048_p13 = scmp.lt.u32.totalorder %s7681_s16, %s8421_s22 }
0x1392   : > { %p5049_p0 = scmp.lt.u32.totalorder %s5047_s18, %s5043_s20  ;;  %p5051_p2 = scmp.lt.u32.totalorder %s5043_s20, %s7681_s16 }
0x1393   : > { %p5045_p11 = pnand %p5044_p10, %p5281_p3 }
0x1394   : > { %p5050_p1 = por %p5049_p0, %p5048_p13 }
0x1395   : > { %p5046_p12 = pneg %p5045_p11 }
0x1396   : > { %p5052_p4 = por %p5051_p2, %p5050_p1 }
0x1398   : > { %p5053_p5 = pnand %p5052_p4, %p5046_p12 }
0x139a   : > { %5056 = shalt.err (!%p5053_p5)
}
0x139b   : > { %s5141_s2 = smov 128   ;;  %s8422_s28 = smov 8  }
0x139c   : > { %4687 = dma.vmem_to_hbm [thread:$0]  (%p5281_p3), %s7684_s23, 1024, %s7681_s16, %s7688_s17, %s5141_s2, %s5141_s2, %s8422_s28  }
0x139d PF: > { %s8423_s29 = sld [smem:[#allocation9_spill]]  ;;  %s8424_s19 = sld [smem:[#allocation7_spill]] }
0x13a3   : > { %p4693_p6 = scmp.ge.s32.totalorder %s8423_s29, 2  ;;  %s4231_s27 = sand.u32 1, %s8424_s19  }
0x13a4   : > { %s4232_s20 = scalar_lea.sflag [#allocation5], %s4231_s27 }
0x13a5   : > { %p4690_p7 = pnand %p4693_p6, %p5291_p9 }
0x13a7   : > { %5090 = dma.done.wait (!%p4690_p7), %s4232_s20, 1024  }
0x13a8   : > { %5092 = vsyncadd (!%p4690_p7), %s4232_s20, 4294966272  ;;  %s30_s30 = sadd.s32 1, %s8423_s29   ;;  %s8426_s27 = sld [smem:[#allocation8_spill]] }
0x13a9   : > { %p27_p8 = scmp.ge.s32.totalorder %s30_s30, 6   ;;  %s8427_s29 = sld [smem:[#allocation10_spill]] }
0x13aa   : > { %s8428_s16 = sld [smem:[#allocation12_spill]]  ;;  %s8429_s24 = smov %s5099_s25 }
0x13ab   : > { %s8430_s25 = smov %s5103_s26  ;;  %s8431_s26 = smov %s5299_s1 }
0x13ac   : > { %s8432_s28 = smov %s5119_s0  ;;  %29 = sbr.rel (!%p27_p8) target bundleno = 12 (0xc), region = 150 }
0x13b0   : > { %s8433_s0 = smov %s8428_s16 }
0x13b3   :  { %4237 = vsyncpa [#allocation5], 1 }
0x13b4   :  { %4239 = vsyncpa [#allocation5 + $0x1], 1 }

</bundles_post_ra>
